<compile_context>
chip_gen: v6e
topology: v6e:2x2x1
jax: 0.10.0
libtpu: 0.0.40
codegen_flags: <defaults>
</compile_context>

<pallas_src>
import numpy as np
import jax
import jax.numpy as jnp
from jax.experimental import pallas as pl
from jax.experimental.pallas import tpu as pltpu

# ---- module-consistent config ------------------------------------------------
DEC_HIDDEN = 32                      # dec_hidden_size
NUM_HEADS = 4
HEAD_DIM = DEC_HIDDEN // NUM_HEADS   # 8
D2 = HEAD_DIM // 2                   # 4
FFN_HIDDEN = DEC_HIDDEN * 4          # 128
NUM_LAYERS = 2                       # lm_num_layers
CODE_SIZE = 31
OUT_DIM = CODE_SIZE + 1              # 32
T = 16                               # sequence length
B = 2                                # independent sequences
NEG_INF = -1e8                       # fill_with_neg_inf2
LN_EPS = 1e-5

# ---- packed-slab geometry ----------------------------------------------------
HP = 128                             # one vreg-aligned lane block
LA = 4 * HP                          # per-layer w_a cols: Q | K | VO | FFN1  (512)
NA = NUM_LAYERS * LA + HP            # + padded out-projection block          (1152)
NB = NUM_LAYERS * FFN_HIDDEN         # w_b rows: FFN2 per layer               (256)

STMAX = B * T                        # max stacked rows (full batch)          (32)
MBASE = 3 * STMAX                    # additive block-diag causal mask rows   (96)
HMBASE = MBASE + STMAX               # 4 per-head 8-lane masks                (128)
PBASE = HMBASE + NUM_HEADS           # per-layer small-param rows start       (132)
RPL = 9                              # rows per layer: bq bk g1 b1 g2 b2 bo bf1 bf2
GBASE = PBASE + NUM_LAYERS * RPL     # final LN + out bias rows               (150)
NV = 160                             # total vec rows (padded to multiple of 8)


# ---- shared math helpers -----------------------------------------------------
def _layer_norm(x, g, b):
    mu = jnp.mean(x, axis=-1, keepdims=True)
    var = jnp.mean(jnp.square(x - mu), axis=-1, keepdims=True)
    return (x - mu) * jax.lax.rsqrt(var + LN_EPS) * g + b


def _rotary_tables(seq, d):
    inv_freq = 1.0 / (10000.0 ** (jnp.arange(0, d, 2, dtype=jnp.float32) / d))
    pos = jnp.arange(seq, dtype=jnp.float32)
    freqs = pos[:, None] * inv_freq[None, :]
    emb = jnp.concatenate([freqs, freqs], axis=-1)
    return jnp.cos(emb), jnp.sin(emb)        # [seq, d] each


# ---- Pallas kernel -------------------------------------------------------------
def ar_dur_kernel(x_ref, wa_ref, wb_ref, vec_ref, out_ref):
    C, H, F, L = DEC_HIDDEN, NUM_HEADS, FFN_HIDDEN, NUM_LAYERS
    ST = x_ref.shape[0]               # stacked rows handled by this grid block
    x = x_ref[...]                    # [ST, C] f32

    # rotary tables, replicated across the 4 packed head groups and tiled over positions
    cos_t = vec_ref[0:ST, :]
    sin_hi = vec_ref[STMAX:STMAX + ST, :]          # multiplies roll(+D/2)
    sin_lo = vec_ref[2 * STMAX:2 * STMAX + ST, :]  # multiplies roll(-D/2); sign folded in
    amask = vec_ref[MBASE:MBASE + ST, :ST]         # additive block-diag causal mask (-1e8)
    hmask = [vec_ref[HMBASE + h:HMBASE + h + 1, :] for h in range(H)]

    def rope(t):
        # rotate-half via two lane rolls (XLU slot); per-head leakage killed by zeroed sin lanes
        return (t * cos_t
                + pltpu.roll(t, shift=D2, axis=1) * sin_hi
                + pltpu.roll(t, shift=HP - D2, axis=1) * sin_lo)

    for l in range(L):
        ca = l * LA
        vb = PBASE + l * RPL

        # --- pre-LN rotary self-attention (RotMultiheadAttention) ---
        res = x
        hb = _layer_norm(x, vec_ref[vb + 2:vb + 3, :C],
                         vec_ref[vb + 3:vb + 4, :C]).astype(jnp.bfloat16)
        # one fused Q|K|VO projection (384 cols); heads packed at 8 lanes (Q,K) / 32 lanes (VO)
        proj = jnp.dot(hb, wa_ref[:, ca:ca + 3 * HP],
                       preferred_element_type=jnp.float32)          # [ST, 384] f32
        q = rope(proj[:, 0:HP] + vec_ref[vb + 0:vb + 1, :])         # 1/sqrt(D) folded in
        k = rope(proj[:, HP:2 * HP] + vec_ref[vb + 1:vb + 2, :])
        kb = k.astype(jnp.bfloat16)

        attn = jnp.zeros((ST, C), jnp.float32)
        for h in range(H):
            qh = (q * hmask[h]).astype(jnp.bfloat16)                # isolate head h's 8 lanes
            s = jax.lax.dot_general(qh, kb, (((1,), (1,)), ((), ())),
                                    preferred_element_type=jnp.float32)   # [ST, ST]
            s = s + amask
            m = jnp.max(s, axis=-1, keepdims=True)
            e = jnp.exp(s - m)
            p = e * pl.reciprocal(jnp.sum(e, axis=-1, keepdims=True), approx=True)
            # vo block lanes [32h, 32h+32) hold LN(x) @ (W_v_h @ W_o_h); P_h @ vo_h is the
            # head's contribution to the attention output directly (W_o fused at pack time).
            vo_h = proj[:, 2 * HP + h * C:2 * HP + (h + 1) * C].astype(jnp.bfloat16)
            attn = attn + jnp.dot(p.astype(jnp.bfloat16), vo_h,
                                  preferred_element_type=jnp.float32)     # [ST, C]
        x = res + attn + vec_ref[vb + 6:vb + 7, :C]                 # b_o (+ folded b_v @ W_o)

        # --- pre-LN FFN (kernel_size=1 conv == Linear, GELU, Linear) ---
        res = x
        hb = _layer_norm(x, vec_ref[vb + 4:vb + 5, :C],
                         vec_ref[vb + 5:vb + 6, :C]).astype(jnp.bfloat16)
        h1 = jnp.dot(hb, wa_ref[:, ca + 3 * HP:ca + LA],
                     preferred_element_type=jnp.float32) + vec_ref[vb + 7:vb + 8, :F]
        # TODO(synk): torch F.gelu is erf-based; tanh approximation used for TPU lowering.
        h1 = jax.nn.gelu(h1, approximate=True)
        h2 = jnp.dot(h1.astype(jnp.bfloat16), wb_ref[l * F:(l + 1) * F, :],
                     preferred_element_type=jnp.float32) + vec_ref[vb + 8:vb + 9, :C]
        x = res + h2

    # final LayerNorm (use_post_ln=False) + project_out_dim, emitted lane-dense [ST, 128]
    xf = _layer_norm(x, vec_ref[GBASE:GBASE + 1, :C], vec_ref[GBASE + 1:GBASE + 2, :C])
    out = jnp.dot(xf.astype(jnp.bfloat16), wa_ref[:, NUM_LAYERS * LA:NUM_LAYERS * LA + HP],
                  preferred_element_type=jnp.float32) + vec_ref[GBASE + 2:GBASE + 3, :]
    out_ref[...] = out


# ---- wrapper -------------------------------------------------------------------
def ar_dur_forward(prev_code, x_ling, code_emb, w_a, w_b, vec, num_blocks=1):
    """prev_code: int32 [B, T]; x_ling: f32 [B, T, C] -> f32 [B, T, code_size+1].

    num_blocks=1 stacks the whole batch into one kernel body (best on single-TC v5e/v6e);
    num_blocks=2 gives one stacked chunk per grid step ('parallel') for v7x's two TCs.
    """
    bsz, seq = prev_code.shape
    assert seq == T and bsz % num_blocks == 0
    # x = code_emb(prev_code) + x_ling  (embedding gather stays in XLA; padding_idx row is 0)
    x = (code_emb[prev_code] + x_ling).reshape(bsz * seq, DEC_HIDDEN)   # stacked [B*T, C]
    st = (bsz // num_blocks) * seq
    out = pl.pallas_call(
        ar_dur_kernel,
        grid=(num_blocks,),
        in_specs=[
            pl.BlockSpec((st, DEC_HIDDEN), lambda b: (b, 0)),
            pl.BlockSpec(w_a.shape, lambda b: (0, 0)),   # weight slabs: constant blocks
            pl.BlockSpec(w_b.shape, lambda b: (0, 0)),
            pl.BlockSpec(vec.shape, lambda b: (0, 0)),
        ],
        out_specs=pl.BlockSpec((st, HP), lambda b: (b, 0)),
        out_shape=jax.ShapeDtypeStruct((bsz * seq, HP), jnp.float32),
        compiler_params=pltpu.CompilerParams(dimension_semantics=("parallel",)),
    )(x, w_a, w_b, vec)
    return out[:, :OUT_DIM].reshape(bsz, seq, OUT_DIM)


# ---- parameter packing (done once, outside the hot path) -----------------------
def pack_params(params, seq_len, batch):
    C, H, D, F, L = DEC_HIDDEN, NUM_HEADS, HEAD_DIM, FFN_HIDDEN, NUM_LAYERS
    scale = float(D) ** -0.5
    p = {k: np.asarray(v, np.float32) for k, v in params.items()}
    w_a = np.zeros((C, NA), np.float32)
    w_b = np.zeros((NB, C), np.float32)
    vec = np.zeros((NV, 128), np.float32)

    # rotary tables: 8-lane per-head pattern replicated across the 4 packed head groups,
    # tiled over the stacked batch rows (position period is T).
    cos, sin = _rotary_tables(seq_len, D)
    cos = np.asarray(cos); sin = np.asarray(sin)
    sin_hi = np.concatenate([np.zeros((seq_len, D2), np.float32), sin[:, D2:]], axis=1)
    sin_lo = np.concatenate([-sin[:, :D2], np.zeros((seq_len, D2), np.float32)], axis=1)
    vec[0:STMAX, :H * D] = np.tile(cos, (batch, H))
    vec[STMAX:2 * STMAX, :H * D] = np.tile(sin_hi, (batch, H))
    vec[2 * STMAX:3 * STMAX, :H * D] = np.tile(sin_lo, (batch, H))

    # additive causal mask, block-diagonal across the stacked independent sequences
    mask = np.triu(np.full((STMAX, STMAX), NEG_INF, np.float32), 1)
    seg = np.repeat(np.arange(batch), seq_len)
    mask = np.where(seg[:, None] != seg[None, :], np.float32(NEG_INF), mask)
    vec[MBASE:MBASE + STMAX, :STMAX] = mask

    for h in range(H):
        vec[HMBASE + h, h * D:(h + 1) * D] = 1.0      # per-head 8-lane selection masks

    for l in range(L):
        ca, vb = l * LA, PBASE + l * RPL
        wq = p['w_qkv'][l][:, :C] * scale             # fold 1/sqrt(D) into Wq
        wk = p['w_qkv'][l][:, C:2 * C]
        wv = p['w_qkv'][l][:, 2 * C:]
        bq = p['b_qkv'][l][:C] * scale
        bk = p['b_qkv'][l][C:2 * C]
        bv = p['b_qkv'][l][2 * C:]
        wo = p['w_o'][l]
        # Q / K blocks: 4 heads x 8 lanes packed contiguously (lanes 32..127 zero)
        w_a[:, ca:ca + C] = wq
        w_a[:, ca + HP:ca + HP + C] = wk
        # VO block: head h at lanes [32h, 32h+32) holds W_v_h @ W_o_h (fused at pack time)
        for h in range(H):
            w_a[:, ca + 2 * HP + h * C:ca + 2 * HP + (h + 1) * C] = (
                wv[:, h * D:(h + 1) * D] @ wo[h * D:(h + 1) * D, :])
        w_a[:, ca + 3 * HP:ca + LA] = p['w_ffn1'][l]
        w_b[l * F:(l + 1) * F, :] = p['w_ffn2'][l]
        vec[vb + 0, :C] = bq
        vec[vb + 1, :C] = bk
        vec[vb + 2, :C] = p['ln1_g'][l]
        vec[vb + 3, :C] = p['ln1_b'][l]
        vec[vb + 4, :C] = p['ln2_g'][l]
        vec[vb + 5, :C] = p['ln2_b'][l]
        vec[vb + 6, :C] = p['b_o'][l] + bv @ wo       # fold b_v @ W_o into b_o
        vec[vb + 7, :F] = p['b_ffn1'][l]
        vec[vb + 8, :C] = p['b_ffn2'][l]

    w_a[:, NUM_LAYERS * LA:NUM_LAYERS * LA + OUT_DIM] = p['w_out']
    vec[GBASE + 0, :C] = p['lnf_g']
    vec[GBASE + 1, :C] = p['lnf_b']
    vec[GBASE + 2, :OUT_DIM] = p['b_out']
    return (jnp.asarray(w_a, jnp.bfloat16),
            jnp.asarray(w_b, jnp.bfloat16),
            jnp.asarray(vec, jnp.float32))


# ---- pure-JAX reference (f32, PyTorch semantics) -------------------------------
def reference_forward(prev_code, x_ling, params):
    C, H, D = DEC_HIDDEN, NUM_HEADS, HEAD_DIM
    bsz, seq = prev_code.shape
    cos, sin = _rotary_tables(seq, D)
    scale = float(D) ** -0.5
    rr = jnp.arange(seq)[:, None]
    cc = jnp.arange(seq)[None, :]
    mask = jnp.where(cc > rr, NEG_INF, 0.0).astype(jnp.float32)

    def rot(t):
        return t * cos + jnp.concatenate([-t[:, D2:], t[:, :D2]], axis=-1) * sin

    outs = []
    for b in range(bsz):
        x = params['code_emb'][prev_code[b]] + x_ling[b]
        for l in range(NUM_LAYERS):
            res = x
            h = _layer_norm(x, params['ln1_g'][l], params['ln1_b'][l])
            qkv = h @ params['w_qkv'][l] + params['b_qkv'][l]
            heads = []
            for hh in range(H):
                q = rot(qkv[:, hh * D:(hh + 1) * D]) * scale
                k = rot(qkv[:, C + hh * D:C + (hh + 1) * D])
                v = qkv[:, 2 * C + hh * D:2 * C + (hh + 1) * D]
                s = q @ k.T + mask
                p_ = jax.nn.softmax(s, axis=-1)
                heads.append(p_ @ v)
            attn = jnp.concatenate(heads, axis=-1) @ params['w_o'][l] + params['b_o'][l]
            x = res + attn
            res = x
            h = _layer_norm(x, params['ln2_g'][l], params['ln2_b'][l])
            h = h @ params['w_ffn1'][l] + params['b_ffn1'][l]
            h = jax.nn.gelu(h, approximate=False)        # erf-based, as torch F.gelu
            h = h @ params['w_ffn2'][l] + params['b_ffn2'][l]
            x = res + h
        x = _layer_norm(x, params['lnf_g'], params['lnf_b'])
        outs.append(x @ params['w_out'] + params['b_out'])
    return jnp.stack(outs, axis=0)


# ---- deterministic synthetic parameters -----------------------------------------
def init_params(key):
    ks = jax.random.split(key, 12)
    C, F, L, V = DEC_HIDDEN, FFN_HIDDEN, NUM_LAYERS, OUT_DIM

    def nrm(k, shape, scale=0.02):
        return scale * jax.random.normal(k, shape, dtype=jnp.float32)

    # Embedding(code_size + 2, C, padding_idx=0): row 0 zeroed.
    code_emb = nrm(ks[0], (CODE_SIZE + 2, C), 0.1).at[0].set(0.0)
    return dict(
        code_emb=code_emb,
        ln1_g=jnp.ones((L, C), jnp.float32), ln1_b=jnp.zeros((L, C), jnp.float32),
        w_qkv=nrm(ks[1], (L, C, 3 * C)),     b_qkv=nrm(ks[2], (L, 3 * C)),
        w_o=nrm(ks[3], (L, C, C)),           b_o=nrm(ks[4], (L, C)),
        ln2_g=jnp.ones((L, C), jnp.float32), ln2_b=jnp.zeros((L, C), jnp.float32),
        w_ffn1=nrm(ks[5], (L, C, F)),        b_ffn1=nrm(ks[6], (L, F)),
        w_ffn2=nrm(ks[7], (L, F, C)),        b_ffn2=nrm(ks[8], (L, C)),
        lnf_g=jnp.ones((C,), jnp.float32),   lnf_b=jnp.zeros((C,), jnp.float32),
        w_out=nrm(ks[9], (C, V)),            b_out=nrm(ks[10], (V,)),
    )


if __name__ == "__main__":
    key = jax.random.PRNGKey(0)
    kp, kc, kl = jax.random.split(key, 3)
    params = init_params(kp)

    prev_code = jax.random.randint(kc, (B, T), 0, CODE_SIZE + 2, dtype=jnp.int32)
    x_ling = 0.1 * jax.random.normal(kl, (B, T, DEC_HIDDEN), dtype=jnp.float32)

    w_a, w_b, vec = pack_params(params, T, B)
    ref = reference_forward(prev_code, x_ling, params)

    # num_blocks=1: whole batch stacked in one body (single-TC v5e/v6e path)
    # num_blocks=2: one stacked chunk per parallel grid step (v7x dual-TC path)
    for nb in (1, 2):
        out = jax.block_until_ready(
            ar_dur_forward(prev_code, x_ling, params['code_emb'], w_a, w_b, vec,
                           num_blocks=nb))
        assert out.shape == (B, T, OUT_DIM), out.shape
        assert bool(jnp.all(jnp.isfinite(out)))
        max_err = float(jnp.max(jnp.abs(out - ref)))
        assert bool(jnp.allclose(out, ref, rtol=2e-2, atol=2e-2)), (nb, max_err)
    print("KERNEL_OK")
</pallas_src>

<mosaic_0001>
module attributes {stable_mosaic.version = 11 : i64} {
  func.func @ar_dur_kernel(%arg0: i32, %arg1: memref<32x32xf32, #tpu.memory_space<vmem>>, %arg2: memref<32x1152xbf16, #tpu.memory_space<vmem>>, %arg3: memref<256x32xbf16, #tpu.memory_space<vmem>>, %arg4: memref<160x128xf32, #tpu.memory_space<vmem>>, %arg5: memref<32x128xf32, #tpu.memory_space<vmem>>) attributes {dimension_semantics = [#tpu.dimension_semantics<parallel>], iteration_bounds = array<i64: 1>, scalar_prefetch = 0 : i64, scratch_operands = 0 : i64, tpu.core_type = #tpu.core_type<tc>, window_params = [{transform_indices = @transform_0, window_bounds = array<i64: 32, 32>}, {pipeline_mode = #tpu.pipeline_mode<synchronous>, transform_indices = @transform_1, window_bounds = array<i64: 32, 1152>}, {pipeline_mode = #tpu.pipeline_mode<synchronous>, transform_indices = @transform_2, window_bounds = array<i64: 256, 32>}, {pipeline_mode = #tpu.pipeline_mode<synchronous>, transform_indices = @transform_3, window_bounds = array<i64: 160, 128>}, {transform_indices = @transform_4, window_bounds = array<i64: 32, 128>}]} {
    %c0 = arith.constant 0 : index
    %c0_0 = arith.constant 0 : index
    %0 = vector.load %arg1[%c0, %c0_0] : memref<32x32xf32, #tpu.memory_space<vmem>>, vector<32x32xf32>
    %c0_1 = arith.constant 0 : index
    %c0_2 = arith.constant 0 : index
    %1 = vector.load %arg4[%c0_1, %c0_2] : memref<160x128xf32, #tpu.memory_space<vmem>>, vector<32x128xf32>
    %c32 = arith.constant 32 : index
    %c0_3 = arith.constant 0 : index
    %2 = vector.load %arg4[%c32, %c0_3] : memref<160x128xf32, #tpu.memory_space<vmem>>, vector<32x128xf32>
    %c64 = arith.constant 64 : index
    %c0_4 = arith.constant 0 : index
    %3 = vector.load %arg4[%c64, %c0_4] : memref<160x128xf32, #tpu.memory_space<vmem>>, vector<32x128xf32>
    %c96 = arith.constant 96 : index
    %c0_5 = arith.constant 0 : index
    %4 = vector.load %arg4[%c96, %c0_5] : memref<160x128xf32, #tpu.memory_space<vmem>>, vector<32x32xf32>
    %c128 = arith.constant 128 : index
    %c0_6 = arith.constant 0 : index
    %5 = vector.load %arg4[%c128, %c0_6] : memref<160x128xf32, #tpu.memory_space<vmem>>, vector<1x128xf32>
    %c129 = arith.constant 129 : index
    %c0_7 = arith.constant 0 : index
    %6 = vector.load %arg4[%c129, %c0_7] : memref<160x128xf32, #tpu.memory_space<vmem>>, vector<1x128xf32>
    %c130 = arith.constant 130 : index
    %c0_8 = arith.constant 0 : index
    %7 = vector.load %arg4[%c130, %c0_8] : memref<160x128xf32, #tpu.memory_space<vmem>>, vector<1x128xf32>
    %c131 = arith.constant 131 : index
    %c0_9 = arith.constant 0 : index
    %8 = vector.load %arg4[%c131, %c0_9] : memref<160x128xf32, #tpu.memory_space<vmem>>, vector<1x128xf32>
    %c134 = arith.constant 134 : index
    %c0_10 = arith.constant 0 : index
    %9 = vector.load %arg4[%c134, %c0_10] : memref<160x128xf32, #tpu.memory_space<vmem>>, vector<1x32xf32>
    %c135 = arith.constant 135 : index
    %c0_11 = arith.constant 0 : index
    %10 = vector.load %arg4[%c135, %c0_11] : memref<160x128xf32, #tpu.memory_space<vmem>>, vector<1x32xf32>
    %cst = arith.constant dense<0.000000e+00> : vector<32xf32>
    %11 = vector.multi_reduction <add>, %0, %cst [1] : vector<32x32xf32> to vector<32xf32>
    %12 = vector.shape_cast %11 : vector<32xf32> to vector<32x1xf32>
    %cst_12 = arith.constant 3.200000e+01 : f32
    %13 = vector.broadcast %cst_12 : f32 to vector<32x1xf32>
    %14 = arith.divf %12, %13 : vector<32x1xf32>
    %15 = vector.broadcast %14 : vector<32x1xf32> to vector<32x32xf32>
    %16 = arith.subf %0, %15 : vector<32x32xf32>
    %17 = arith.mulf %16, %16 : vector<32x32xf32>
    %cst_13 = arith.constant dense<0.000000e+00> : vector<32xf32>
    %18 = vector.multi_reduction <add>, %17, %cst_13 [1] : vector<32x32xf32> to vector<32xf32>
    %19 = vector.shape_cast %18 : vector<32xf32> to vector<32x1xf32>
    %cst_14 = arith.constant 3.200000e+01 : f32
    %20 = vector.broadcast %cst_14 : f32 to vector<32x1xf32>
    %21 = arith.divf %19, %20 : vector<32x1xf32>
    %22 = vector.broadcast %14 : vector<32x1xf32> to vector<32x32xf32>
    %23 = arith.subf %0, %22 : vector<32x32xf32>
    %cst_15 = arith.constant 9.99999974E-6 : f32
    %24 = vector.broadcast %cst_15 : f32 to vector<32x1xf32>
    %25 = arith.addf %21, %24 : vector<32x1xf32>
    %26 = math.rsqrt %25 : vector<32x1xf32>
    %27 = vector.broadcast %26 : vector<32x1xf32> to vector<32x32xf32>
    %28 = arith.mulf %23, %27 : vector<32x32xf32>
    %29 = vector.broadcast %9 : vector<1x32xf32> to vector<32x32xf32>
    %30 = arith.mulf %28, %29 : vector<32x32xf32>
    %31 = vector.broadcast %10 : vector<1x32xf32> to vector<32x32xf32>
    %32 = arith.addf %30, %31 : vector<32x32xf32>
    %33 = arith.truncf %32 : vector<32x32xf32> to vector<32x32xbf16>
    %c0_16 = arith.constant 0 : index
    %c0_17 = arith.constant 0 : index
    %34 = vector.load %arg2[%c0_16, %c0_17] : memref<32x1152xbf16, #tpu.memory_space<vmem>>, vector<32x384xbf16>
    %cst_18 = arith.constant dense<0.000000e+00> : vector<32x384xf32>
    %35 = tpu.matmul %33, %34, %cst_18 {dimension_numbers = #tpu.dot_dimension_numbers<[1], [0], [0], [1], [0, 0, 1, 1], [], []>} : vector<32x32xbf16>, vector<32x384xbf16>, vector<32x384xf32> -> vector<32x384xf32>
    %36 = vector.extract_strided_slice %35 {offsets = [0, 0], sizes = [32, 128], strides = [1, 1]} : vector<32x384xf32> to vector<32x128xf32>
    %c132 = arith.constant 132 : index
    %c0_19 = arith.constant 0 : index
    %37 = vector.load %arg4[%c132, %c0_19] : memref<160x128xf32, #tpu.memory_space<vmem>>, vector<1x128xf32>
    %38 = vector.broadcast %37 : vector<1x128xf32> to vector<32x128xf32>
    %39 = arith.addf %36, %38 : vector<32x128xf32>
    %40 = arith.mulf %39, %1 : vector<32x128xf32>
    %c4_i32 = arith.constant 4 : i32
    %41 = tpu.dynamic_rotate %39 by %c4_i32 dim 1 : vector<32x128xf32>, i32 -> vector<32x128xf32>
    %42 = arith.mulf %41, %2 : vector<32x128xf32>
    %43 = arith.addf %40, %42 : vector<32x128xf32>
    %c124_i32 = arith.constant 124 : i32
    %44 = tpu.dynamic_rotate %39 by %c124_i32 dim 1 : vector<32x128xf32>, i32 -> vector<32x128xf32>
    %45 = arith.mulf %44, %3 : vector<32x128xf32>
    %46 = arith.addf %43, %45 : vector<32x128xf32>
    %47 = vector.extract_strided_slice %35 {offsets = [0, 128], sizes = [32, 128], strides = [1, 1]} : vector<32x384xf32> to vector<32x128xf32>
    %c133 = arith.constant 133 : index
    %c0_20 = arith.constant 0 : index
    %48 = vector.load %arg4[%c133, %c0_20] : memref<160x128xf32, #tpu.memory_space<vmem>>, vector<1x128xf32>
    %49 = vector.broadcast %48 : vector<1x128xf32> to vector<32x128xf32>
    %50 = arith.addf %47, %49 : vector<32x128xf32>
    %51 = arith.mulf %50, %1 : vector<32x128xf32>
    %c4_i32_21 = arith.constant 4 : i32
    %52 = tpu.dynamic_rotate %50 by %c4_i32_21 dim 1 : vector<32x128xf32>, i32 -> vector<32x128xf32>
    %53 = arith.mulf %52, %2 : vector<32x128xf32>
    %54 = arith.addf %51, %53 : vector<32x128xf32>
    %c124_i32_22 = arith.constant 124 : i32
    %55 = tpu.dynamic_rotate %50 by %c124_i32_22 dim 1 : vector<32x128xf32>, i32 -> vector<32x128xf32>
    %56 = arith.mulf %55, %3 : vector<32x128xf32>
    %57 = arith.addf %54, %56 : vector<32x128xf32>
    %58 = arith.truncf %57 : vector<32x128xf32> to vector<32x128xbf16>
    %cst_23 = arith.constant 0.000000e+00 : f32
    %59 = vector.broadcast %cst_23 : f32 to vector<32x32xf32>
    %60 = vector.broadcast %5 : vector<1x128xf32> to vector<32x128xf32>
    %61 = arith.mulf %46, %60 : vector<32x128xf32>
    %62 = arith.truncf %61 : vector<32x128xf32> to vector<32x128xbf16>
    %cst_24 = arith.constant dense<0.000000e+00> : vector<32x32xf32>
    %63 = tpu.matmul %62, %58, %cst_24 {dimension_numbers = #tpu.dot_dimension_numbers<[1], [1], [0], [0], [0, 0, 1, 0], [], []>} : vector<32x128xbf16>, vector<32x128xbf16>, vector<32x32xf32> -> vector<32x32xf32>
    %64 = arith.addf %63, %4 : vector<32x32xf32>
    %cst_25 = arith.constant dense<0xFF800000> : vector<32xf32>
    %65 = vector.multi_reduction <maximumf>, %64, %cst_25 [1] : vector<32x32xf32> to vector<32xf32>
    %66 = vector.shape_cast %65 : vector<32xf32> to vector<32x1xf32>
    %67 = vector.broadcast %66 : vector<32x1xf32> to vector<32x32xf32>
    %68 = arith.subf %64, %67 : vector<32x32xf32>
    %69 = math.exp %68 : vector<32x32xf32>
    %cst_26 = arith.constant dense<0.000000e+00> : vector<32xf32>
    %70 = vector.multi_reduction <add>, %69, %cst_26 [1] : vector<32x32xf32> to vector<32xf32>
    %71 = vector.shape_cast %70 : vector<32xf32> to vector<32x1xf32>
    %72 = tpu.reciprocal %71 {approx = true} : vector<32x1xf32> -> vector<32x1xf32>
    %73 = vector.broadcast %72 : vector<32x1xf32> to vector<32x32xf32>
    %74 = arith.mulf %69, %73 : vector<32x32xf32>
    %75 = vector.extract_strided_slice %35 {offsets = [0, 256], sizes = [32, 32], strides = [1, 1]} : vector<32x384xf32> to vector<32x32xf32>
    %76 = arith.truncf %75 : vector<32x32xf32> to vector<32x32xbf16>
    %77 = arith.truncf %74 : vector<32x32xf32> to vector<32x32xbf16>
    %cst_27 = arith.constant dense<0.000000e+00> : vector<32x32xf32>
    %78 = tpu.matmul %77, %76, %cst_27 {dimension_numbers = #tpu.dot_dimension_numbers<[1], [0], [0], [1], [0, 0, 1, 1], [], []>} : vector<32x32xbf16>, vector<32x32xbf16>, vector<32x32xf32> -> vector<32x32xf32>
    %79 = arith.addf %59, %78 : vector<32x32xf32>
    %80 = vector.broadcast %6 : vector<1x128xf32> to vector<32x128xf32>
    %81 = arith.mulf %46, %80 : vector<32x128xf32>
    %82 = arith.truncf %81 : vector<32x128xf32> to vector<32x128xbf16>
    %cst_28 = arith.constant dense<0.000000e+00> : vector<32x32xf32>
    %83 = tpu.matmul %82, %58, %cst_28 {dimension_numbers = #tpu.dot_dimension_numbers<[1], [1], [0], [0], [0, 0, 1, 0], [], []>} : vector<32x128xbf16>, vector<32x128xbf16>, vector<32x32xf32> -> vector<32x32xf32>
    %84 = arith.addf %83, %4 : vector<32x32xf32>
    %cst_29 = arith.constant dense<0xFF800000> : vector<32xf32>
    %85 = vector.multi_reduction <maximumf>, %84, %cst_29 [1] : vector<32x32xf32> to vector<32xf32>
    %86 = vector.shape_cast %85 : vector<32xf32> to vector<32x1xf32>
    %87 = vector.broadcast %86 : vector<32x1xf32> to vector<32x32xf32>
    %88 = arith.subf %84, %87 : vector<32x32xf32>
    %89 = math.exp %88 : vector<32x32xf32>
    %cst_30 = arith.constant dense<0.000000e+00> : vector<32xf32>
    %90 = vector.multi_reduction <add>, %89, %cst_30 [1] : vector<32x32xf32> to vector<32xf32>
    %91 = vector.shape_cast %90 : vector<32xf32> to vector<32x1xf32>
    %92 = tpu.reciprocal %91 {approx = true} : vector<32x1xf32> -> vector<32x1xf32>
    %93 = vector.broadcast %92 : vector<32x1xf32> to vector<32x32xf32>
    %94 = arith.mulf %89, %93 : vector<32x32xf32>
    %95 = vector.extract_strided_slice %35 {offsets = [0, 288], sizes = [32, 32], strides = [1, 1]} : vector<32x384xf32> to vector<32x32xf32>
    %96 = arith.truncf %95 : vector<32x32xf32> to vector<32x32xbf16>
    %97 = arith.truncf %94 : vector<32x32xf32> to vector<32x32xbf16>
    %cst_31 = arith.constant dense<0.000000e+00> : vector<32x32xf32>
    %98 = tpu.matmul %97, %96, %cst_31 {dimension_numbers = #tpu.dot_dimension_numbers<[1], [0], [0], [1], [0, 0, 1, 1], [], []>} : vector<32x32xbf16>, vector<32x32xbf16>, vector<32x32xf32> -> vector<32x32xf32>
    %99 = arith.addf %79, %98 : vector<32x32xf32>
    %100 = vector.broadcast %7 : vector<1x128xf32> to vector<32x128xf32>
    %101 = arith.mulf %46, %100 : vector<32x128xf32>
    %102 = arith.truncf %101 : vector<32x128xf32> to vector<32x128xbf16>
    %cst_32 = arith.constant dense<0.000000e+00> : vector<32x32xf32>
    %103 = tpu.matmul %102, %58, %cst_32 {dimension_numbers = #tpu.dot_dimension_numbers<[1], [1], [0], [0], [0, 0, 1, 0], [], []>} : vector<32x128xbf16>, vector<32x128xbf16>, vector<32x32xf32> -> vector<32x32xf32>
    %104 = arith.addf %103, %4 : vector<32x32xf32>
    %cst_33 = arith.constant dense<0xFF800000> : vector<32xf32>
    %105 = vector.multi_reduction <maximumf>, %104, %cst_33 [1] : vector<32x32xf32> to vector<32xf32>
    %106 = vector.shape_cast %105 : vector<32xf32> to vector<32x1xf32>
    %107 = vector.broadcast %106 : vector<32x1xf32> to vector<32x32xf32>
    %108 = arith.subf %104, %107 : vector<32x32xf32>
    %109 = math.exp %108 : vector<32x32xf32>
    %cst_34 = arith.constant dense<0.000000e+00> : vector<32xf32>
    %110 = vector.multi_reduction <add>, %109, %cst_34 [1] : vector<32x32xf32> to vector<32xf32>
    %111 = vector.shape_cast %110 : vector<32xf32> to vector<32x1xf32>
    %112 = tpu.reciprocal %111 {approx = true} : vector<32x1xf32> -> vector<32x1xf32>
    %113 = vector.broadcast %112 : vector<32x1xf32> to vector<32x32xf32>
    %114 = arith.mulf %109, %113 : vector<32x32xf32>
    %115 = vector.extract_strided_slice %35 {offsets = [0, 320], sizes = [32, 32], strides = [1, 1]} : vector<32x384xf32> to vector<32x32xf32>
    %116 = arith.truncf %115 : vector<32x32xf32> to vector<32x32xbf16>
    %117 = arith.truncf %114 : vector<32x32xf32> to vector<32x32xbf16>
    %cst_35 = arith.constant dense<0.000000e+00> : vector<32x32xf32>
    %118 = tpu.matmul %117, %116, %cst_35 {dimension_numbers = #tpu.dot_dimension_numbers<[1], [0], [0], [1], [0, 0, 1, 1], [], []>} : vector<32x32xbf16>, vector<32x32xbf16>, vector<32x32xf32> -> vector<32x32xf32>
    %119 = arith.addf %99, %118 : vector<32x32xf32>
    %120 = vector.broadcast %8 : vector<1x128xf32> to vector<32x128xf32>
    %121 = arith.mulf %46, %120 : vector<32x128xf32>
    %122 = arith.truncf %121 : vector<32x128xf32> to vector<32x128xbf16>
    %cst_36 = arith.constant dense<0.000000e+00> : vector<32x32xf32>
    %123 = tpu.matmul %122, %58, %cst_36 {dimension_numbers = #tpu.dot_dimension_numbers<[1], [1], [0], [0], [0, 0, 1, 0], [], []>} : vector<32x128xbf16>, vector<32x128xbf16>, vector<32x32xf32> -> vector<32x32xf32>
    %124 = arith.addf %123, %4 : vector<32x32xf32>
    %cst_37 = arith.constant dense<0xFF800000> : vector<32xf32>
    %125 = vector.multi_reduction <maximumf>, %124, %cst_37 [1] : vector<32x32xf32> to vector<32xf32>
    %126 = vector.shape_cast %125 : vector<32xf32> to vector<32x1xf32>
    %127 = vector.broadcast %126 : vector<32x1xf32> to vector<32x32xf32>
    %128 = arith.subf %124, %127 : vector<32x32xf32>
    %129 = math.exp %128 : vector<32x32xf32>
    %cst_38 = arith.constant dense<0.000000e+00> : vector<32xf32>
    %130 = vector.multi_reduction <add>, %129, %cst_38 [1] : vector<32x32xf32> to vector<32xf32>
    %131 = vector.shape_cast %130 : vector<32xf32> to vector<32x1xf32>
    %132 = tpu.reciprocal %131 {approx = true} : vector<32x1xf32> -> vector<32x1xf32>
    %133 = vector.broadcast %132 : vector<32x1xf32> to vector<32x32xf32>
    %134 = arith.mulf %129, %133 : vector<32x32xf32>
    %135 = vector.extract_strided_slice %35 {offsets = [0, 352], sizes = [32, 32], strides = [1, 1]} : vector<32x384xf32> to vector<32x32xf32>
    %136 = arith.truncf %135 : vector<32x32xf32> to vector<32x32xbf16>
    %137 = arith.truncf %134 : vector<32x32xf32> to vector<32x32xbf16>
    %cst_39 = arith.constant dense<0.000000e+00> : vector<32x32xf32>
    %138 = tpu.matmul %137, %136, %cst_39 {dimension_numbers = #tpu.dot_dimension_numbers<[1], [0], [0], [1], [0, 0, 1, 1], [], []>} : vector<32x32xbf16>, vector<32x32xbf16>, vector<32x32xf32> -> vector<32x32xf32>
    %139 = arith.addf %119, %138 : vector<32x32xf32>
    %140 = arith.addf %0, %139 : vector<32x32xf32>
    %c138 = arith.constant 138 : index
    %c0_40 = arith.constant 0 : index
    %141 = vector.load %arg4[%c138, %c0_40] : memref<160x128xf32, #tpu.memory_space<vmem>>, vector<1x32xf32>
    %142 = vector.broadcast %141 : vector<1x32xf32> to vector<32x32xf32>
    %143 = arith.addf %140, %142 : vector<32x32xf32>
    %c136 = arith.constant 136 : index
    %c0_41 = arith.constant 0 : index
    %144 = vector.load %arg4[%c136, %c0_41] : memref<160x128xf32, #tpu.memory_space<vmem>>, vector<1x32xf32>
    %c137 = arith.constant 137 : index
    %c0_42 = arith.constant 0 : index
    %145 = vector.load %arg4[%c137, %c0_42] : memref<160x128xf32, #tpu.memory_space<vmem>>, vector<1x32xf32>
    %cst_43 = arith.constant dense<0.000000e+00> : vector<32xf32>
    %146 = vector.multi_reduction <add>, %143, %cst_43 [1] : vector<32x32xf32> to vector<32xf32>
    %147 = vector.shape_cast %146 : vector<32xf32> to vector<32x1xf32>
    %cst_44 = arith.constant 3.200000e+01 : f32
    %148 = vector.broadcast %cst_44 : f32 to vector<32x1xf32>
    %149 = arith.divf %147, %148 : vector<32x1xf32>
    %150 = vector.broadcast %149 : vector<32x1xf32> to vector<32x32xf32>
    %151 = arith.subf %143, %150 : vector<32x32xf32>
    %152 = arith.mulf %151, %151 : vector<32x32xf32>
    %cst_45 = arith.constant dense<0.000000e+00> : vector<32xf32>
    %153 = vector.multi_reduction <add>, %152, %cst_45 [1] : vector<32x32xf32> to vector<32xf32>
    %154 = vector.shape_cast %153 : vector<32xf32> to vector<32x1xf32>
    %cst_46 = arith.constant 3.200000e+01 : f32
    %155 = vector.broadcast %cst_46 : f32 to vector<32x1xf32>
    %156 = arith.divf %154, %155 : vector<32x1xf32>
    %157 = vector.broadcast %149 : vector<32x1xf32> to vector<32x32xf32>
    %158 = arith.subf %143, %157 : vector<32x32xf32>
    %cst_47 = arith.constant 9.99999974E-6 : f32
    %159 = vector.broadcast %cst_47 : f32 to vector<32x1xf32>
    %160 = arith.addf %156, %159 : vector<32x1xf32>
    %161 = math.rsqrt %160 : vector<32x1xf32>
    %162 = vector.broadcast %161 : vector<32x1xf32> to vector<32x32xf32>
    %163 = arith.mulf %158, %162 : vector<32x32xf32>
    %164 = vector.broadcast %144 : vector<1x32xf32> to vector<32x32xf32>
    %165 = arith.mulf %163, %164 : vector<32x32xf32>
    %166 = vector.broadcast %145 : vector<1x32xf32> to vector<32x32xf32>
    %167 = arith.addf %165, %166 : vector<32x32xf32>
    %168 = arith.truncf %167 : vector<32x32xf32> to vector<32x32xbf16>
    %c0_48 = arith.constant 0 : index
    %c384 = arith.constant 384 : index
    %169 = vector.load %arg2[%c0_48, %c384] : memref<32x1152xbf16, #tpu.memory_space<vmem>>, vector<32x128xbf16>
    %cst_49 = arith.constant dense<0.000000e+00> : vector<32x128xf32>
    %170 = tpu.matmul %168, %169, %cst_49 {dimension_numbers = #tpu.dot_dimension_numbers<[1], [0], [0], [1], [0, 0, 1, 1], [], []>} : vector<32x32xbf16>, vector<32x128xbf16>, vector<32x128xf32> -> vector<32x128xf32>
    %c139 = arith.constant 139 : index
    %c0_50 = arith.constant 0 : index
    %171 = vector.load %arg4[%c139, %c0_50] : memref<160x128xf32, #tpu.memory_space<vmem>>, vector<1x128xf32>
    %172 = vector.broadcast %171 : vector<1x128xf32> to vector<32x128xf32>
    %173 = arith.addf %170, %172 : vector<32x128xf32>
    %174 = arith.mulf %173, %173 : vector<32x128xf32>
    %175 = arith.mulf %173, %174 : vector<32x128xf32>
    %cst_51 = arith.constant 4.471500e-02 : f32
    %176 = vector.broadcast %cst_51 : f32 to vector<32x128xf32>
    %177 = arith.mulf %176, %175 : vector<32x128xf32>
    %178 = arith.addf %173, %177 : vector<32x128xf32>
    %cst_52 = arith.constant 0.797884583 : f32
    %179 = vector.broadcast %cst_52 : f32 to vector<32x128xf32>
    %180 = arith.mulf %179, %178 : vector<32x128xf32>
    %181 = math.tanh %180 : vector<32x128xf32>
    %cst_53 = arith.constant 1.000000e+00 : f32
    %182 = vector.broadcast %cst_53 : f32 to vector<32x128xf32>
    %183 = arith.addf %182, %181 : vector<32x128xf32>
    %cst_54 = arith.constant 5.000000e-01 : f32
    %184 = vector.broadcast %cst_54 : f32 to vector<32x128xf32>
    %185 = arith.mulf %184, %183 : vector<32x128xf32>
    %186 = arith.mulf %173, %185 : vector<32x128xf32>
    %187 = arith.truncf %186 : vector<32x128xf32> to vector<32x128xbf16>
    %c0_55 = arith.constant 0 : index
    %c0_56 = arith.constant 0 : index
    %188 = vector.load %arg3[%c0_55, %c0_56] : memref<256x32xbf16, #tpu.memory_space<vmem>>, vector<128x32xbf16>
    %cst_57 = arith.constant dense<0.000000e+00> : vector<32x32xf32>
    %189 = tpu.matmul %187, %188, %cst_57 {dimension_numbers = #tpu.dot_dimension_numbers<[1], [0], [0], [1], [0, 0, 1, 1], [], []>} : vector<32x128xbf16>, vector<128x32xbf16>, vector<32x32xf32> -> vector<32x32xf32>
    %c140 = arith.constant 140 : index
    %c0_58 = arith.constant 0 : index
    %190 = vector.load %arg4[%c140, %c0_58] : memref<160x128xf32, #tpu.memory_space<vmem>>, vector<1x32xf32>
    %191 = vector.broadcast %190 : vector<1x32xf32> to vector<32x32xf32>
    %192 = arith.addf %189, %191 : vector<32x32xf32>
    %193 = arith.addf %143, %192 : vector<32x32xf32>
    %c143 = arith.constant 143 : index
    %c0_59 = arith.constant 0 : index
    %194 = vector.load %arg4[%c143, %c0_59] : memref<160x128xf32, #tpu.memory_space<vmem>>, vector<1x32xf32>
    %c144 = arith.constant 144 : index
    %c0_60 = arith.constant 0 : index
    %195 = vector.load %arg4[%c144, %c0_60] : memref<160x128xf32, #tpu.memory_space<vmem>>, vector<1x32xf32>
    %cst_61 = arith.constant dense<0.000000e+00> : vector<32xf32>
    %196 = vector.multi_reduction <add>, %193, %cst_61 [1] : vector<32x32xf32> to vector<32xf32>
    %197 = vector.shape_cast %196 : vector<32xf32> to vector<32x1xf32>
    %cst_62 = arith.constant 3.200000e+01 : f32
    %198 = vector.broadcast %cst_62 : f32 to vector<32x1xf32>
    %199 = arith.divf %197, %198 : vector<32x1xf32>
    %200 = vector.broadcast %199 : vector<32x1xf32> to vector<32x32xf32>
    %201 = arith.subf %193, %200 : vector<32x32xf32>
    %202 = arith.mulf %201, %201 : vector<32x32xf32>
    %cst_63 = arith.constant dense<0.000000e+00> : vector<32xf32>
    %203 = vector.multi_reduction <add>, %202, %cst_63 [1] : vector<32x32xf32> to vector<32xf32>
    %204 = vector.shape_cast %203 : vector<32xf32> to vector<32x1xf32>
    %cst_64 = arith.constant 3.200000e+01 : f32
    %205 = vector.broadcast %cst_64 : f32 to vector<32x1xf32>
    %206 = arith.divf %204, %205 : vector<32x1xf32>
    %207 = vector.broadcast %199 : vector<32x1xf32> to vector<32x32xf32>
    %208 = arith.subf %193, %207 : vector<32x32xf32>
    %cst_65 = arith.constant 9.99999974E-6 : f32
    %209 = vector.broadcast %cst_65 : f32 to vector<32x1xf32>
    %210 = arith.addf %206, %209 : vector<32x1xf32>
    %211 = math.rsqrt %210 : vector<32x1xf32>
    %212 = vector.broadcast %211 : vector<32x1xf32> to vector<32x32xf32>
    %213 = arith.mulf %208, %212 : vector<32x32xf32>
    %214 = vector.broadcast %194 : vector<1x32xf32> to vector<32x32xf32>
    %215 = arith.mulf %213, %214 : vector<32x32xf32>
    %216 = vector.broadcast %195 : vector<1x32xf32> to vector<32x32xf32>
    %217 = arith.addf %215, %216 : vector<32x32xf32>
    %218 = arith.truncf %217 : vector<32x32xf32> to vector<32x32xbf16>
    %c0_66 = arith.constant 0 : index
    %c512 = arith.constant 512 : index
    %219 = vector.load %arg2[%c0_66, %c512] : memref<32x1152xbf16, #tpu.memory_space<vmem>>, vector<32x384xbf16>
    %cst_67 = arith.constant dense<0.000000e+00> : vector<32x384xf32>
    %220 = tpu.matmul %218, %219, %cst_67 {dimension_numbers = #tpu.dot_dimension_numbers<[1], [0], [0], [1], [0, 0, 1, 1], [], []>} : vector<32x32xbf16>, vector<32x384xbf16>, vector<32x384xf32> -> vector<32x384xf32>
    %221 = vector.extract_strided_slice %220 {offsets = [0, 0], sizes = [32, 128], strides = [1, 1]} : vector<32x384xf32> to vector<32x128xf32>
    %c141 = arith.constant 141 : index
    %c0_68 = arith.constant 0 : index
    %222 = vector.load %arg4[%c141, %c0_68] : memref<160x128xf32, #tpu.memory_space<vmem>>, vector<1x128xf32>
    %223 = vector.broadcast %222 : vector<1x128xf32> to vector<32x128xf32>
    %224 = arith.addf %221, %223 : vector<32x128xf32>
    %225 = arith.mulf %224, %1 : vector<32x128xf32>
    %c4_i32_69 = arith.constant 4 : i32
    %226 = tpu.dynamic_rotate %224 by %c4_i32_69 dim 1 : vector<32x128xf32>, i32 -> vector<32x128xf32>
    %227 = arith.mulf %226, %2 : vector<32x128xf32>
    %228 = arith.addf %225, %227 : vector<32x128xf32>
    %c124_i32_70 = arith.constant 124 : i32
    %229 = tpu.dynamic_rotate %224 by %c124_i32_70 dim 1 : vector<32x128xf32>, i32 -> vector<32x128xf32>
    %230 = arith.mulf %229, %3 : vector<32x128xf32>
    %231 = arith.addf %228, %230 : vector<32x128xf32>
    %232 = vector.extract_strided_slice %220 {offsets = [0, 128], sizes = [32, 128], strides = [1, 1]} : vector<32x384xf32> to vector<32x128xf32>
    %c142 = arith.constant 142 : index
    %c0_71 = arith.constant 0 : index
    %233 = vector.load %arg4[%c142, %c0_71] : memref<160x128xf32, #tpu.memory_space<vmem>>, vector<1x128xf32>
    %234 = vector.broadcast %233 : vector<1x128xf32> to vector<32x128xf32>
    %235 = arith.addf %232, %234 : vector<32x128xf32>
    %236 = arith.mulf %235, %1 : vector<32x128xf32>
    %c4_i32_72 = arith.constant 4 : i32
    %237 = tpu.dynamic_rotate %235 by %c4_i32_72 dim 1 : vector<32x128xf32>, i32 -> vector<32x128xf32>
    %238 = arith.mulf %237, %2 : vector<32x128xf32>
    %239 = arith.addf %236, %238 : vector<32x128xf32>
    %c124_i32_73 = arith.constant 124 : i32
    %240 = tpu.dynamic_rotate %235 by %c124_i32_73 dim 1 : vector<32x128xf32>, i32 -> vector<32x128xf32>
    %241 = arith.mulf %240, %3 : vector<32x128xf32>
    %242 = arith.addf %239, %241 : vector<32x128xf32>
    %243 = arith.truncf %242 : vector<32x128xf32> to vector<32x128xbf16>
    %cst_74 = arith.constant 0.000000e+00 : f32
    %244 = vector.broadcast %cst_74 : f32 to vector<32x32xf32>
    %245 = vector.broadcast %5 : vector<1x128xf32> to vector<32x128xf32>
    %246 = arith.mulf %231, %245 : vector<32x128xf32>
    %247 = arith.truncf %246 : vector<32x128xf32> to vector<32x128xbf16>
    %cst_75 = arith.constant dense<0.000000e+00> : vector<32x32xf32>
    %248 = tpu.matmul %247, %243, %cst_75 {dimension_numbers = #tpu.dot_dimension_numbers<[1], [1], [0], [0], [0, 0, 1, 0], [], []>} : vector<32x128xbf16>, vector<32x128xbf16>, vector<32x32xf32> -> vector<32x32xf32>
    %249 = arith.addf %248, %4 : vector<32x32xf32>
    %cst_76 = arith.constant dense<0xFF800000> : vector<32xf32>
    %250 = vector.multi_reduction <maximumf>, %249, %cst_76 [1] : vector<32x32xf32> to vector<32xf32>
    %251 = vector.shape_cast %250 : vector<32xf32> to vector<32x1xf32>
    %252 = vector.broadcast %251 : vector<32x1xf32> to vector<32x32xf32>
    %253 = arith.subf %249, %252 : vector<32x32xf32>
    %254 = math.exp %253 : vector<32x32xf32>
    %cst_77 = arith.constant dense<0.000000e+00> : vector<32xf32>
    %255 = vector.multi_reduction <add>, %254, %cst_77 [1] : vector<32x32xf32> to vector<32xf32>
    %256 = vector.shape_cast %255 : vector<32xf32> to vector<32x1xf32>
    %257 = tpu.reciprocal %256 {approx = true} : vector<32x1xf32> -> vector<32x1xf32>
    %258 = vector.broadcast %257 : vector<32x1xf32> to vector<32x32xf32>
    %259 = arith.mulf %254, %258 : vector<32x32xf32>
    %260 = vector.extract_strided_slice %220 {offsets = [0, 256], sizes = [32, 32], strides = [1, 1]} : vector<32x384xf32> to vector<32x32xf32>
    %261 = arith.truncf %260 : vector<32x32xf32> to vector<32x32xbf16>
    %262 = arith.truncf %259 : vector<32x32xf32> to vector<32x32xbf16>
    %cst_78 = arith.constant dense<0.000000e+00> : vector<32x32xf32>
    %263 = tpu.matmul %262, %261, %cst_78 {dimension_numbers = #tpu.dot_dimension_numbers<[1], [0], [0], [1], [0, 0, 1, 1], [], []>} : vector<32x32xbf16>, vector<32x32xbf16>, vector<32x32xf32> -> vector<32x32xf32>
    %264 = arith.addf %244, %263 : vector<32x32xf32>
    %265 = vector.broadcast %6 : vector<1x128xf32> to vector<32x128xf32>
    %266 = arith.mulf %231, %265 : vector<32x128xf32>
    %267 = arith.truncf %266 : vector<32x128xf32> to vector<32x128xbf16>
    %cst_79 = arith.constant dense<0.000000e+00> : vector<32x32xf32>
    %268 = tpu.matmul %267, %243, %cst_79 {dimension_numbers = #tpu.dot_dimension_numbers<[1], [1], [0], [0], [0, 0, 1, 0], [], []>} : vector<32x128xbf16>, vector<32x128xbf16>, vector<32x32xf32> -> vector<32x32xf32>
    %269 = arith.addf %268, %4 : vector<32x32xf32>
    %cst_80 = arith.constant dense<0xFF800000> : vector<32xf32>
    %270 = vector.multi_reduction <maximumf>, %269, %cst_80 [1] : vector<32x32xf32> to vector<32xf32>
    %271 = vector.shape_cast %270 : vector<32xf32> to vector<32x1xf32>
    %272 = vector.broadcast %271 : vector<32x1xf32> to vector<32x32xf32>
    %273 = arith.subf %269, %272 : vector<32x32xf32>
    %274 = math.exp %273 : vector<32x32xf32>
    %cst_81 = arith.constant dense<0.000000e+00> : vector<32xf32>
    %275 = vector.multi_reduction <add>, %274, %cst_81 [1] : vector<32x32xf32> to vector<32xf32>
    %276 = vector.shape_cast %275 : vector<32xf32> to vector<32x1xf32>
    %277 = tpu.reciprocal %276 {approx = true} : vector<32x1xf32> -> vector<32x1xf32>
    %278 = vector.broadcast %277 : vector<32x1xf32> to vector<32x32xf32>
    %279 = arith.mulf %274, %278 : vector<32x32xf32>
    %280 = vector.extract_strided_slice %220 {offsets = [0, 288], sizes = [32, 32], strides = [1, 1]} : vector<32x384xf32> to vector<32x32xf32>
    %281 = arith.truncf %280 : vector<32x32xf32> to vector<32x32xbf16>
    %282 = arith.truncf %279 : vector<32x32xf32> to vector<32x32xbf16>
    %cst_82 = arith.constant dense<0.000000e+00> : vector<32x32xf32>
    %283 = tpu.matmul %282, %281, %cst_82 {dimension_numbers = #tpu.dot_dimension_numbers<[1], [0], [0], [1], [0, 0, 1, 1], [], []>} : vector<32x32xbf16>, vector<32x32xbf16>, vector<32x32xf32> -> vector<32x32xf32>
    %284 = arith.addf %264, %283 : vector<32x32xf32>
    %285 = vector.broadcast %7 : vector<1x128xf32> to vector<32x128xf32>
    %286 = arith.mulf %231, %285 : vector<32x128xf32>
    %287 = arith.truncf %286 : vector<32x128xf32> to vector<32x128xbf16>
    %cst_83 = arith.constant dense<0.000000e+00> : vector<32x32xf32>
    %288 = tpu.matmul %287, %243, %cst_83 {dimension_numbers = #tpu.dot_dimension_numbers<[1], [1], [0], [0], [0, 0, 1, 0], [], []>} : vector<32x128xbf16>, vector<32x128xbf16>, vector<32x32xf32> -> vector<32x32xf32>
    %289 = arith.addf %288, %4 : vector<32x32xf32>
    %cst_84 = arith.constant dense<0xFF800000> : vector<32xf32>
    %290 = vector.multi_reduction <maximumf>, %289, %cst_84 [1] : vector<32x32xf32> to vector<32xf32>
    %291 = vector.shape_cast %290 : vector<32xf32> to vector<32x1xf32>
    %292 = vector.broadcast %291 : vector<32x1xf32> to vector<32x32xf32>
    %293 = arith.subf %289, %292 : vector<32x32xf32>
    %294 = math.exp %293 : vector<32x32xf32>
    %cst_85 = arith.constant dense<0.000000e+00> : vector<32xf32>
    %295 = vector.multi_reduction <add>, %294, %cst_85 [1] : vector<32x32xf32> to vector<32xf32>
    %296 = vector.shape_cast %295 : vector<32xf32> to vector<32x1xf32>
    %297 = tpu.reciprocal %296 {approx = true} : vector<32x1xf32> -> vector<32x1xf32>
    %298 = vector.broadcast %297 : vector<32x1xf32> to vector<32x32xf32>
    %299 = arith.mulf %294, %298 : vector<32x32xf32>
    %300 = vector.extract_strided_slice %220 {offsets = [0, 320], sizes = [32, 32], strides = [1, 1]} : vector<32x384xf32> to vector<32x32xf32>
    %301 = arith.truncf %300 : vector<32x32xf32> to vector<32x32xbf16>
    %302 = arith.truncf %299 : vector<32x32xf32> to vector<32x32xbf16>
    %cst_86 = arith.constant dense<0.000000e+00> : vector<32x32xf32>
    %303 = tpu.matmul %302, %301, %cst_86 {dimension_numbers = #tpu.dot_dimension_numbers<[1], [0], [0], [1], [0, 0, 1, 1], [], []>} : vector<32x32xbf16>, vector<32x32xbf16>, vector<32x32xf32> -> vector<32x32xf32>
    %304 = arith.addf %284, %303 : vector<32x32xf32>
    %305 = vector.broadcast %8 : vector<1x128xf32> to vector<32x128xf32>
    %306 = arith.mulf %231, %305 : vector<32x128xf32>
    %307 = arith.truncf %306 : vector<32x128xf32> to vector<32x128xbf16>
    %cst_87 = arith.constant dense<0.000000e+00> : vector<32x32xf32>
    %308 = tpu.matmul %307, %243, %cst_87 {dimension_numbers = #tpu.dot_dimension_numbers<[1], [1], [0], [0], [0, 0, 1, 0], [], []>} : vector<32x128xbf16>, vector<32x128xbf16>, vector<32x32xf32> -> vector<32x32xf32>
    %309 = arith.addf %308, %4 : vector<32x32xf32>
    %cst_88 = arith.constant dense<0xFF800000> : vector<32xf32>
    %310 = vector.multi_reduction <maximumf>, %309, %cst_88 [1] : vector<32x32xf32> to vector<32xf32>
    %311 = vector.shape_cast %310 : vector<32xf32> to vector<32x1xf32>
    %312 = vector.broadcast %311 : vector<32x1xf32> to vector<32x32xf32>
    %313 = arith.subf %309, %312 : vector<32x32xf32>
    %314 = math.exp %313 : vector<32x32xf32>
    %cst_89 = arith.constant dense<0.000000e+00> : vector<32xf32>
    %315 = vector.multi_reduction <add>, %314, %cst_89 [1] : vector<32x32xf32> to vector<32xf32>
    %316 = vector.shape_cast %315 : vector<32xf32> to vector<32x1xf32>
    %317 = tpu.reciprocal %316 {approx = true} : vector<32x1xf32> -> vector<32x1xf32>
    %318 = vector.broadcast %317 : vector<32x1xf32> to vector<32x32xf32>
    %319 = arith.mulf %314, %318 : vector<32x32xf32>
    %320 = vector.extract_strided_slice %220 {offsets = [0, 352], sizes = [32, 32], strides = [1, 1]} : vector<32x384xf32> to vector<32x32xf32>
    %321 = arith.truncf %320 : vector<32x32xf32> to vector<32x32xbf16>
    %322 = arith.truncf %319 : vector<32x32xf32> to vector<32x32xbf16>
    %cst_90 = arith.constant dense<0.000000e+00> : vector<32x32xf32>
    %323 = tpu.matmul %322, %321, %cst_90 {dimension_numbers = #tpu.dot_dimension_numbers<[1], [0], [0], [1], [0, 0, 1, 1], [], []>} : vector<32x32xbf16>, vector<32x32xbf16>, vector<32x32xf32> -> vector<32x32xf32>
    %324 = arith.addf %304, %323 : vector<32x32xf32>
    %325 = arith.addf %193, %324 : vector<32x32xf32>
    %c147 = arith.constant 147 : index
    %c0_91 = arith.constant 0 : index
    %326 = vector.load %arg4[%c147, %c0_91] : memref<160x128xf32, #tpu.memory_space<vmem>>, vector<1x32xf32>
    %327 = vector.broadcast %326 : vector<1x32xf32> to vector<32x32xf32>
    %328 = arith.addf %325, %327 : vector<32x32xf32>
    %c145 = arith.constant 145 : index
    %c0_92 = arith.constant 0 : index
    %329 = vector.load %arg4[%c145, %c0_92] : memref<160x128xf32, #tpu.memory_space<vmem>>, vector<1x32xf32>
    %c146 = arith.constant 146 : index
    %c0_93 = arith.constant 0 : index
    %330 = vector.load %arg4[%c146, %c0_93] : memref<160x128xf32, #tpu.memory_space<vmem>>, vector<1x32xf32>
    %cst_94 = arith.constant dense<0.000000e+00> : vector<32xf32>
    %331 = vector.multi_reduction <add>, %328, %cst_94 [1] : vector<32x32xf32> to vector<32xf32>
    %332 = vector.shape_cast %331 : vector<32xf32> to vector<32x1xf32>
    %cst_95 = arith.constant 3.200000e+01 : f32
    %333 = vector.broadcast %cst_95 : f32 to vector<32x1xf32>
    %334 = arith.divf %332, %333 : vector<32x1xf32>
    %335 = vector.broadcast %334 : vector<32x1xf32> to vector<32x32xf32>
    %336 = arith.subf %328, %335 : vector<32x32xf32>
    %337 = arith.mulf %336, %336 : vector<32x32xf32>
    %cst_96 = arith.constant dense<0.000000e+00> : vector<32xf32>
    %338 = vector.multi_reduction <add>, %337, %cst_96 [1] : vector<32x32xf32> to vector<32xf32>
    %339 = vector.shape_cast %338 : vector<32xf32> to vector<32x1xf32>
    %cst_97 = arith.constant 3.200000e+01 : f32
    %340 = vector.broadcast %cst_97 : f32 to vector<32x1xf32>
    %341 = arith.divf %339, %340 : vector<32x1xf32>
    %342 = vector.broadcast %334 : vector<32x1xf32> to vector<32x32xf32>
    %343 = arith.subf %328, %342 : vector<32x32xf32>
    %cst_98 = arith.constant 9.99999974E-6 : f32
    %344 = vector.broadcast %cst_98 : f32 to vector<32x1xf32>
    %345 = arith.addf %341, %344 : vector<32x1xf32>
    %346 = math.rsqrt %345 : vector<32x1xf32>
    %347 = vector.broadcast %346 : vector<32x1xf32> to vector<32x32xf32>
    %348 = arith.mulf %343, %347 : vector<32x32xf32>
    %349 = vector.broadcast %329 : vector<1x32xf32> to vector<32x32xf32>
    %350 = arith.mulf %348, %349 : vector<32x32xf32>
    %351 = vector.broadcast %330 : vector<1x32xf32> to vector<32x32xf32>
    %352 = arith.addf %350, %351 : vector<32x32xf32>
    %353 = arith.truncf %352 : vector<32x32xf32> to vector<32x32xbf16>
    %c0_99 = arith.constant 0 : index
    %c896 = arith.constant 896 : index
    %354 = vector.load %arg2[%c0_99, %c896] : memref<32x1152xbf16, #tpu.memory_space<vmem>>, vector<32x128xbf16>
    %cst_100 = arith.constant dense<0.000000e+00> : vector<32x128xf32>
    %355 = tpu.matmul %353, %354, %cst_100 {dimension_numbers = #tpu.dot_dimension_numbers<[1], [0], [0], [1], [0, 0, 1, 1], [], []>} : vector<32x32xbf16>, vector<32x128xbf16>, vector<32x128xf32> -> vector<32x128xf32>
    %c148 = arith.constant 148 : index
    %c0_101 = arith.constant 0 : index
    %356 = vector.load %arg4[%c148, %c0_101] : memref<160x128xf32, #tpu.memory_space<vmem>>, vector<1x128xf32>
    %357 = vector.broadcast %356 : vector<1x128xf32> to vector<32x128xf32>
    %358 = arith.addf %355, %357 : vector<32x128xf32>
    %359 = arith.mulf %358, %358 : vector<32x128xf32>
    %360 = arith.mulf %358, %359 : vector<32x128xf32>
    %cst_102 = arith.constant 4.471500e-02 : f32
    %361 = vector.broadcast %cst_102 : f32 to vector<32x128xf32>
    %362 = arith.mulf %361, %360 : vector<32x128xf32>
    %363 = arith.addf %358, %362 : vector<32x128xf32>
    %cst_103 = arith.constant 0.797884583 : f32
    %364 = vector.broadcast %cst_103 : f32 to vector<32x128xf32>
    %365 = arith.mulf %364, %363 : vector<32x128xf32>
    %366 = math.tanh %365 : vector<32x128xf32>
    %cst_104 = arith.constant 1.000000e+00 : f32
    %367 = vector.broadcast %cst_104 : f32 to vector<32x128xf32>
    %368 = arith.addf %367, %366 : vector<32x128xf32>
    %cst_105 = arith.constant 5.000000e-01 : f32
    %369 = vector.broadcast %cst_105 : f32 to vector<32x128xf32>
    %370 = arith.mulf %369, %368 : vector<32x128xf32>
    %371 = arith.mulf %358, %370 : vector<32x128xf32>
    %372 = arith.truncf %371 : vector<32x128xf32> to vector<32x128xbf16>
    %c128_106 = arith.constant 128 : index
    %c0_107 = arith.constant 0 : index
    %373 = vector.load %arg3[%c128_106, %c0_107] : memref<256x32xbf16, #tpu.memory_space<vmem>>, vector<128x32xbf16>
    %cst_108 = arith.constant dense<0.000000e+00> : vector<32x32xf32>
    %374 = tpu.matmul %372, %373, %cst_108 {dimension_numbers = #tpu.dot_dimension_numbers<[1], [0], [0], [1], [0, 0, 1, 1], [], []>} : vector<32x128xbf16>, vector<128x32xbf16>, vector<32x32xf32> -> vector<32x32xf32>
    %c149 = arith.constant 149 : index
    %c0_109 = arith.constant 0 : index
    %375 = vector.load %arg4[%c149, %c0_109] : memref<160x128xf32, #tpu.memory_space<vmem>>, vector<1x32xf32>
    %376 = vector.broadcast %375 : vector<1x32xf32> to vector<32x32xf32>
    %377 = arith.addf %374, %376 : vector<32x32xf32>
    %378 = arith.addf %328, %377 : vector<32x32xf32>
    %c150 = arith.constant 150 : index
    %c0_110 = arith.constant 0 : index
    %379 = vector.load %arg4[%c150, %c0_110] : memref<160x128xf32, #tpu.memory_space<vmem>>, vector<1x32xf32>
    %c151 = arith.constant 151 : index
    %c0_111 = arith.constant 0 : index
    %380 = vector.load %arg4[%c151, %c0_111] : memref<160x128xf32, #tpu.memory_space<vmem>>, vector<1x32xf32>
    %cst_112 = arith.constant dense<0.000000e+00> : vector<32xf32>
    %381 = vector.multi_reduction <add>, %378, %cst_112 [1] : vector<32x32xf32> to vector<32xf32>
    %382 = vector.shape_cast %381 : vector<32xf32> to vector<32x1xf32>
    %cst_113 = arith.constant 3.200000e+01 : f32
    %383 = vector.broadcast %cst_113 : f32 to vector<32x1xf32>
    %384 = arith.divf %382, %383 : vector<32x1xf32>
    %385 = vector.broadcast %384 : vector<32x1xf32> to vector<32x32xf32>
    %386 = arith.subf %378, %385 : vector<32x32xf32>
    %387 = arith.mulf %386, %386 : vector<32x32xf32>
    %cst_114 = arith.constant dense<0.000000e+00> : vector<32xf32>
    %388 = vector.multi_reduction <add>, %387, %cst_114 [1] : vector<32x32xf32> to vector<32xf32>
    %389 = vector.shape_cast %388 : vector<32xf32> to vector<32x1xf32>
    %cst_115 = arith.constant 3.200000e+01 : f32
    %390 = vector.broadcast %cst_115 : f32 to vector<32x1xf32>
    %391 = arith.divf %389, %390 : vector<32x1xf32>
    %392 = vector.broadcast %384 : vector<32x1xf32> to vector<32x32xf32>
    %393 = arith.subf %378, %392 : vector<32x32xf32>
    %cst_116 = arith.constant 9.99999974E-6 : f32
    %394 = vector.broadcast %cst_116 : f32 to vector<32x1xf32>
    %395 = arith.addf %391, %394 : vector<32x1xf32>
    %396 = math.rsqrt %395 : vector<32x1xf32>
    %397 = vector.broadcast %396 : vector<32x1xf32> to vector<32x32xf32>
    %398 = arith.mulf %393, %397 : vector<32x32xf32>
    %399 = vector.broadcast %379 : vector<1x32xf32> to vector<32x32xf32>
    %400 = arith.mulf %398, %399 : vector<32x32xf32>
    %401 = vector.broadcast %380 : vector<1x32xf32> to vector<32x32xf32>
    %402 = arith.addf %400, %401 : vector<32x32xf32>
    %403 = arith.truncf %402 : vector<32x32xf32> to vector<32x32xbf16>
    %c0_117 = arith.constant 0 : index
    %c1024 = arith.constant 1024 : index
    %404 = vector.load %arg2[%c0_117, %c1024] : memref<32x1152xbf16, #tpu.memory_space<vmem>>, vector<32x128xbf16>
    %cst_118 = arith.constant dense<0.000000e+00> : vector<32x128xf32>
    %405 = tpu.matmul %403, %404, %cst_118 {dimension_numbers = #tpu.dot_dimension_numbers<[1], [0], [0], [1], [0, 0, 1, 1], [], []>} : vector<32x32xbf16>, vector<32x128xbf16>, vector<32x128xf32> -> vector<32x128xf32>
    %c152 = arith.constant 152 : index
    %c0_119 = arith.constant 0 : index
    %406 = vector.load %arg4[%c152, %c0_119] : memref<160x128xf32, #tpu.memory_space<vmem>>, vector<1x128xf32>
    %407 = vector.broadcast %406 : vector<1x128xf32> to vector<32x128xf32>
    %408 = arith.addf %405, %407 : vector<32x128xf32>
    %c0_120 = arith.constant 0 : index
    %c0_121 = arith.constant 0 : index
    %409 = vector.load %arg5[%c0_120, %c0_121] : memref<32x128xf32, #tpu.memory_space<vmem>>, vector<32x128xf32>
    tpu.vector_store %arg5[%c0_120, %c0_121], %408 {strides = array<i32>} : memref<32x128xf32, #tpu.memory_space<vmem>>, vector<32x128xf32>,
    return
  }
  func.func @transform_0(%arg0: i32) -> (i32, i32) {
    %c0_i32 = arith.constant 0 : i32
    %c0_i32_0 = arith.constant 0 : i32
    return %arg0, %c0_i32 : i32, i32
  }
  func.func @transform_1(%arg0: i32) -> (i32, i32) {
    %c0_i32 = arith.constant 0 : i32
    %c0_i32_0 = arith.constant 0 : i32
    %c0_i32_1 = arith.constant 0 : i32
    return %c0_i32, %c0_i32_0 : i32, i32
  }
  func.func @transform_2(%arg0: i32) -> (i32, i32) {
    %c0_i32 = arith.constant 0 : i32
    %c0_i32_0 = arith.constant 0 : i32
    %c0_i32_1 = arith.constant 0 : i32
    return %c0_i32, %c0_i32_0 : i32, i32
  }
  func.func @transform_3(%arg0: i32) -> (i32, i32) {
    %c0_i32 = arith.constant 0 : i32
    %c0_i32_0 = arith.constant 0 : i32
    %c0_i32_1 = arith.constant 0 : i32
    return %c0_i32, %c0_i32_0 : i32, i32
  }
  func.func @transform_4(%arg0: i32) -> (i32, i32) {
    %c0_i32 = arith.constant 0 : i32
    %c0_i32_0 = arith.constant 0 : i32
    return %arg0, %c0_i32 : i32, i32
  }
}

</mosaic_0001>

<bundles_post_ra>
// kernel: tpu_custom_call.1
= control target key start
LH: loop header
LB: loop body
LE: loop exit
PB: predicated region body
PF: predicated region fallthrough
CT: control target
= control target key end

     0   :  { %9 = vsyncpa [#allocation3], 0  ;;  %s4378_s0 = inlined_call_operand.hbm [shape: f32[32,32], index: 0, kind: input, shape index: {}]   ;;  %s4379_s1 = inlined_call_operand.hbm [shape: bf16[32,1152], index: 1, kind: input, shape index: {}]   ;;  %s4380_s2 = inlined_call_operand.vmem [shape: bf16[256,32], index: 2, kind: input, shape index: {}]   ;;  %s4381_s3 = inlined_call_operand.vmem [shape: f32[160,128], index: 3, kind: input, shape index: {}]   ;;  %s4382_s4 = inlined_call_operand.hbm [shape: f32[32,128], index: 4, kind: output, shape index: {}]  }
   0x1   :  { %10 = vsyncpa [#allocation6], 0 }
   0x2   :  { %11 = vsyncpa [#allocation4], 0  ;;  %s3559_s15 = smov [#allocation2]  }
   0x3   :  { %s17_s16 = sshll.u32 %s3559_s15, 4  ;;  %s18_s16 = int_to_ptr.vmem [resolvable:$true] %s17_s16 }
   0x4   :  { %s3501_s17 = scalar_lea.vmem %s18_s16, 512  ;;  %p3506_p1 = scmp.lt.s32.totalorder %s18_s16, %s18_s16 }
   0x5   :  { %p3502_p0 = scmp.ne.s32.totalorder %s18_s16, %s3501_s17  ;;  %p3507_p2 = scmp.lt.s32.totalorder %s3501_s17, %s3501_s17 }
   0x7   :  { %p3508_p3 = por %p3507_p2, %p3506_p1 }
   0x9   :  { %p3509_p4 = pnand %p3508_p3, %p3502_p0 }
   0xb   :  { %3512 = shalt.err (!%p3509_p4)
}
   0xc   :  { %s3560_s18 = smov 128   ;;  %s3561_s19 = smov 8  }
   0xd   :  { %23 = dma.hbm_to_vmem [thread:$0]  %s4378_s0, 512, %s18_s16, [#allocation3], %s3560_s18, %s3560_s18, %s3561_s19  }
   0xe   :  { %s3562_s22 = smov [#allocation5]  }
   0xf   :  { %s29_s23 = sshll.u32 %s3562_s22, 4  ;;  %s30_s23 = int_to_ptr.vmem [resolvable:$true] %s29_s23 }
  0x10   :  { %s3521_s24 = scalar_lea.vmem %s30_s23, 2304  ;;  %p3526_p6 = scmp.lt.s32.totalorder %s30_s23, %s30_s23 }
  0x11   :  { %p3522_p5 = scmp.ne.s32.totalorder %s30_s23, %s3521_s24  ;;  %p3527_p7 = scmp.lt.s32.totalorder %s3521_s24, %s3521_s24 }
  0x13   :  { %p3528_p8 = por %p3527_p7, %p3526_p6 }
  0x15   :  { %p3529_p9 = pnand %p3528_p8, %p3522_p5 }
  0x17   :  { %3532 = shalt.err (!%p3529_p9)
}
  0x18   :  { %s3563_s25 = smov 576   ;;  %s3564_s26 = smov 36  }
  0x19   :  { %35 = dma.hbm_to_vmem [thread:$0]  %s4379_s1, 2304, %s30_s23, [#allocation6], %s3563_s25, %s3563_s25, %s3564_s26  }
  0x1a   :  { %3553 = dma.done.wait [#allocation3], 512  }
  0x1b   :  { %3554 = vsyncadd [#allocation3], 4294966784 }
  0x1c   :  { %3555 = dma.done.wait [#allocation6], 2304  }
  0x1d   :  { %3556 = vsyncadd [#allocation6], 4294964992  ;;  %vm73_vm0 = vcmask 261120   ;;  %v47_v0 = vld [vmem:[#allocation2] sm:$0xff]  ;;  %v49_v1 = vld [vmem:[#allocation2 + $0x10] sm:$0xff]  ;;  %v3565_v32 = vmov 0  }
  0x1e   :  { %v48_v2 = vld [vmem:[#allocation2 + $0x8] sm:$0xff]  ;;  %v74_v3 = vsel %vm73_vm0, %v47_v0, 0.0  ;;  %v80_v4 = vsel %vm73_vm0, %v49_v1, 0.0  ;;  %v50_v5 = vld [vmem:[#allocation2 + $0x18] sm:$0xff]  ;;  %v3252_v31 = vld [vmem:[#allocation5 + $0x50] ss:$36 sps:$4 sm:$0xff]   ;;  %223 = vmatprep.mubr.bf16.mxu0 %v3565_v32 }
  0x1f   :  { %75 = vadd.xlane.f32.xlu0 %v74_v3  ;;  %81 = vadd.xlane.f32.xlu1 %v80_v4  ;;  %v77_v6 = vsel %vm73_vm0, %v48_v2, 0.0  ;;  %v83_v7 = vsel %vm73_vm0, %v50_v5, 0.0  ;;  %v3247_v28 = vld [vmem:[#allocation5 + $0x4c] ss:$36 sps:$4 sm:$0xff]   ;;  %v3250_v30 = vld [vmem:[#allocation5 + $0x4] ss:$36 sps:$4 sm:$0xff]  }
  0x20   :  { %v3249_v29 = vld [vmem:[#allocation5 + $0x48] ss:$36 sps:$4 sm:$0xff]   ;;  %203 = vmatprep.subr.bf16.mxu0 %v3247_v28  ;;  %3026 = vmatprep.subr.bf16.mxu1 %v3252_v31  ;;  %v3253_v33 = vld [vmem:[#allocation5] ss:$36 sps:$4 sm:$0xff]   ;;  %s3566_s7 = smov 4   ;;  %s3567_s8 = smov 124  }
  0x21   :  { %204 = vmatpush1.bf16.msra.mxu0 %v3249_v29  ;;  %3027 = vmatpush3.bf16.msra.mxu1 %v3252_v31  ;;  %v3254_v34 = vld [vmem:[#allocation5 + $0x8] ss:$36 sps:$4 sm:$0xff]   ;;  %v2833_v49 = vld [vmem:[%s4381_s3 + $0x86] ss:$0 sm:$0xff]  ;;  %v2834_v54 = vld [vmem:[%s4381_s3 + $0x87] ss:$0 sm:$0xff] }
  0x22   :  { %205 = vmatprep.subr.bf16.mxu0 %v3250_v30  ;;  %3028 = vmatprep.subr.bf16.mxu1 %v3254_v34  ;;  %v2846_v4 = vld [vmem:[%s4381_s3 + $0x85] ss:$0 sm:$0xff]  ;;  %s3568_s0 = smov 96   ;;  %s3569_s1 = smov 64  }
  0x23   :  { %78 = vadd.xlane.f32.xlu0 %v77_v6  ;;  %84 = vadd.xlane.f32.xlu1 %v83_v7  ;;  %v59_v29 = vld [vmem:[%s4381_s3 + $0x40] sm:$0xff]  ;;  %s3570_s29 = smov 32   ;;  %s3571_s15 = smov [#allocation7]  }
  0x24   :  { %s2820_s16 = sshll.u32 %s3571_s15, 4  ;;  %s2821_s16 = int_to_ptr.vmem [resolvable:$true] %s2820_s16 }
  0x25   :  { %206 = vmatpush1.bf16.msra.mxu0 %v3253_v33  ;;  %3029 = vmatpush3.bf16.msra.mxu1 %v3254_v34  ;;  %v51_v34 = vld [vmem:[%s4381_s3] sm:$0xff]  ;;  %s3533_s17 = scalar_lea.vmem %s2821_s16, 512  ;;  %p3538_p11 = scmp.lt.s32.totalorder %s2821_s16, %s2821_s16 }
  0x26   :  { %p3534_p10 = scmp.ne.s32.totalorder %s2821_s16, %s3533_s17  ;;  %p3539_p12 = scmp.lt.s32.totalorder %s3533_s17, %s3533_s17 }
  0x28   :  { %p3540_p13 = por %p3539_p12, %p3538_p11 }
  0x2a   :  { %p3541_p0 = pnand %p3540_p13, %p3534_p10 }
  0xa8   :  { %v76_v8 = vpop.xlane.xlu0 %75  ;;  %v82_v9 = vpop.xlane.xlu1 %81 }
  0xa9   :  { %v87_v10 = vmul.f32 0.03125, %v76_v8  ;;  %v89_v11 = vmul.f32 0.03125, %v82_v9 }
  0xab   :  { %v91_v12 = vsub.f32 %v47_v0, %v87_v10  ;;  %v93_v13 = vsub.f32 %v49_v1, %v89_v11 }
  0xac   :  { %v79_v14 = vpop.xlane.xlu0 %78  ;;  %v85_v15 = vpop.xlane.xlu1 %84 }
  0xad   :  { %v88_v16 = vmul.f32 0.03125, %v79_v14  ;;  %v90_v17 = vmul.f32 0.03125, %v85_v15  ;;  %v95_v18 = vmul.f32 %v91_v12, %v91_v12  ;;  %v97_v19 = vmul.f32 %v93_v13, %v93_v13 }
  0xaf   :  { %v92_v20 = vsub.f32 %v48_v2, %v88_v16  ;;  %v94_v21 = vsub.f32 %v50_v5, %v90_v17  ;;  %v99_v22 = vsel %vm73_vm0, %v95_v18, 0.0  ;;  %v105_v23 = vsel %vm73_vm0, %v97_v19, 0.0  ;;  %v2845_v17 = vld [vmem:[%s4381_s3 + $0x84] ss:$0 sm:$0xff] }
  0xb0   :  { %100 = vadd.xlane.f32.xlu0 %v99_v22 }
  0xb1   :  { %v96_v24 = vmul.f32 %v92_v20, %v92_v20  ;;  %v98_v25 = vmul.f32 %v94_v21, %v94_v21 }
  0xb3   :  { %v102_v26 = vsel %vm73_vm0, %v96_v24, 0.0  ;;  %v108_v27 = vsel %vm73_vm0, %v98_v25, 0.0 }
  0xb4   :  { %106 = vadd.xlane.f32.xlu0 %v105_v23  ;;  %103 = vadd.xlane.f32.xlu1 %v102_v26  ;;  %v55_v26 = vld [vmem:[%s4381_s3 + $0x20] sm:$0xff] }
  0xb8   :  { %109 = vadd.xlane.f32.xlu1 %v108_v27  ;;  %v56_v27 = vld [vmem:[%s4381_s3 + $0x28] sm:$0xff] }
 0x139   :  { %v101_v35 = vpop.xlane.xlu0 %100 }
 0x13a   :  { %v111_v36 = vmul.f32 0.03125, %v101_v35  ;;  %v52_v35 = vld [vmem:[%s4381_s3 + $0x8] sm:$0xff] }
 0x13c   :  { %v115_v37 = vadd.f32 1e-05, %v111_v36  ;;  %v60_v36 = vld [vmem:[%s4381_s3 + $0x48] sm:$0xff] }
 0x13d   :  { %v104_v38 = vpop.xlane.xlu1 %103  ;;  %v107_v39 = vpop.xlane.xlu0 %106 }
 0x13e   :  { %3285 = vrsqrt.f32 %v115_v37  ;;  %v112_v40 = vmul.f32 0.03125, %v104_v38  ;;  %v113_v41 = vmul.f32 0.03125, %v107_v39 }
 0x140   :  { %v116_v42 = vadd.f32 1e-05, %v112_v40  ;;  %v117_v43 = vadd.f32 1e-05, %v113_v41 }
 0x141   :  { %v110_v44 = vpop.xlane.xlu1 %109 }
 0x142   :  { %3287 = vrsqrt.f32 %v116_v42  ;;  %v114_v45 = vmul.f32 0.03125, %v110_v44 }
 0x143   :  { %3289 = vrsqrt.f32 %v117_v43 }
 0x144   :  { %v118_v46 = vadd.f32 1e-05, %v114_v45 }
 0x146   :  { %3291 = vrsqrt.f32 %v118_v46 }
 0x14b   :  { %v3286_v47 = vpop.eup %3285 }
 0x14c   :  { %v123_v48 = vmul.f32 %v3286_v47, %v91_v12 }
 0x14e   :  { %v131_v53 = vmul.f32 %v2833_v49, %v123_v48 }
 0x14f   :  { %v3288_v50 = vpop.eup %3287 }
 0x150   :  { %v3290_v51 = vpop.eup %3289  ;;  %v124_v52 = vmul.f32 %v3288_v50, %v92_v20  ;;  %v139_v58 = vadd.f32 %v2834_v54, %v131_v53  ;;  %v57_v50 = vld [vmem:[%s4381_s3 + $0x30] sm:$0xff] }
 0x151   :  { %v125_v55 = vmul.f32 %v3290_v51, %v93_v13  ;;  %v58_v51 = vld [vmem:[%s4381_s3 + $0x38] sm:$0xff] }
 0x152   :  { %v132_v56 = vmul.f32 %v2833_v49, %v124_v52  ;;  %v61_v52 = vld [vmem:[%s4381_s3 + $0x50] sm:$0xff] }
 0x153   :  { %v3292_v57 = vpop.eup %3291  ;;  %v133_v61 = vmul.f32 %v2833_v49, %v125_v55 }
 0x154   :  { %v140_v59 = vadd.f32 %v2834_v54, %v132_v56  ;;  %v126_v60 = vmul.f32 %v3292_v57, %v94_v21  ;;  %v53_v57 = vld [vmem:[%s4381_s3 + $0x10] sm:$0xff] }
 0x155   :  { %v141_v0 = vadd.f32 %v2834_v54, %v133_v61 }
 0x156   :  { %v143_v62 = vpack.c.bf16 %v140_v59, %v139_v58  ;;  %v134_v63 = vmul.f32 %v2833_v49, %v126_v60  ;;  %v54_v58 = vld [vmem:[%s4381_s3 + $0x18] sm:$0xff] }
 0x157   :  { %v62_v59 = vld [vmem:[%s4381_s3 + $0x58] sm:$0xff] }
 0x158   :  { %2841 = vmatmul.mubr.msk.bf16.vlgmr.msra.gmra.mxu0 %vm73_vm0, %v143_v62  ;;  %3030 = vmatprep.mubr.msk.bf16.mxu1 %vm73_vm0, %v143_v62  ;;  %v142_v1 = vadd.f32 %v2834_v54, %v134_v63 }
 0x159   :  { %233 = vmatprep.mubr.bf16.mxu0 %v3565_v32 }
 0x15a   :  { %v144_v2 = vpack.c.bf16 %v142_v1, %v141_v0 }
 0x15c   :  { %3031 = vmatmul.mubr.msk.bf16.vlgmr.msra.gmra.mxu1 %vm73_vm0, %v144_v2 }
 0x160   :  { %2842 = vmatmul.mubr.msk.bf16.gmra.mxu0 %vm73_vm0, %v144_v2 }
 0x218   :  { %v225_v3 = vpop.f32.mrf.mxu0 }
 0x219   :  { %v3641_v19 = vadd.f32 %v2845_v17, %v225_v3 }
 0x21a   :  { %v227_v5 = vpop.f32.mrf.mxu0 }
 0x21b   :  { %v343_v6 = vadd.f32 %v2846_v4, %v227_v5 }
 0x21c   :  { %v229_v7 = vpop.f32.mrf.mxu0  ;;  %v3032_v8 = vpop.f32.mrf.mxu1 }
 0x21d   :  { %351 = vrot.lane.b32.xlu0 %v343_v6, %s3566_s7  ;;  %v3654_v23 = vadd.f32 %v2845_v17, %v229_v7  ;;  %v347_v37 = vmul.f32 %v343_v6, %v51_v34 }
 0x21e   :  { %v231_v9 = vpop.f32.mrf.mxu0  ;;  %v3630_v10 = vpop.f32.mrf.mxu1 }
 0x21f   :  { %v344_v11 = vadd.f32 %v2846_v4, %v231_v9  ;;  %v302_v9 = vmul.f32 %v3641_v19, %v51_v34 }
 0x220   :  { %v235_v12 = vpop.f32.mrf.mxu0  ;;  %v3033_v13 = vpop.f32.mrf.mxu1 }
 0x221   :  { %v3632_v14 = vpack.c.bf16 %v3033_v13, %v3032_v8  ;;  %367 = vrot.lane.b32.xlu0 %v343_v6, %s3567_s8  ;;  %353 = vrot.lane.b32.xlu1 %v344_v11, %s3566_s7  ;;  %v3646_v21 = vadd.f32 %v2845_v17, %v235_v12  ;;  %v348_v38 = vmul.f32 %v344_v11, %v52_v35 }
 0x222   :  { %v237_v15 = vpop.f32.mrf.mxu0 }
 0x223   :  { %v345_v16 = vadd.f32 %v2846_v4, %v237_v15 }
 0x224   :  { %v239_v18 = vpop.f32.mrf.mxu0 }
 0x225   :  { %369 = vrot.lane.b32.xlu1 %v344_v11, %s3567_s8  ;;  %355 = vrot.lane.b32.xlu0 %v345_v16, %s3566_s7  ;;  %v3660_v24 = vadd.f32 %v2845_v17, %v239_v18  ;;  %v349_v60 = vmul.f32 %v345_v16, %v53_v57  ;;  %v303_v18 = vmul.f32 %v3654_v23, %v52_v35 }
 0x226   :  { %v241_v20 = vpop.f32.mrf.mxu0 }
 0x227   :  { %v346_v22 = vadd.f32 %v2846_v4, %v241_v20  ;;  %v304_v20 = vmul.f32 %v3646_v21, %v53_v57 }
 0x229   :  { %371 = vrot.lane.b32.xlu1 %v345_v16, %s3567_s8  ;;  %306 = vrot.lane.b32.xlu0 %v3641_v19, %s3566_s7  ;;  %v350_v61 = vmul.f32 %v346_v22, %v54_v58 }
 0x22d   :  { %310 = vrot.lane.b32.xlu0 %v3646_v21, %s3566_s7  ;;  %357 = vrot.lane.b32.xlu1 %v346_v22, %s3566_s7 }
 0x231   :  { %322 = vrot.lane.b32.xlu0 %v3641_v19, %s3567_s8  ;;  %373 = vrot.lane.b32.xlu1 %v346_v22, %s3567_s8  ;;  %v2847_v22 = vld [vmem:[%s4381_s3 + $0x80] ss:$0 sm:$0xff] }
 0x235   :  { %326 = vrot.lane.b32.xlu0 %v3646_v21, %s3567_s8  ;;  %308 = vrot.lane.b32.xlu1 %v3654_v23, %s3566_s7 }
 0x239   :  { %312 = vrot.lane.b32.xlu1 %v3660_v24, %s3566_s7 }
 0x23d   :  { %324 = vrot.lane.b32.xlu1 %v3654_v23, %s3567_s8  ;;  %v2853_v23 = vld [vmem:[%s4381_s3 + $0x82] ss:$0 sm:$0xff] }
 0x241   :  { %328 = vrot.lane.b32.xlu1 %v3660_v24, %s3567_s8 }
 0x28f   :  { %v352_v25 = vpop.permute.xlu0 %351 }
 0x290   :  { %v359_v31 = vmul.f32 %v352_v25, %v55_v26 }
 0x292   :  { %v363_v42 = vadd.f32 %v359_v31, %v347_v37  ;;  %v305_v31 = vmul.f32 %v3660_v24, %v54_v58  ;;  %v2856_v37 = vld [vmem:[%s4381_s3 + $0x83] ss:$0 sm:$0xff] }
 0x293   :  { %v354_v28 = vpop.permute.xlu1 %353  ;;  %v368_v30 = vpop.permute.xlu0 %367 }
 0x294   :  { %v360_v33 = vmul.f32 %v354_v28, %v56_v27  ;;  %v375_v39 = vmul.f32 %v368_v30, %v59_v29 }
 0x296   :  { %v364_v43 = vadd.f32 %v360_v33, %v348_v38  ;;  %v379_v45 = vadd.f32 %v375_v39, %v363_v42 }
 0x297   :  { %v370_v40 = vpop.permute.xlu1 %369  ;;  %v356_v41 = vpop.permute.xlu0 %355 }
 0x298   :  { %v376_v44 = vmul.f32 %v370_v40, %v60_v36  ;;  %v361_v54 = vmul.f32 %v356_v41, %v57_v50 }
 0x29a   :  { %v380_v46 = vadd.f32 %v376_v44, %v364_v43  ;;  %v365_v0 = vadd.f32 %v361_v54, %v349_v60 }
 0x29b   :  { %v372_v47 = vpop.permute.xlu1 %371  ;;  %v307_v48 = vpop.permute.xlu0 %306 }
 0x29c   :  { %v3686_v49 = vpack.c.bf16 %v380_v46, %v379_v45  ;;  %v377_v62 = vmul.f32 %v372_v47, %v61_v52  ;;  %v314_v7 = vmul.f32 %v307_v48, %v55_v26 }
 0x29e   :  { %v381_v3 = vadd.f32 %v377_v62, %v365_v0  ;;  %v318_v13 = vadd.f32 %v314_v7, %v302_v9  ;;  %v3756_v0 = vpop.f32.mrf.mxu1 }
 0x29f   :  { %v358_v53 = vpop.permute.xlu1 %357  ;;  %v311_v56 = vpop.permute.xlu0 %310 }
 0x2a0   :  { %v362_v55 = vmul.f32 %v358_v53, %v58_v51  ;;  %v316_v17 = vmul.f32 %v311_v56, %v57_v50 }
 0x2a2   :  { %v366_v1 = vadd.f32 %v362_v55, %v350_v61  ;;  %v320_v21 = vadd.f32 %v316_v17, %v304_v20 }
 0x2a3   :  { %v374_v63 = vpop.permute.xlu1 %373  ;;  %v323_v5 = vpop.permute.xlu0 %322 }
 0x2a4   :  { %v378_v2 = vmul.f32 %v374_v63, %v62_v59  ;;  %v330_v11 = vmul.f32 %v323_v5, %v59_v29 }
 0x2a6   :  { %v382_v4 = vadd.f32 %v378_v2, %v366_v1  ;;  %v334_v19 = vadd.f32 %v330_v11, %v318_v13 }
 0x2a7   :  { %v309_v6 = vpop.permute.xlu1 %308  ;;  %v327_v16 = vpop.permute.xlu0 %326 }
 0x2a8   :  { %v3706_v8 = vpack.c.bf16 %v382_v4, %v381_v3  ;;  %v315_v15 = vmul.f32 %v309_v6, %v56_v27  ;;  %v332_v25 = vmul.f32 %v327_v16, %v61_v52  ;;  %v2848_v27 = vld [vmem:[%s4381_s3 + $0x81] ss:$0 sm:$0xff]  ;;  %v389_v34 = vmul.f32 %v2847_v22, %v334_v19  ;;  %v3766_v4 = vld [vmem:[%s4381_s3 + $0x70] sm:$0xff]  ;;  %v3779_v16 = vld [vmem:[%s4381_s3 + $0x78] sm:$0xff] }
 0x2a9   :  { %v496_v35 = vmul.f32 %v2848_v27, %v334_v19  ;;  %v3736_v44 = vmul.f32 %v2856_v37, %v334_v19  ;;  %v3761_v3 = vld [vmem:[%s4381_s3 + $0x60] sm:$0xff] }
 0x2aa   :  { %3034 = vmatprep.subr.bf16.mxu0 %v3706_v8  ;;  %3042 = vmatprep.subr.bf16.mxu1 %v3706_v8  ;;  %v319_v29 = vadd.f32 %v315_v15, %v303_v18  ;;  %v336_v38 = vadd.f32 %v332_v25, %v320_v21 }
 0x2ab   :  { %v313_v12 = vpop.permute.xlu1 %312  ;;  %3035 = vmatpush3.bf16.xpose.msra.mxu0 %v3706_v8  ;;  %3043 = vmatpush3.bf16.xpose.msra.mxu1 %v3706_v8 }
 0x2ac   :  { %3036 = vmatprep.subr.bf16.mxu0 %v3686_v49  ;;  %3044 = vmatprep.subr.bf16.mxu1 %v3686_v49  ;;  %v317_v26 = vmul.f32 %v313_v12, %v58_v51  ;;  %v391_v51 = vmul.f32 %v2847_v22, %v336_v38  ;;  %v498_v52 = vmul.f32 %v2848_v27, %v336_v38  ;;  %v3772_v12 = vld [vmem:[%s4381_s3 + $0x68] sm:$0xff] }
 0x2ad   :  { %v3742_v53 = vmul.f32 %v2853_v23, %v336_v38  ;;  %v3748_v58 = vmul.f32 %v2856_v37, %v336_v38 }
 0x2ae   :  { %v321_v39 = vadd.f32 %v317_v26, %v305_v31 }
 0x2af   :  { %v325_v28 = vpop.permute.xlu1 %324 }
 0x2b0   :  { %v331_v30 = vmul.f32 %v325_v28, %v60_v36  ;;  %v3732_v36 = vmul.f32 %v2853_v23, %v334_v19 }
 0x2b2   :  { %v335_v33 = vadd.f32 %v331_v30, %v319_v29 }
 0x2b3   :  { %v329_v40 = vpop.permute.xlu1 %328  ;;  %3037 = vmatpush3.bf16.xpose.msra.mxu0 %v3686_v49  ;;  %3045 = vmatpush3.bf16.xpose.msra.mxu1 %v3686_v49 }
 0x2b4   :  { %v333_v41 = vmul.f32 %v329_v40, %v62_v59  ;;  %v390_v42 = vmul.f32 %v2847_v22, %v335_v33  ;;  %v497_v24 = vmul.f32 %v2848_v27, %v335_v33  ;;  %v3734_v43 = vmul.f32 %v2853_v23, %v335_v33 }
 0x2b5   :  { %v3738_v45 = vmul.f32 %v2856_v37, %v335_v33 }
 0x2b6   :  { %v337_v46 = vadd.f32 %v333_v41, %v321_v39  ;;  %v393_v47 = vpack.c.bf16 %v390_v42, %v389_v34  ;;  %v500_v48 = vpack.c.bf16 %v497_v24, %v496_v35  ;;  %v723_v50 = vpack.c.bf16 %v3734_v43, %v3732_v36 }
 0x2b7   :  { %v893_v54 = vpack.c.bf16 %v3738_v45, %v3736_v44 }
 0x2b8   :  { %v392_v55 = vmul.f32 %v2847_v22, %v337_v46  ;;  %3038 = vmatprep.mubr.bf16.mxu0 %v393_v47  ;;  %3046 = vmatprep.mubr.bf16.mxu1 %v500_v48  ;;  %v499_v56 = vmul.f32 %v2848_v27, %v337_v46  ;;  %v3746_v57 = vmul.f32 %v2853_v23, %v337_v46 }
 0x2b9   :  { %v3750_v59 = vmul.f32 %v2856_v37, %v337_v46 }
 0x2ba   :  { %v394_v60 = vpack.c.bf16 %v392_v55, %v391_v51  ;;  %v501_v61 = vpack.c.bf16 %v499_v56, %v498_v52  ;;  %v724_v62 = vpack.c.bf16 %v3746_v57, %v3742_v53 }
 0x2bb   :  { %v894_v63 = vpack.c.bf16 %v3750_v59, %v3748_v58 }
 0x2bc   :  { %3039 = vmatmul.mubr.bf16.vlgmr.msra.gmra.mxu0 %v394_v60  ;;  %3047 = vmatmul.mubr.bf16.vlgmr.msra.gmra.mxu1 %v501_v61 }
 0x37c   :  { %v3040_v1 = vpop.f32.mrf.mxu0  ;;  %v3048_v2 = vpop.f32.mrf.mxu1 }
 0x37d   :  { %v545_v13 = vadd.f32 %v3048_v2, %v3766_v4  ;;  %v438_v23 = vadd.f32 %v3040_v1, %v3766_v4 }
 0x37e   :  { %v429_v5 = vpop.f32.mrf.mxu0  ;;  %v536_v6 = vpop.f32.mrf.mxu1 }
 0x37f   :  { %v537_v7 = vadd.f32 %v536_v6, %v3761_v3  ;;  %v557_v26 = vsel %vm73_vm0, %v545_v13, -inf  ;;  %v430_v28 = vadd.f32 %v429_v5, %v3761_v3  ;;  %v450_v33 = vsel %vm73_vm0, %v438_v23, -inf }
 0x380   :  { %v3041_v9 = vpop.f32.mrf.mxu0  ;;  %v3049_v11 = vpop.f32.mrf.mxu1 }
 0x381   :  { %v551_v15 = vsel %vm73_vm0, %v537_v7, -inf  ;;  %v548_v20 = vadd.f32 %v3049_v11, %v3779_v16  ;;  %v441_v27 = vadd.f32 %v3041_v9, %v3779_v16  ;;  %v444_v21 = vsel %vm73_vm0, %v430_v28, -inf }
 0x382   :  { %v539_v17 = vpop.f32.mrf.mxu1  ;;  %552 = vmax.xlane.f32.xlu0 %v551_v15  ;;  %v432_v18 = vpop.f32.mrf.mxu0 }
 0x383   :  { %v540_v19 = vadd.f32 %v539_v17, %v3772_v12  ;;  %v433_v22 = vadd.f32 %v432_v18, %v3772_v12  ;;  %v560_v29 = vsel %vm73_vm0, %v548_v20, -inf  ;;  %v453_v31 = vsel %vm73_vm0, %v441_v27, -inf }
 0x385   :  { %v554_v25 = vsel %vm73_vm0, %v540_v19, -inf  ;;  %v447_v30 = vsel %vm73_vm0, %v433_v22, -inf }
 0x386   :  { %555 = vmax.xlane.f32.xlu1 %v554_v25  ;;  %558 = vmax.xlane.f32.xlu0 %v557_v26 }
 0x38a   :  { %561 = vmax.xlane.f32.xlu0 %v560_v29  ;;  %448 = vmax.xlane.f32.xlu1 %v447_v30 }
 0x38e   :  { %454 = vmax.xlane.f32.xlu1 %v453_v31  ;;  %445 = vmax.xlane.f32.xlu0 %v444_v21  ;;  %v3810_v21 = vpack.c.bf16 %v3756_v0, %v3630_v10 }
 0x392   :  { %451 = vmax.xlane.f32.xlu0 %v450_v33 }
 0x40b   :  { %v553_v34 = vpop.xlane.xlu0 %552 }
 0x40c   :  { %v563_v52 = vsub.f32 %v537_v7, %v553_v34 }
 0x40e   :  { %v567_v2 = vmul.f32 1.442695, %v563_v52 }
 0x40f   :  { %v556_v35 = vpop.xlane.xlu1 %555  ;;  %v559_v37 = vpop.xlane.xlu0 %558 }
 0x410   :  { %v565_v38 = vsub.f32 %v545_v13, %v559_v37  ;;  %v564_v24 = vsub.f32 %v540_v19, %v556_v35 }
 0x412   :  { %v571_v39 = vmul.f32 1.442695, %v565_v38  ;;  %v569_v55 = vmul.f32 1.442695, %v564_v24 }
 0x413   :  { %v562_v40 = vpop.xlane.xlu0 %561  ;;  %v449_v41 = vpop.xlane.xlu1 %448 }
 0x414   :  { %v566_v42 = vsub.f32 %v548_v20, %v562_v40  ;;  %3293 = vpow2.f32 %v571_v39  ;;  %v457_v56 = vsub.f32 %v433_v22, %v449_v41 }
 0x416   :  { %v573_v46 = vmul.f32 1.442695, %v566_v42  ;;  %v462_v5 = vmul.f32 1.442695, %v457_v56 }
 0x417   :  { %v455_v47 = vpop.xlane.xlu1 %454  ;;  %v446_v48 = vpop.xlane.xlu0 %445 }
 0x418   :  { %3295 = vpow2.f32 %v573_v46  ;;  %v459_v51 = vsub.f32 %v441_v27, %v455_v47  ;;  %v456_v6 = vsub.f32 %v430_v28, %v446_v48 }
 0x41a   :  { %v466_v60 = vmul.f32 1.442695, %v459_v51  ;;  %v460_v13 = vmul.f32 1.442695, %v456_v6 }
 0x41b   :  { %v452_v61 = vpop.xlane.xlu0 %451 }
 0x41c   :  { %3297 = vpow2.f32 %v466_v60  ;;  %v458_v1 = vsub.f32 %v438_v23, %v452_v61 }
 0x41d   :  { %3299 = vpow2.f32 %v569_v55 }
 0x41e   :  { %v464_v9 = vmul.f32 1.442695, %v458_v1 }
 0x420   :  { %3301 = vpow2.f32 %v464_v9 }
 0x421   :  { %3303 = vpow2.f32 %v567_v2  ;;  %v3294_v11 = vpop.eup %3293 }
 0x422   :  { %3305 = vpow2.f32 %v462_v5  ;;  %v581_v15 = vsel %vm73_vm0, %v3294_v11, 0.0 }
 0x423   :  { %582 = vadd.xlane.f32.xlu0 %v581_v15  ;;  %3307 = vpow2.f32 %v460_v13 }
 0x425   :  { %v3296_v7 = vpop.eup %3295 }
 0x426   :  { %v584_v17 = vsel %vm73_vm0, %v3296_v7, 0.0 }
 0x427   :  { %585 = vadd.xlane.f32.xlu1 %v584_v17 }
 0x429   :  { %v3796_v18 = vpop.eup %3297 }
 0x42a   :  { %v477_v19 = vsel %vm73_vm0, %v3796_v18, 0.0  ;;  %v3300_v20 = vpop.eup %3299 }
 0x42b   :  { %478 = vadd.xlane.f32.xlu1 %v477_v19  ;;  %v578_v26 = vsel %vm73_vm0, %v3300_v20, 0.0 }
 0x42d   :  { %v3800_v22 = vpop.eup %3301 }
 0x42e   :  { %v3304_v25 = vpop.eup %3303  ;;  %v474_v28 = vsel %vm73_vm0, %v3800_v22, 0.0 }
 0x42f   :  { %v3306_v27 = vpop.eup %3305  ;;  %579 = vadd.xlane.f32.xlu1 %v578_v26  ;;  %475 = vadd.xlane.f32.xlu0 %v474_v28  ;;  %v575_v30 = vsel %vm73_vm0, %v3304_v25, 0.0 }
 0x430   :  { %v471_v29 = vsel %vm73_vm0, %v3306_v27, 0.0  ;;  %v3308_v23 = vpop.eup %3307 }
 0x431   :  { %v468_v31 = vsel %vm73_vm0, %v3308_v23, 0.0 }
 0x433   :  { %472 = vadd.xlane.f32.xlu1 %v471_v29  ;;  %576 = vadd.xlane.f32.xlu0 %v575_v30 }
 0x437   :  { %469 = vadd.xlane.f32.xlu0 %v468_v31 }
 0x444   :  { %599 = vrot.lane.b32.xlu1 %v3810_v21, %s3568_s0 }
 0x44d   :  { %601 = vrot.lane.b32.xlu0 %v3632_v14, %s3568_s0 }
 0x4ac   :  { %v583_v34 = vpop.xlane.xlu0 %582 }
 0x4b0   :  { %v586_v33 = vpop.xlane.xlu1 %585 }
 0x4b1   :  { %3309 = vrcp.f32 %v586_v33 }
 0x4b4   :  { %v479_v35 = vpop.xlane.xlu1 %478 }
 0x4b8   :  { %v580_v37 = vpop.xlane.xlu1 %579  ;;  %v476_v38 = vpop.xlane.xlu0 %475 }
 0x4b9   :  { %3311 = vrcp.f32 %v580_v37 }
 0x4ba   :  { %3313 = vrcp.f32 %v583_v34 }
 0x4bc   :  { %v473_v39 = vpop.xlane.xlu1 %472  ;;  %v577_v40 = vpop.xlane.xlu0 %576 }
 0x4bd   :  { %3315 = vrcp.f32 %v577_v40 }
 0x4be   :  { %3317 = vrcp.f32 %v473_v39  ;;  %v3310_v42 = vpop.eup %3309 }
 0x4bf   :  { %v594_v48 = vmul.f32 %v3310_v42, %v3296_v7 }
 0x4c0   :  { %v470_v10 = vpop.xlane.xlu0 %469  ;;  %v600_v41 = vpop.permute.xlu1 %599 }
 0x4c1   :  { %3319 = vrcp.f32 %v470_v10 }
 0x4c2   :  { %3321 = vrcp.f32 %v476_v38 }
 0x4c3   :  { %3323 = vrcp.f32 %v479_v35 }
 0x4c4   :  { %v602_v0 = vpop.permute.xlu0 %601 }
 0x4c5   :  { %3050 = vmatprep.subr.bf16.mxu0 %v602_v0 }
 0x4c6   :  { %3051 = vmatpush3.bf16.msra.mxu0 %v602_v0  ;;  %v3312_v24 = vpop.eup %3311 }
 0x4c7   :  { %3052 = vmatprep.subr.bf16.mxu0 %v600_v41  ;;  %v3314_v46 = vpop.eup %3313  ;;  %v592_v55 = vmul.f32 %v3312_v24, %v3300_v20 }
 0x4c8   :  { %v593_v56 = vmul.f32 %v3314_v46, %v3294_v11 }
 0x4ca   :  { %3053 = vmatpush3.bf16.msra.mxu0 %v600_v41  ;;  %v3316_v47 = vpop.eup %3315  ;;  %v596_v1 = vpack.c.bf16 %v594_v48, %v593_v56 }
 0x4cb   :  { %3058 = vmatprep.subr.bf16.mxu0 %v3632_v14  ;;  %v3318_v51 = vpop.eup %3317  ;;  %v591_v52 = vmul.f32 %v3316_v47, %v3304_v25 }
 0x4cc   :  { %v485_v5 = vmul.f32 %v3318_v51, %v3306_v27 }
 0x4cd   :  { %v595_v61 = vpack.c.bf16 %v592_v55, %v591_v52 }
 0x4ce   :  { %v3320_v60 = vpop.eup %3319 }
 0x4cf   :  { %v484_v2 = vmul.f32 %v3320_v60, %v3308_v23  ;;  %v3322_v6 = vpop.eup %3321  ;;  %3054 = vmatprep.mubr.msk.bf16.mxu0 %vm73_vm0, %v595_v61 }
 0x4d0   :  { %3055 = vmatmul.mubr.msk.bf16.vlgmr.msra.gmra.mxu0 %vm73_vm0, %v596_v1  ;;  %v3324_v13 = vpop.eup %3323  ;;  %v486_v11 = vmul.f32 %v3322_v6, %v3800_v22 }
 0x4d1   :  { %v490_v9 = vpack.c.bf16 %v485_v5, %v484_v2  ;;  %3059 = vmatpush3.bf16.msra.mxu0 %v3632_v14  ;;  %v487_v15 = vmul.f32 %v3324_v13, %v3796_v18 }
 0x4d2   :  { %3060 = vmatprep.subr.bf16.mxu0 %v3810_v21 }
 0x4d3   :  { %3062 = vmatprep.mubr.msk.bf16.mxu0 %vm73_vm0, %v490_v9  ;;  %v491_v7 = vpack.c.bf16 %v487_v15, %v486_v11 }
 0x4d5   :  { %3061 = vmatpush3.bf16.msra.mxu0 %v3810_v21 }
 0x4d6   :  { %3066 = vmatprep.subr.bf16.mxu0 %v3706_v8 }
 0x4d8   :  { %3063 = vmatmul.mubr.msk.bf16.vlgmr.msra.gmra.mxu0 %vm73_vm0, %v491_v7 }
 0x4d9   :  { %3067 = vmatpush3.bf16.xpose.msra.mxu0 %v3706_v8  ;;  %3070 = vmatprep.mubr.bf16.mxu0 %v723_v50 }
 0x4da   :  { %3068 = vmatprep.subr.bf16.mxu0 %v3686_v49 }
 0x4e1   :  { %3069 = vmatpush3.bf16.xpose.msra.mxu0 %v3686_v49 }
 0x4e8   :  { %3071 = vmatmul.mubr.bf16.vlgmr.msra.gmra.mxu0 %v724_v62 }
 0x590   :  { %v3056_v17 = vpop.f32.mrf.mxu0 }
 0x592   :  { %v645_v18 = vpop.f32.mrf.mxu0 }
 0x594   :  { %v3057_v19 = vpop.f32.mrf.mxu0 }
 0x596   :  { %v648_v20 = vpop.f32.mrf.mxu0 }
 0x598   :  { %v3064_v22 = vpop.f32.mrf.mxu0 }
 0x599   :  { %v3836_v25 = vadd.f32 %v3064_v22, %v3056_v17 }
 0x59a   :  { %v700_v26 = vpop.f32.mrf.mxu0 }
 0x59b   :  { %v3838_v28 = vadd.f32 %v700_v26, %v645_v18 }
 0x59c   :  { %v3065_v36 = vpop.f32.mrf.mxu0 }
 0x59d   :  { %v3840_v43 = vadd.f32 %v3065_v36, %v3057_v19 }
 0x59e   :  { %v703_v50 = vpop.f32.mrf.mxu0 }
 0x59f   :  { %v3842_v27 = vadd.f32 %v703_v50, %v648_v20 }
 0x5a8   :  { %v3072_v29 = vpop.f32.mrf.mxu0 }
 0x5a9   :  { %v768_v34 = vadd.f32 %v3072_v29, %v3766_v4 }
 0x5aa   :  { %v759_v30 = vpop.f32.mrf.mxu0 }
 0x5ab   :  { %v760_v53 = vadd.f32 %v759_v30, %v3761_v3  ;;  %v780_v38 = vsel %vm73_vm0, %v768_v34, -inf }
 0x5ac   :  { %v3073_v57 = vpop.f32.mrf.mxu0 }
 0x5ad   :  { %v771_v62 = vadd.f32 %v3073_v57, %v3779_v16  ;;  %v774_v23 = vsel %vm73_vm0, %v760_v53, -inf }
 0x5ae   :  { %v762_v31 = vpop.f32.mrf.mxu0  ;;  %775 = vmax.xlane.f32.xlu1 %v774_v23 }
 0x5af   :  { %v763_v33 = vadd.f32 %v762_v31, %v3772_v12  ;;  %v783_v37 = vsel %vm73_vm0, %v771_v62, -inf }
 0x5b1   :  { %v777_v35 = vsel %vm73_vm0, %v763_v33, -inf }
 0x5b2   :  { %778 = vmax.xlane.f32.xlu0 %v777_v35  ;;  %784 = vmax.xlane.f32.xlu1 %v783_v37 }
 0x5b6   :  { %781 = vmax.xlane.f32.xlu0 %v780_v38 }
 0x637   :  { %v776_v39 = vpop.xlane.xlu1 %775 }
 0x638   :  { %v786_v42 = vsub.f32 %v760_v53, %v776_v39 }
 0x63a   :  { %v790_v51 = vmul.f32 1.442695, %v786_v42 }
 0x63b   :  { %v779_v40 = vpop.xlane.xlu0 %778  ;;  %v785_v10 = vpop.xlane.xlu1 %784 }
 0x63c   :  { %v787_v0 = vsub.f32 %v763_v33, %v779_v40  ;;  %v789_v41 = vsub.f32 %v771_v62, %v785_v10 }
 0x63e   :  { %v796_v24 = vmul.f32 1.442695, %v789_v41  ;;  %v792_v46 = vmul.f32 1.442695, %v787_v0 }
 0x63f   :  { %v782_v47 = vpop.xlane.xlu0 %781 }
 0x640   :  { %v788_v48 = vsub.f32 %v768_v34, %v782_v47  ;;  %3325 = vpow2.f32 %v796_v24 }
 0x641   :  { %3327 = vpow2.f32 %v792_v46 }
 0x642   :  { %v794_v52 = vmul.f32 1.442695, %v788_v48 }
 0x644   :  { %3329 = vpow2.f32 %v794_v52 }
 0x645   :  { %3331 = vpow2.f32 %v790_v51 }
 0x64d   :  { %v3326_v55 = vpop.eup %3325 }
 0x64e   :  { %v807_v56 = vsel %vm73_vm0, %v3326_v55, 0.0  ;;  %v3328_v60 = vpop.eup %3327 }
 0x64f   :  { %808 = vadd.xlane.f32.xlu1 %v807_v56  ;;  %v801_v5 = vsel %vm73_vm0, %v3328_v60, 0.0 }
 0x651   :  { %v3330_v61 = vpop.eup %3329 }
 0x652   :  { %v804_v1 = vsel %vm73_vm0, %v3330_v61, 0.0  ;;  %v3332_v2 = vpop.eup %3331 }
 0x653   :  { %805 = vadd.xlane.f32.xlu0 %v804_v1  ;;  %802 = vadd.xlane.f32.xlu1 %v801_v5  ;;  %v798_v6 = vsel %vm73_vm0, %v3332_v2, 0.0 }
 0x657   :  { %799 = vadd.xlane.f32.xlu0 %v798_v6 }
 0x664   :  { %820 = vrot.lane.b32.xlu1 %v3810_v21, %s3569_s1 }
 0x66d   :  { %822 = vrot.lane.b32.xlu0 %v3632_v14, %s3569_s1 }
 0x6d8   :  { %v809_v9 = vpop.xlane.xlu1 %808 }
 0x6dc   :  { %v806_v13 = vpop.xlane.xlu0 %805  ;;  %v803_v11 = vpop.xlane.xlu1 %802 }
 0x6dd   :  { %3333 = vrcp.f32 %v806_v13 }
 0x6de   :  { %3335 = vrcp.f32 %v803_v11 }
 0x6df   :  { %3337 = vrcp.f32 %v809_v9 }
 0x6e0   :  { %v800_v15 = vpop.xlane.xlu0 %799  ;;  %v821_v17 = vpop.permute.xlu1 %820 }
 0x6e1   :  { %3339 = vrcp.f32 %v800_v15 }
 0x6e4   :  { %v823_v7 = vpop.permute.xlu0 %822 }
 0x6e5   :  { %3074 = vmatprep.subr.bf16.mxu1 %v823_v7 }
 0x6e6   :  { %3075 = vmatpush3.bf16.msra.mxu1 %v823_v7 }
 0x6e7   :  { %3076 = vmatprep.subr.bf16.mxu1 %v821_v17 }
 0x6ea   :  { %3077 = vmatpush3.bf16.msra.mxu1 %v821_v17  ;;  %v3334_v18 = vpop.eup %3333 }
 0x6eb   :  { %3082 = vmatprep.subr.bf16.mxu1 %v3706_v8  ;;  %v3336_v19 = vpop.eup %3335  ;;  %v816_v26 = vmul.f32 %v3334_v18, %v3330_v61 }
 0x6ec   :  { %v3338_v20 = vpop.eup %3337  ;;  %v815_v50 = vmul.f32 %v3336_v19, %v3328_v60 }
 0x6ed   :  { %v817_v29 = vmul.f32 %v3338_v20, %v3326_v55 }
 0x6ee   :  { %v3340_v22 = vpop.eup %3339 }
 0x6ef   :  { %v814_v36 = vmul.f32 %v3340_v22, %v3332_v2  ;;  %v819_v53 = vpack.c.bf16 %v817_v29, %v816_v26 }
 0x6f1   :  { %v818_v30 = vpack.c.bf16 %v815_v50, %v814_v36 }
 0x6f3   :  { %3078 = vmatprep.mubr.msk.bf16.mxu1 %vm73_vm0, %v818_v30  ;;  %v3469_v30 = vld [vmem:[#allocation2] sm:$0xff] }
 0x6f4   :  { %3079 = vmatmul.mubr.msk.bf16.vlgmr.msra.gmra.mxu1 %vm73_vm0, %v819_v53 }
 0x6f5   :  { %3083 = vmatpush3.bf16.xpose.msra.mxu1 %v3706_v8  ;;  %3086 = vmatprep.mubr.bf16.mxu1 %v893_v54 }
 0x6f6   :  { %3084 = vmatprep.subr.bf16.mxu1 %v3686_v49 }
 0x6fd   :  { %3085 = vmatpush3.bf16.xpose.msra.mxu1 %v3686_v49 }
 0x704   :  { %3087 = vmatmul.mubr.bf16.vlgmr.msra.gmra.mxu1 %v894_v63 }
 0x7b4   :  { %v3080_v57 = vpop.f32.mrf.mxu1 }
 0x7b5   :  { %v3873_v62 = vadd.f32 %v3080_v57, %v3836_v25 }
 0x7b6   :  { %v866_v23 = vpop.f32.mrf.mxu1 }
 0x7b7   :  { %v3876_v31 = vadd.f32 %v866_v23, %v3838_v28  ;;  %v2859_v23 = vld [vmem:[%s4381_s3 + $0x8a] ss:$0 sm:$0xff] }
 0x7b8   :  { %v3081_v8 = vpop.f32.mrf.mxu1 }
 0x7b9   :  { %v3879_v44 = vadd.f32 %v3081_v8, %v3840_v43 }
 0x7ba   :  { %v869_v45 = vpop.f32.mrf.mxu1 }
 0x7bb   :  { %v3882_v54 = vadd.f32 %v869_v45, %v3842_v27 }
 0x7c4   :  { %v3088_v49 = vpop.f32.mrf.mxu1 }
 0x7c5   :  { %v938_v43 = vadd.f32 %v3088_v49, %v3766_v4  ;;  %v3470_v49 = vld [vmem:[#allocation2 + $0x18] sm:$0xff] }
 0x7c6   :  { %v929_v33 = vpop.f32.mrf.mxu1 }
 0x7c7   :  { %v930_v58 = vadd.f32 %v929_v33, %v3761_v3  ;;  %v950_v37 = vsel %vm73_vm0, %v938_v43, -inf }
 0x7c8   :  { %v3089_v59 = vpop.f32.mrf.mxu1 }
 0x7c9   :  { %v941_v63 = vadd.f32 %v3089_v59, %v3779_v16  ;;  %v944_v25 = vsel %vm73_vm0, %v930_v58, -inf  ;;  %v3471_v59 = vld [vmem:[#allocation2 + $0x10] sm:$0xff] }
 0x7ca   :  { %v932_v34 = vpop.f32.mrf.mxu1  ;;  %945 = vmax.xlane.f32.xlu1 %v944_v25 }
 0x7cb   :  { %v933_v28 = vadd.f32 %v932_v34, %v3772_v12  ;;  %v953_v27 = vsel %vm73_vm0, %v941_v63, -inf }
 0x7cd   :  { %v947_v35 = vsel %vm73_vm0, %v933_v28, -inf }
 0x7ce   :  { %948 = vmax.xlane.f32.xlu0 %v947_v35  ;;  %954 = vmax.xlane.f32.xlu1 %v953_v27 }
 0x7d2   :  { %951 = vmax.xlane.f32.xlu0 %v950_v37 }
 0x853   :  { %v946_v3 = vpop.xlane.xlu1 %945 }
 0x854   :  { %v956_v10 = vsub.f32 %v930_v58, %v946_v3 }
 0x856   :  { %v960_v4 = vmul.f32 1.442695, %v956_v10 }
 0x857   :  { %v949_v38 = vpop.xlane.xlu0 %948  ;;  %v955_v16 = vpop.xlane.xlu1 %954 }
 0x858   :  { %v957_v39 = vsub.f32 %v933_v28, %v949_v38  ;;  %v959_v40 = vsub.f32 %v941_v63, %v955_v16 }
 0x85a   :  { %v966_v0 = vmul.f32 1.442695, %v959_v40  ;;  %v962_v41 = vmul.f32 1.442695, %v957_v39 }
 0x85b   :  { %v952_v12 = vpop.xlane.xlu0 %951 }
 0x85c   :  { %v958_v42 = vsub.f32 %v938_v43, %v952_v12  ;;  %3341 = vpow2.f32 %v966_v0 }
 0x85d   :  { %3343 = vpow2.f32 %v962_v41 }
 0x85e   :  { %v964_v24 = vmul.f32 1.442695, %v958_v42 }
 0x860   :  { %3345 = vpow2.f32 %v964_v24 }
 0x861   :  { %3347 = vpow2.f32 %v960_v4 }
 0x869   :  { %v3342_v46 = vpop.eup %3341 }
 0x86a   :  { %v977_v47 = vsel %vm73_vm0, %v3342_v46, 0.0  ;;  %v3344_v48 = vpop.eup %3343 }
 0x86b   :  { %978 = vadd.xlane.f32.xlu1 %v977_v47  ;;  %v971_v56 = vsel %vm73_vm0, %v3344_v48, 0.0 }
 0x86d   :  { %v3346_v51 = vpop.eup %3345 }
 0x86e   :  { %v974_v52 = vsel %vm73_vm0, %v3346_v51, 0.0  ;;  %v3348_v55 = vpop.eup %3347 }
 0x86f   :  { %975 = vadd.xlane.f32.xlu0 %v974_v52  ;;  %972 = vadd.xlane.f32.xlu1 %v971_v56  ;;  %v968_v60 = vsel %vm73_vm0, %v3348_v55, 0.0  ;;  %v3255_v56 = vld [vmem:[#allocation5 + $0x54] ss:$36 sps:$4 sm:$0xff]  }
 0x873   :  { %969 = vadd.xlane.f32.xlu0 %v968_v60  ;;  %v3256_v60 = vld [vmem:[#allocation5 + $0xc] ss:$36 sps:$4 sm:$0xff]  }
 0x880   :  { %990 = vrot.lane.b32.xlu1 %v3810_v21, %s3570_s29 }
 0x889   :  { %992 = vrot.lane.b32.xlu0 %v3632_v14, %s3570_s29 }
 0x8f4   :  { %v979_v61 = vpop.xlane.xlu1 %978 }
 0x8f8   :  { %v976_v1 = vpop.xlane.xlu0 %975  ;;  %v973_v2 = vpop.xlane.xlu1 %972 }
 0x8f9   :  { %3349 = vrcp.f32 %v976_v1 }
 0x8fa   :  { %3351 = vrcp.f32 %v973_v2 }
 0x8fb   :  { %3353 = vrcp.f32 %v979_v61 }
 0x8fc   :  { %v970_v5 = vpop.xlane.xlu0 %969  ;;  %v991_v9 = vpop.permute.xlu1 %990 }
 0x8fd   :  { %3355 = vrcp.f32 %v970_v5 }
 0x900   :  { %v993_v6 = vpop.permute.xlu0 %992 }
 0x901   :  { %3090 = vmatprep.subr.bf16.mxu0 %v993_v6 }
 0x902   :  { %3091 = vmatpush3.bf16.msra.mxu0 %v993_v6 }
 0x903   :  { %3092 = vmatprep.subr.bf16.mxu0 %v991_v9 }
 0x906   :  { %3093 = vmatpush3.bf16.msra.mxu0 %v991_v9  ;;  %v3350_v13 = vpop.eup %3349 }
 0x907   :  { %v3352_v11 = vpop.eup %3351  ;;  %v986_v7 = vmul.f32 %v3350_v13, %v3346_v51  ;;  %3098 = vmatprep.subr.bf16.mxu0 %v3255_v56 }
 0x908   :  { %v3354_v21 = vpop.eup %3353  ;;  %v985_v17 = vmul.f32 %v3352_v11, %v3344_v48 }
 0x909   :  { %v987_v18 = vmul.f32 %v3354_v21, %v3342_v46 }
 0x90a   :  { %v3356_v15 = vpop.eup %3355 }
 0x90b   :  { %v984_v14 = vmul.f32 %v3356_v15, %v3348_v55  ;;  %v989_v20 = vpack.c.bf16 %v987_v18, %v986_v7 }
 0x90d   :  { %v988_v19 = vpack.c.bf16 %v985_v17, %v984_v14 }
 0x90f   :  { %3094 = vmatprep.mubr.msk.bf16.mxu0 %vm73_vm0, %v988_v19  ;;  %v2860_v19 = vld [vmem:[%s4381_s3 + $0x88] ss:$0 sm:$0xff] }
 0x910   :  { %3095 = vmatmul.mubr.msk.bf16.vlgmr.msra.gmra.mxu0 %vm73_vm0, %v989_v20 }
 0x911   :  { %3099 = vmatpush3.bf16.msra.mxu0 %v3255_v56 }
 0x912   :  { %3100 = vmatprep.subr.bf16.mxu0 %v3256_v60 }
 0x915   :  { %3101 = vmatpush3.bf16.msra.mxu0 %v3256_v60 }
 0x9d0   :  { %v3096_v22 = vpop.f32.mrf.mxu0 }
 0x9d1   :  { %v1053_v29 = vadd.f32 %v3096_v22, %v3873_v62  ;;  %v3472_v62 = vld [vmem:[#allocation2 + $0x8] sm:$0xff] }
 0x9d2   :  { %v1036_v26 = vpop.f32.mrf.mxu0 }
 0x9d3   :  { %v1051_v36 = vadd.f32 %v1036_v26, %v3876_v31  ;;  %v1057_v31 = vadd.f32 %v3471_v59, %v1053_v29 }
 0x9d4   :  { %v3097_v50 = vpop.f32.mrf.mxu0 }
 0x9d5   :  { %v1055_v53 = vadd.f32 %v3469_v30, %v1051_v36  ;;  %v1054_v57 = vadd.f32 %v3097_v50, %v3879_v44  ;;  %v3917_v28 = vadd.f32 %v2859_v23, %v1057_v31  ;;  %v2861_v36 = vld [vmem:[%s4381_s3 + $0x89] ss:$0 sm:$0xff] }
 0x9d6   :  { %v1039_v8 = vpop.f32.mrf.mxu0 }
 0x9d7   :  { %v3908_v45 = vadd.f32 %v2859_v23, %v1055_v53  ;;  %v1058_v33 = vadd.f32 %v3470_v49, %v1054_v57  ;;  %v1052_v58 = vadd.f32 %v1039_v8, %v3882_v54  ;;  %v1076_v35 = vsel %vm73_vm0, %v3917_v28, 0.0 }
 0x9d9   :  { %v3911_v63 = vadd.f32 %v2859_v23, %v1058_v33  ;;  %v1056_v25 = vadd.f32 %v3472_v62, %v1052_v58  ;;  %v1070_v44 = vsel %vm73_vm0, %v3908_v45, 0.0 }
 0x9da   :  { %1071 = vadd.xlane.f32.xlu1 %v1070_v44  ;;  %v3258_v44 = vld [vmem:[%s4380_s2 + $0x30] sm:$0xff]  }
 0x9db   :  { %v3915_v34 = vadd.f32 %v2859_v23, %v1056_v25  ;;  %v1079_v54 = vsel %vm73_vm0, %v3911_v63, 0.0  ;;  %v3257_v25 = vld [vmem:[%s4380_s2 + $0x38] sm:$0xff]  }
 0x9dc   :  { %3106 = vmatprep.subr.bf16.mxu1 %v3257_v25 }
 0x9dd   :  { %v1073_v43 = vsel %vm73_vm0, %v3915_v34, 0.0  ;;  %3107 = vmatpush3.bf16.msra.mxu1 %v3257_v25 }
 0x9de   :  { %1074 = vadd.xlane.f32.xlu0 %v1073_v43  ;;  %1080 = vadd.xlane.f32.xlu1 %v1079_v54  ;;  %v3259_v43 = vld [vmem:[%s4380_s2 + $0x28] sm:$0xff]   ;;  %v3260_v54 = vld [vmem:[%s4380_s2 + $0x20] sm:$0xff]  }
 0x9df   :  { %3108 = vmatprep.subr.bf16.mxu1 %v3258_v44 }
 0x9e1   :  { %3109 = vmatpush3.bf16.msra.mxu1 %v3258_v44 }
 0x9e2   :  { %1077 = vadd.xlane.f32.xlu0 %v1076_v35  ;;  %3110 = vmatprep.subr.bf16.mxu1 %v3259_v43  ;;  %v3261_v35 = vld [vmem:[%s4380_s2 + $0x18] sm:$0xff]  }
 0x9e5   :  { %3111 = vmatpush3.bf16.msra.mxu1 %v3259_v43 }
 0x9e6   :  { %3112 = vmatprep.subr.bf16.mxu1 %v3260_v54 }
 0x9e9   :  { %3113 = vmatpush3.bf16.msra.mxu1 %v3260_v54 }
 0x9ea   :  { %3114 = vmatprep.subr.bf16.mxu1 %v3261_v35 }
 0x9ed   :  { %3115 = vmatpush3.bf16.msra.mxu1 %v3261_v35 }
 0xa63   :  { %v1072_v27 = vpop.xlane.xlu1 %1071 }
 0xa64   :  { %v1082_v37 = vmul.f32 0.03125, %v1072_v27  ;;  %v3262_v27 = vld [vmem:[%s4380_s2 + $0x10] sm:$0xff]  }
 0xa65   :  { %3116 = vmatprep.subr.bf16.mxu1 %v3262_v27 }
 0xa66   :  { %v1086_v3 = vsub.f32 %v3908_v45, %v1082_v37  ;;  %3117 = vmatpush3.bf16.msra.mxu1 %v3262_v27  ;;  %v3263_v37 = vld [vmem:[%s4380_s2 + $0x8] sm:$0xff]  }
 0xa67   :  { %v1075_v38 = vpop.xlane.xlu0 %1074  ;;  %v1081_v16 = vpop.xlane.xlu1 %1080  ;;  %3118 = vmatprep.subr.bf16.mxu1 %v3263_v37 }
 0xa68   :  { %v1083_v39 = vmul.f32 0.03125, %v1075_v38  ;;  %v1085_v40 = vmul.f32 0.03125, %v1081_v16  ;;  %v1090_v10 = vmul.f32 %v1086_v3, %v1086_v3  ;;  %v2862_v38 = vld [vmem:[%s4381_s3 + $0x8b] ss:$0 sm:$0xff] }
 0xa6a   :  { %v1087_v0 = vsub.f32 %v3915_v34, %v1083_v39  ;;  %v1089_v41 = vsub.f32 %v3911_v63, %v1085_v40  ;;  %v1094_v12 = vsel %vm73_vm0, %v1090_v10, 0.0  ;;  %3119 = vmatpush3.bf16.msra.mxu1 %v3263_v37 }
 0xa6b   :  { %v1078_v42 = vpop.xlane.xlu0 %1077  ;;  %1095 = vadd.xlane.f32.xlu0 %v1094_v12 }
 0xa6c   :  { %v1084_v4 = vmul.f32 0.03125, %v1078_v42  ;;  %v1091_v24 = vmul.f32 %v1087_v0, %v1087_v0  ;;  %v1093_v48 = vmul.f32 %v1089_v41, %v1089_v41 }
 0xa6e   :  { %v1088_v46 = vsub.f32 %v3917_v28, %v1084_v4  ;;  %v1097_v47 = vsel %vm73_vm0, %v1091_v24, 0.0  ;;  %v1103_v55 = vsel %vm73_vm0, %v1093_v48, 0.0 }
 0xa6f   :  { %1098 = vadd.xlane.f32.xlu1 %v1097_v47 }
 0xa70   :  { %v1092_v51 = vmul.f32 %v1088_v46, %v1088_v46 }
 0xa72   :  { %v1100_v52 = vsel %vm73_vm0, %v1092_v51, 0.0 }
 0xa73   :  { %1101 = vadd.xlane.f32.xlu0 %v1100_v52  ;;  %1104 = vadd.xlane.f32.xlu1 %v1103_v55 }
 0xaf4   :  { %v1096_v61 = vpop.xlane.xlu0 %1095 }
 0xaf5   :  { %v1106_v1 = vmul.f32 0.03125, %v1096_v61 }
 0xaf7   :  { %v1110_v2 = vadd.f32 1e-05, %v1106_v1 }
 0xaf8   :  { %v1099_v5 = vpop.xlane.xlu1 %1098 }
 0xaf9   :  { %3357 = vrsqrt.f32 %v1110_v2  ;;  %v1107_v6 = vmul.f32 0.03125, %v1099_v5 }
 0xafb   :  { %v1111_v9 = vadd.f32 1e-05, %v1107_v6 }
 0xafc   :  { %v1102_v13 = vpop.xlane.xlu0 %1101  ;;  %v1105_v11 = vpop.xlane.xlu1 %1104 }
 0xafd   :  { %3359 = vrsqrt.f32 %v1111_v9  ;;  %v1108_v21 = vmul.f32 0.03125, %v1102_v13  ;;  %v1109_v15 = vmul.f32 0.03125, %v1105_v11 }
 0xaff   :  { %v1112_v7 = vadd.f32 1e-05, %v1108_v21  ;;  %v1113_v14 = vadd.f32 1e-05, %v1109_v15 }
 0xb01   :  { %3361 = vrsqrt.f32 %v1112_v7 }
 0xb02   :  { %3363 = vrsqrt.f32 %v1113_v14 }
 0xb06   :  { %v3358_v17 = vpop.eup %3357 }
 0xb07   :  { %v1118_v18 = vmul.f32 %v3358_v17, %v1086_v3  ;;  %v3264_v3 = vld [vmem:[%s4380_s2] sm:$0xff]  }
 0xb08   :  { %3120 = vmatprep.subr.bf16.mxu1 %v3264_v3 }
 0xb09   :  { %v1126_v26 = vmul.f32 %v2860_v19, %v1118_v18  ;;  %3121 = vmatpush3.bf16.msra.mxu1 %v3264_v3 }
 0xb0a   :  { %v3360_v20 = vpop.eup %3359 }
 0xb0b   :  { %v1119_v22 = vmul.f32 %v3360_v20, %v1087_v0  ;;  %v1134_v57 = vadd.f32 %v2861_v36, %v1126_v26 }
 0xb0d   :  { %v1127_v50 = vmul.f32 %v2860_v19, %v1119_v22 }
 0xb0e   :  { %v3362_v29 = vpop.eup %3361 }
 0xb0f   :  { %v3364_v30 = vpop.eup %3363  ;;  %v1120_v53 = vmul.f32 %v3362_v29, %v1088_v46  ;;  %v1135_v23 = vadd.f32 %v2861_v36, %v1127_v50 }
 0xb10   :  { %v1121_v8 = vmul.f32 %v3364_v30, %v1089_v41 }
 0xb11   :  { %v1138_v49 = vpack.c.bf16 %v1135_v23, %v1134_v57  ;;  %v1128_v33 = vmul.f32 %v2860_v19, %v1120_v53 }
 0xb12   :  { %v1129_v58 = vmul.f32 %v2860_v19, %v1121_v8 }
 0xb13   :  { %3102 = vmatprep.mubr.msk.bf16.mxu0 %vm73_vm0, %v1138_v49  ;;  %v1136_v59 = vadd.f32 %v2861_v36, %v1128_v33 }
 0xb14   :  { %v1137_v31 = vadd.f32 %v2861_v36, %v1129_v58 }
 0xb16   :  { %v1139_v62 = vpack.c.bf16 %v1137_v31, %v1136_v59  ;;  %v2867_v59 = vld [vmem:[%s4381_s3 + $0x8c] ss:$0 sm:$0xff] }
 0xb18   :  { %3103 = vmatmul.mubr.msk.bf16.vlgmr.msra.gmra.mxu0 %vm73_vm0, %v1139_v62 }
 0xb19   :  { %1526 = vmatprep.mubr.bf16.mxu0 %v3565_v32 }
 0xbd8   :  { %v3104_v16 = vpop.f32.mrf.mxu0 }
 0xbd9   :  { %v1210_v39 = vadd.f32 %v3104_v16, %v2862_v38 }
 0xbda   :  { %v1201_v40 = vpop.f32.mrf.mxu0 }
 0xbdb   :  { %v1218_v10 = vmul.f32 %v1210_v39, %v1210_v39  ;;  %v1202_v0 = vadd.f32 %v2862_v38, %v1201_v40 }
 0xbdc   :  { %v3105_v41 = vpop.f32.mrf.mxu0 }
 0xbdd   :  { %v1222_v12 = vmul.f32 %v1218_v10, %v1210_v39  ;;  %v1216_v42 = vmul.f32 %v1202_v0, %v1202_v0  ;;  %v1213_v4 = vadd.f32 %v3105_v41, %v2862_v38 }
 0xbde   :  { %v1204_v24 = vpop.f32.mrf.mxu0 }
 0xbdf   :  { %v1226_v46 = vmul.f32 0.044715, %v1222_v12  ;;  %v1220_v47 = vmul.f32 %v1216_v42, %v1202_v0  ;;  %v1219_v48 = vmul.f32 %v1213_v4, %v1213_v4  ;;  %v1205_v51 = vadd.f32 %v2862_v38, %v1204_v24 }
 0xbe1   :  { %v1230_v52 = vadd.f32 %v1226_v46, %v1210_v39  ;;  %v1224_v55 = vmul.f32 0.044715, %v1220_v47  ;;  %v1223_v56 = vmul.f32 %v1219_v48, %v1213_v4  ;;  %v1217_v60 = vmul.f32 %v1205_v51, %v1205_v51 }
 0xbe3   :  { %v1234_v61 = vmul.f32 0.7978846, %v1230_v52  ;;  %v1228_v1 = vadd.f32 %v1224_v55, %v1202_v0  ;;  %v1227_v2 = vmul.f32 0.044715, %v1223_v56  ;;  %v1221_v5 = vmul.f32 %v1217_v60, %v1205_v51 }
 0xbe5   :  { %v1232_v6 = vmul.f32 0.7978846, %v1228_v1  ;;  %v1231_v9 = vadd.f32 %v1227_v2, %v1213_v4  ;;  %v1225_v13 = vmul.f32 0.044715, %v1221_v5  ;;  %3365 = vtanh.f32 %v1234_v61  ;;  %v3267_v2 = vld [vmem:[#allocation5 + $0x5c] ss:$36 sps:$4 sm:$0xff]  }
 0xbe6   :  { %v3265_v5 = vld [vmem:[#allocation5 + $0x58] ss:$36 sps:$4 sm:$0xff]   ;;  %1506 = vmatprep.subr.bf16.mxu0 %v3267_v2 }
 0xbe7   :  { %3367 = vtanh.f32 %v1232_v6  ;;  %v1235_v11 = vmul.f32 0.7978846, %v1231_v9  ;;  %v1229_v21 = vadd.f32 %v1225_v13, %v1205_v51  ;;  %v3270_v6 = vld [vmem:[#allocation5 + $0x14] ss:$36 sps:$4 sm:$0xff]   ;;  %1507 = vmatpush1.bf16.msra.mxu0 %v3265_v5  ;;  %v3271_v13 = vld [vmem:[#allocation5 + $0x60] ss:$36 sps:$4 sm:$0xff]  }
 0xbe8   :  { %v3268_v9 = vld [vmem:[#allocation5 + $0x10] ss:$36 sps:$4 sm:$0xff]   ;;  %1508 = vmatprep.subr.bf16.mxu0 %v3270_v6  ;;  %v3474_v5 = vld [vmem:[%s4381_s3 + $0x28] sm:$0xff] }
 0xbe9   :  { %3369 = vtanh.f32 %v1235_v11  ;;  %v1233_v15 = vmul.f32 0.7978846, %v1229_v21 }
 0xbeb   :  { %3371 = vtanh.f32 %v1233_v15  ;;  %1509 = vmatpush1.bf16.msra.mxu0 %v3268_v9  ;;  %v3475_v9 = vld [vmem:[%s4381_s3] sm:$0xff] }
 0xbec   :  { %3126 = vmatprep.subr.bf16.mxu0 %v3271_v13 }
 0xbf2   :  { %v3366_v7 = vpop.eup %3365 }
 0xbf3   :  { %v1242_v19 = vadd.f32 1.0, %v3366_v7 }
 0xbf4   :  { %v3368_v14 = vpop.eup %3367 }
 0xbf5   :  { %v1240_v17 = vadd.f32 1.0, %v3368_v14  ;;  %v1246_v29 = vmul.f32 0.5, %v1242_v19 }
 0xbf6   :  { %v3370_v18 = vpop.eup %3369 }
 0xbf7   :  { %v1243_v20 = vadd.f32 1.0, %v3370_v18  ;;  %v1244_v50 = vmul.f32 0.5, %v1240_v17  ;;  %v1250_v8 = vmul.f32 %v1246_v29, %v1210_v39 }
 0xbf8   :  { %v3372_v22 = vpop.eup %3371 }
 0xbf9   :  { %v1247_v26 = vmul.f32 0.5, %v1243_v20  ;;  %v1241_v36 = vadd.f32 1.0, %v3372_v22  ;;  %v1248_v57 = vmul.f32 %v1244_v50, %v1202_v0 }
 0xbfb   :  { %v1245_v30 = vmul.f32 0.5, %v1241_v36  ;;  %v1251_v53 = vmul.f32 %v1247_v26, %v1213_v4 }
 0xbfd   :  { %v1249_v23 = vmul.f32 %v1245_v30, %v1205_v51  ;;  %v1253_v33 = vpack.c.bf16 %v1251_v53, %v1250_v8  ;;  %v2876_v30 = vld [vmem:[%s4381_s3 + $0x8f] ss:$0 sm:$0xff] }
 0xbff   :  { %v1252_v49 = vpack.c.bf16 %v1249_v23, %v1248_v57 }
 0xc01   :  { %3122 = vmatprep.mubr.bf16.mxu1 %v1252_v49  ;;  %v2877_v49 = vld [vmem:[%s4381_s3 + $0x90] ss:$0 sm:$0xff] }
 0xc02   :  { %3123 = vmatmul.mubr.bf16.vlgmr.msra.gmra.mxu1 %v1253_v33 }
 0xcc2   :  { %v3124_v58 = vpop.f32.mrf.mxu1 }
 0xcc3   :  { %v1366_v62 = vadd.f32 %v3124_v58, %v2867_v59 }
 0xcc4   :  { %v1357_v31 = vpop.f32.mrf.mxu1 }
 0xcc5   :  { %v1358_v25 = vadd.f32 %v2867_v59, %v1357_v31  ;;  %v3976_v35 = vadd.f32 %v1366_v62, %v3917_v28 }
 0xcc6   :  { %v3125_v44 = vpop.f32.mrf.mxu1 }
 0xcc7   :  { %v3973_v43 = vadd.f32 %v1358_v25, %v3908_v45  ;;  %v1369_v27 = vadd.f32 %v3125_v44, %v2867_v59  ;;  %v1384_v39 = vsel %vm73_vm0, %v3976_v35, 0.0 }
 0xcc8   :  { %v1360_v54 = vpop.f32.mrf.mxu1 }
 0xcc9   :  { %v1361_v37 = vadd.f32 %v2867_v59, %v1360_v54  ;;  %v1378_v3 = vsel %vm73_vm0, %v3973_v43, 0.0  ;;  %v3984_v16 = vadd.f32 %v1369_v27, %v3911_v63  ;;  %v3272_v27 = vld [vmem:[#allocation5 + $0x18] ss:$36 sps:$4 sm:$0xff]  }
 0xcca   :  { %1379 = vadd.xlane.f32.xlu0 %v1378_v3 }
 0xccb   :  { %v3981_v38 = vadd.f32 %v1361_v37, %v3915_v34  ;;  %v1387_v28 = vsel %vm73_vm0, %v3984_v16, 0.0 }
 0xccd   :  { %v1381_v45 = vsel %vm73_vm0, %v3981_v38, 0.0 }
 0xcce   :  { %1382 = vadd.xlane.f32.xlu1 %v1381_v45  ;;  %1385 = vadd.xlane.f32.xlu0 %v1384_v39 }
 0xcd2   :  { %1388 = vadd.xlane.f32.xlu1 %v1387_v28 }
 0xd53   :  { %v1380_v40 = vpop.xlane.xlu0 %1379 }
 0xd54   :  { %v1390_v10 = vmul.f32 0.03125, %v1380_v40  ;;  %v2889_v40 = vld [vmem:[%s4381_s3 + $0x8e] ss:$0 sm:$0xff] }
 0xd56   :  { %v1394_v34 = vsub.f32 %v3973_v43, %v1390_v10 }
 0xd57   :  { %v1383_v0 = vpop.xlane.xlu1 %1382  ;;  %v1386_v41 = vpop.xlane.xlu0 %1385 }
 0xd58   :  { %v1391_v63 = vmul.f32 0.03125, %v1383_v0  ;;  %v1392_v12 = vmul.f32 0.03125, %v1386_v41  ;;  %v1398_v42 = vmul.f32 %v1394_v34, %v1394_v34 }
 0xd5a   :  { %v1395_v4 = vsub.f32 %v3981_v38, %v1391_v63  ;;  %v1396_v24 = vsub.f32 %v3976_v35, %v1392_v12  ;;  %v1402_v46 = vsel %vm73_vm0, %v1398_v42, 0.0 }
 0xd5b   :  { %v1389_v47 = vpop.xlane.xlu1 %1388  ;;  %1403 = vadd.xlane.f32.xlu0 %v1402_v46 }
 0xd5c   :  { %v1393_v48 = vmul.f32 0.03125, %v1389_v47  ;;  %v1399_v51 = vmul.f32 %v1395_v4, %v1395_v4  ;;  %v1400_v52 = vmul.f32 %v1396_v24, %v1396_v24 }
 0xd5e   :  { %v1397_v55 = vsub.f32 %v3984_v16, %v1393_v48  ;;  %v1405_v56 = vsel %vm73_vm0, %v1399_v51, 0.0  ;;  %v1408_v60 = vsel %vm73_vm0, %v1400_v52, 0.0 }
 0xd5f   :  { %1406 = vadd.xlane.f32.xlu1 %v1405_v56  ;;  %1409 = vadd.xlane.f32.xlu0 %v1408_v60 }
 0xd60   :  { %v1401_v61 = vmul.f32 %v1397_v55, %v1397_v55 }
 0xd62   :  { %v1411_v1 = vsel %vm73_vm0, %v1401_v61, 0.0 }
 0xd63   :  { %1412 = vadd.xlane.f32.xlu1 %v1411_v1  ;;  %v3473_v1 = vld [vmem:[%s4381_s3 + $0x20] sm:$0xff] }
 0xde4   :  { %v1404_v11 = vpop.xlane.xlu0 %1403 }
 0xde5   :  { %v1414_v21 = vmul.f32 0.03125, %v1404_v11  ;;  %v3476_v11 = vld [vmem:[%s4381_s3 + $0x8] sm:$0xff] }
 0xde7   :  { %v1418_v15 = vadd.f32 1e-05, %v1414_v21 }
 0xde8   :  { %v1407_v7 = vpop.xlane.xlu1 %1406  ;;  %v1410_v14 = vpop.xlane.xlu0 %1409 }
 0xde9   :  { %3373 = vrsqrt.f32 %v1418_v15  ;;  %v1415_v17 = vmul.f32 0.03125, %v1407_v7  ;;  %v1416_v18 = vmul.f32 0.03125, %v1410_v14  ;;  %v3477_v15 = vld [vmem:[%s4381_s3 + $0x40] sm:$0xff] }
 0xdeb   :  { %v1419_v19 = vadd.f32 1e-05, %v1415_v17  ;;  %v1420_v20 = vadd.f32 1e-05, %v1416_v18 }
 0xdec   :  { %v1413_v22 = vpop.xlane.xlu1 %1412 }
 0xded   :  { %3375 = vrsqrt.f32 %v1419_v19  ;;  %v1417_v26 = vmul.f32 0.03125, %v1413_v22 }
 0xdee   :  { %3377 = vrsqrt.f32 %v1420_v20  ;;  %v3478_v20 = vld [vmem:[%s4381_s3 + $0x48] sm:$0xff] }
 0xdef   :  { %v1421_v36 = vadd.f32 1e-05, %v1417_v26 }
 0xdf1   :  { %3379 = vrsqrt.f32 %v1421_v36 }
 0xdf6   :  { %v3374_v50 = vpop.eup %3373 }
 0xdf7   :  { %v1426_v29 = vmul.f32 %v3374_v50, %v1394_v34 }
 0xdf9   :  { %v1434_v23 = vmul.f32 %v2876_v30, %v1426_v29 }
 0xdfa   :  { %v3376_v53 = vpop.eup %3375 }
 0xdfb   :  { %v1427_v57 = vmul.f32 %v3376_v53, %v1395_v4  ;;  %v3378_v8 = vpop.eup %3377  ;;  %v1442_v59 = vadd.f32 %v2877_v49, %v1434_v23  ;;  %v2888_v4 = vld [vmem:[%s4381_s3 + $0x8d] ss:$0 sm:$0xff] }
 0xdfc   :  { %v1428_v62 = vmul.f32 %v3378_v8, %v1396_v24  ;;  %v3480_v8 = vld [vmem:[%s4381_s3 + $0x38] sm:$0xff] }
 0xdfd   :  { %v1435_v33 = vmul.f32 %v2876_v30, %v1427_v57  ;;  %v3479_v57 = vld [vmem:[%s4381_s3 + $0x30] sm:$0xff] }
 0xdfe   :  { %v3380_v58 = vpop.eup %3379  ;;  %v1436_v37 = vmul.f32 %v2876_v30, %v1428_v62 }
 0xdff   :  { %v1443_v31 = vadd.f32 %v2877_v49, %v1435_v33  ;;  %v1429_v25 = vmul.f32 %v3380_v58, %v1397_v55  ;;  %v3481_v58 = vld [vmem:[%s4381_s3 + $0x10] sm:$0xff] }
 0xe00   :  { %v1444_v45 = vadd.f32 %v2877_v49, %v1436_v37 }
 0xe01   :  { %v1446_v44 = vpack.c.bf16 %v1443_v31, %v1442_v59  ;;  %v1437_v54 = vmul.f32 %v2876_v30, %v1429_v25  ;;  %v3482_v31 = vld [vmem:[%s4381_s3 + $0x50] sm:$0xff]  ;;  %v3483_v25 = vld [vmem:[%s4381_s3 + $0x18] sm:$0xff] }
 0xe03   :  { %2884 = vmatmul.mubr.msk.bf16.vlgmr.msra.gmra.mxu0 %vm73_vm0, %v1446_v44  ;;  %v1445_v3 = vadd.f32 %v2877_v49, %v1437_v54 }
 0xe04   :  { %1536 = vmatprep.mubr.bf16.mxu0 %v3565_v32  ;;  %3127 = vmatpush3.bf16.msra.mxu0 %v3271_v13 }
 0xe05   :  { %3128 = vmatprep.subr.bf16.mxu0 %v3272_v27  ;;  %v1447_v39 = vpack.c.bf16 %v1445_v3, %v1444_v45  ;;  %v3484_v3 = vld [vmem:[%s4381_s3 + $0x58] sm:$0xff] }
 0xe08   :  { %3129 = vmatpush3.bf16.msra.mxu0 %v3272_v27 }
 0xe0b   :  { %2885 = vmatmul.mubr.msk.bf16.gmra.mxu0 %vm73_vm0, %v1447_v39 }
 0xe0c   :  { %3130 = vmatprep.mubr.msk.bf16.mxu0 %vm73_vm0, %v1446_v44 }
 0xe13   :  { %3131 = vmatmul.mubr.msk.bf16.vlgmr.msra.gmra.mxu0 %vm73_vm0, %v1447_v39 }
 0xec3   :  { %v1528_v28 = vpop.f32.mrf.mxu0 }
 0xec4   :  { %v4022_v46 = vadd.f32 %v2888_v4, %v1528_v28 }
 0xec5   :  { %v1530_v10 = vpop.f32.mrf.mxu0 }
 0xec6   :  { %v1646_v34 = vadd.f32 %v2889_v40, %v1530_v10 }
 0xec7   :  { %v1532_v32 = vpop.f32.mrf.mxu0 }
 0xec8   :  { %1654 = vrot.lane.b32.xlu0 %v1646_v34, %s3566_s7  ;;  %v4035_v52 = vadd.f32 %v2888_v4, %v1532_v32  ;;  %v1650_v13 = vmul.f32 %v3475_v9, %v1646_v34 }
 0xec9   :  { %v1534_v0 = vpop.f32.mrf.mxu0 }
 0xeca   :  { %v1647_v41 = vadd.f32 %v2889_v40, %v1534_v0 }
 0xecb   :  { %v1538_v63 = vpop.f32.mrf.mxu0 }
 0xecc   :  { %1670 = vrot.lane.b32.xlu0 %v1646_v34, %s3567_s8  ;;  %1656 = vrot.lane.b32.xlu1 %v1647_v41, %s3566_s7  ;;  %v4027_v48 = vadd.f32 %v2888_v4, %v1538_v63  ;;  %v1651_v21 = vmul.f32 %v3476_v11, %v1647_v41 }
 0xecd   :  { %v1540_v12 = vpop.f32.mrf.mxu0 }
 0xece   :  { %v1648_v42 = vadd.f32 %v2889_v40, %v1540_v12 }
 0xecf   :  { %v1542_v24 = vpop.f32.mrf.mxu0 }
 0xed0   :  { %1672 = vrot.lane.b32.xlu1 %v1647_v41, %s3567_s8  ;;  %1658 = vrot.lane.b32.xlu0 %v1648_v42, %s3566_s7  ;;  %v4041_v55 = vadd.f32 %v2888_v4, %v1542_v24  ;;  %v1652_v59 = vmul.f32 %v3481_v58, %v1648_v42  ;;  %v1605_v41 = vmul.f32 %v3475_v9, %v4022_v46 }
 0xed1   :  { %v1544_v47 = vpop.f32.mrf.mxu0 }
 0xed2   :  { %v1649_v51 = vadd.f32 %v2889_v40, %v1544_v47 }
 0xed3   :  { %v3132_v10 = vpop.f32.mrf.mxu0 }
 0xed4   :  { %1674 = vrot.lane.b32.xlu1 %v1648_v42, %s3567_s8  ;;  %1609 = vrot.lane.b32.xlu0 %v4022_v46, %s3566_s7  ;;  %v1653_v44 = vmul.f32 %v3483_v25, %v1649_v51 }
 0xed5   :  { %v1581_v12 = vpop.f32.mrf.mxu0 }
 0xed8   :  { %1613 = vrot.lane.b32.xlu0 %v4027_v48, %s3566_s7  ;;  %1660 = vrot.lane.b32.xlu1 %v1649_v51, %s3566_s7 }
 0xedc   :  { %1625 = vrot.lane.b32.xlu0 %v4022_v46, %s3567_s8  ;;  %1676 = vrot.lane.b32.xlu1 %v1649_v51, %s3567_s8 }
 0xee0   :  { %1629 = vrot.lane.b32.xlu0 %v4027_v48, %s3567_s8  ;;  %1611 = vrot.lane.b32.xlu1 %v4035_v52, %s3566_s7 }
 0xee4   :  { %1615 = vrot.lane.b32.xlu1 %v4041_v55, %s3566_s7 }
 0xee8   :  { %1627 = vrot.lane.b32.xlu1 %v4035_v52, %s3567_s8 }
 0xeec   :  { %1631 = vrot.lane.b32.xlu1 %v4041_v55, %s3567_s8 }
 0xf3a   :  { %v1655_v56 = vpop.permute.xlu0 %1654 }
 0xf3b   :  { %v1662_v2 = vmul.f32 %v3473_v1, %v1655_v56  ;;  %v1606_v56 = vmul.f32 %v3476_v11, %v4035_v52 }
 0xf3d   :  { %v1666_v18 = vadd.f32 %v1662_v2, %v1650_v13 }
 0xf3e   :  { %v1657_v60 = vpop.permute.xlu1 %1656  ;;  %v1671_v61 = vpop.permute.xlu0 %1670 }
 0xf3f   :  { %v1663_v6 = vmul.f32 %v3474_v5, %v1657_v60  ;;  %v1678_v7 = vmul.f32 %v3477_v15, %v1671_v61  ;;  %v3133_v60 = vpop.f32.mrf.mxu0  ;;  %v1607_v61 = vmul.f32 %v3481_v58, %v4027_v48  ;;  %v3486_v48 = vld [vmem:[%s4381_s3 + $0x81] ss:$0 sm:$0xff] }
 0xf41   :  { %v1667_v19 = vadd.f32 %v1663_v6, %v1651_v21  ;;  %v1682_v26 = vadd.f32 %v1678_v7, %v1666_v18 }
 0xf42   :  { %v1673_v14 = vpop.permute.xlu1 %1672  ;;  %v1659_v17 = vpop.permute.xlu0 %1658 }
 0xf43   :  { %v1679_v22 = vmul.f32 %v3478_v20, %v1673_v14  ;;  %v1664_v23 = vmul.f32 %v3479_v57, %v1659_v17  ;;  %v3485_v14 = vld [vmem:[%s4381_s3 + $0x80] ss:$0 sm:$0xff] }
 0xf45   :  { %v1683_v36 = vadd.f32 %v1679_v22, %v1667_v19  ;;  %v1668_v27 = vadd.f32 %v1664_v23, %v1652_v59 }
 0xf46   :  { %v1675_v50 = vpop.permute.xlu1 %1674  ;;  %v1610_v29 = vpop.permute.xlu0 %1609 }
 0xf47   :  { %v4067_v30 = vpack.c.bf16 %v1683_v36, %v1682_v26  ;;  %v1680_v62 = vmul.f32 %v3482_v31, %v1675_v50  ;;  %v1617_v32 = vmul.f32 %v3473_v1, %v1610_v29  ;;  %v3488_v29 = vld [vmem:[%s4381_s3 + $0x83] ss:$0 sm:$0xff] }
 0xf49   :  { %v1684_v39 = vadd.f32 %v1680_v62, %v1668_v27  ;;  %v1621_v4 = vadd.f32 %v1617_v32, %v1605_v41  ;;  %v1584_v27 = vpop.f32.mrf.mxu0  ;;  %v4148_v41 = vld [vmem:[%s4381_s3 + $0x60] sm:$0xff] }
 0xf4a   :  { %v1661_v53 = vpop.permute.xlu1 %1660  ;;  %v1614_v33 = vpop.permute.xlu0 %1613 }
 0xf4b   :  { %v1665_v49 = vmul.f32 %v3480_v8, %v1661_v53  ;;  %v1619_v51 = vmul.f32 %v3479_v57, %v1614_v33 }
 0xf4d   :  { %v1669_v37 = vadd.f32 %v1665_v49, %v1653_v44  ;;  %v1623_v21 = vadd.f32 %v1619_v51, %v1607_v61  ;;  %v4161_v51 = vld [vmem:[%s4381_s3 + $0x68] sm:$0xff] }
 0xf4e   :  { %v1677_v54 = vpop.permute.xlu1 %1676  ;;  %v1626_v40 = vpop.permute.xlu0 %1625 }
 0xf4f   :  { %v1681_v45 = vmul.f32 %v3484_v3, %v1677_v54  ;;  %v1633_v63 = vmul.f32 %v3477_v15, %v1626_v40  ;;  %v4099_v15 = vpack.c.bf16 %v3133_v60, %v3132_v10  ;;  %v4140_v10 = vpack.c.bf16 %v1584_v27, %v1581_v12  ;;  %v4154_v12 = vld [vmem:[%s4381_s3 + $0x70] sm:$0xff] }
 0xf51   :  { %v1685_v28 = vadd.f32 %v1681_v45, %v1669_v37  ;;  %v1637_v46 = vadd.f32 %v1633_v63, %v1621_v4 }
 0xf52   :  { %v1612_v34 = vpop.permute.xlu1 %1611  ;;  %v1630_v47 = vpop.permute.xlu0 %1629 }
 0xf53   :  { %v4087_v0 = vpack.c.bf16 %v1685_v28, %v1684_v39  ;;  %v1618_v24 = vmul.f32 %v3474_v5, %v1612_v34  ;;  %v1635_v1 = vmul.f32 %v3482_v31, %v1630_v47  ;;  %v1608_v5 = vmul.f32 %v3483_v25, %v4041_v55  ;;  %v3487_v55 = vld [vmem:[%s4381_s3 + $0x82] ss:$0 sm:$0xff] }
 0xf54   :  { %v1688_v17 = vmul.f32 %v3485_v14, %v1637_v46  ;;  %v1791_v52 = vmul.f32 %v3486_v48, %v1637_v46  ;;  %v4120_v53 = vmul.f32 %v3488_v29, %v1637_v46 }
 0xf55   :  { %3134 = vmatprep.subr.bf16.mxu0 %v4087_v0  ;;  %3142 = vmatprep.subr.bf16.mxu1 %v4087_v0  ;;  %v1622_v9 = vadd.f32 %v1618_v24, %v1606_v56  ;;  %v1639_v11 = vadd.f32 %v1635_v1, %v1623_v21  ;;  %v4167_v56 = vld [vmem:[%s4381_s3 + $0x78] sm:$0xff] }
 0xf56   :  { %v1616_v42 = vpop.permute.xlu1 %1615  ;;  %3135 = vmatpush3.bf16.xpose.msra.mxu0 %v4087_v0  ;;  %3143 = vmatpush3.bf16.xpose.msra.mxu1 %v4087_v0 }
 0xf57   :  { %3136 = vmatprep.subr.bf16.mxu0 %v4067_v30  ;;  %3144 = vmatprep.subr.bf16.mxu1 %v4067_v30  ;;  %v1620_v2 = vmul.f32 %v3480_v8, %v1616_v42  ;;  %v1690_v58 = vmul.f32 %v3485_v14, %v1639_v11  ;;  %v1793_v59 = vmul.f32 %v3486_v48, %v1639_v11 }
 0xf58   :  { %v4126_v31 = vmul.f32 %v3487_v55, %v1639_v11  ;;  %v4132_v37 = vmul.f32 %v3488_v29, %v1639_v11 }
 0xf59   :  { %v1624_v18 = vadd.f32 %v1620_v2, %v1608_v5 }
 0xf5a   :  { %v1628_v6 = vpop.permute.xlu1 %1627 }
 0xf5b   :  { %v1634_v13 = vmul.f32 %v3478_v20, %v1628_v6  ;;  %v4112_v20 = vmul.f32 %v3487_v55, %v1637_v46 }
 0xf5d   :  { %v1638_v7 = vadd.f32 %v1634_v13, %v1622_v9 }
 0xf5e   :  { %v1632_v19 = vpop.permute.xlu1 %1631  ;;  %3137 = vmatpush3.bf16.xpose.msra.mxu0 %v4067_v30  ;;  %3145 = vmatpush3.bf16.xpose.msra.mxu1 %v4067_v30 }
 0xf5f   :  { %v1636_v22 = vmul.f32 %v3484_v3, %v1632_v19  ;;  %3158 = vmatprep.subr.bf16.mxu1 %v4099_v15  ;;  %v1689_v26 = vmul.f32 %v3485_v14, %v1638_v7  ;;  %v1792_v36 = vmul.f32 %v3486_v48, %v1638_v7  ;;  %v4115_v50 = vmul.f32 %v3487_v55, %v1638_v7 }
 0xf60   :  { %v4122_v57 = vmul.f32 %v3488_v29, %v1638_v7 }
 0xf61   :  { %v1640_v23 = vadd.f32 %v1636_v22, %v1624_v18  ;;  %v1692_v8 = vpack.c.bf16 %v1689_v26, %v1688_v17  ;;  %v1795_v49 = vpack.c.bf16 %v1792_v36, %v1791_v52  ;;  %v2014_v33 = vpack.c.bf16 %v4115_v50, %v4112_v20 }
 0xf62   :  { %v2180_v62 = vpack.c.bf16 %v4122_v57, %v4120_v53 }
 0xf63   :  { %3138 = vmatprep.mubr.bf16.mxu0 %v1692_v8  ;;  %3146 = vmatprep.mubr.bf16.mxu1 %v1795_v49  ;;  %v1691_v25 = vmul.f32 %v3485_v14, %v1640_v23  ;;  %v1794_v44 = vmul.f32 %v3486_v48, %v1640_v23  ;;  %v4130_v54 = vmul.f32 %v3487_v55, %v1640_v23 }
 0xf64   :  { %v4134_v3 = vmul.f32 %v3488_v29, %v1640_v23 }
 0xf65   :  { %v1693_v45 = vpack.c.bf16 %v1691_v25, %v1690_v58  ;;  %v1796_v39 = vpack.c.bf16 %v1794_v44, %v1793_v59  ;;  %v2015_v28 = vpack.c.bf16 %v4130_v54, %v4126_v31 }
 0xf66   :  { %v2181_v40 = vpack.c.bf16 %v4134_v3, %v4132_v37 }
 0xf67   :  { %3139 = vmatmul.mubr.bf16.vlgmr.msra.gmra.mxu0 %v1693_v45  ;;  %3147 = vmatmul.mubr.bf16.vlgmr.msra.gmra.mxu1 %v1796_v39 }
 0xf68   :  { %3159 = vmatpush3.bf16.msra.mxu1 %v4099_v15 }
 0xf69   :  { %3160 = vmatprep.subr.bf16.mxu1 %v4140_v10 }
 0xf6c   :  { %3161 = vmatpush3.bf16.msra.mxu1 %v4140_v10 }
0x1027   :  { %v3148_v34 = vpop.f32.mrf.mxu1  ;;  %v3140_v49 = vpop.f32.mrf.mxu0 }
0x1028   :  { %v1840_v4 = vadd.f32 %v4154_v12, %v3148_v34  ;;  %v1737_v45 = vadd.f32 %v4154_v12, %v3140_v49 }
0x1029   :  { %v1831_v32 = vpop.f32.mrf.mxu1  ;;  %v1728_v58 = vpop.f32.mrf.mxu0 }
0x102a   :  { %v1832_v63 = vadd.f32 %v4148_v41, %v1831_v32  ;;  %v1852_v1 = vsel %vm73_vm0, %v1840_v4, -inf  ;;  %v1729_v27 = vadd.f32 %v4148_v41, %v1728_v58 }
0x102b   :  { %v3149_v42 = vpop.f32.mrf.mxu1  ;;  %v3141_v59 = vpop.f32.mrf.mxu0 }
0x102c   :  { %v1846_v24 = vsel %vm73_vm0, %v1832_v63, -inf  ;;  %v1843_v60 = vadd.f32 %v4167_v56, %v3149_v42  ;;  %v1740_v34 = vadd.f32 %v4167_v56, %v3141_v59  ;;  %v1743_v32 = vsel %vm73_vm0, %v1729_v27, -inf }
0x102d   :  { %v1834_v47 = vpop.f32.mrf.mxu1  ;;  %1847 = vmax.xlane.f32.xlu0 %v1846_v24  ;;  %v1731_v25 = vpop.f32.mrf.mxu0 }
0x102e   :  { %v1835_v46 = vadd.f32 %v4161_v51, %v1834_v47  ;;  %v1855_v2 = vsel %vm73_vm0, %v1843_v60, -inf  ;;  %v1732_v44 = vadd.f32 %v4161_v51, %v1731_v25  ;;  %v1752_v42 = vsel %vm73_vm0, %v1740_v34, -inf }
0x1030   :  { %v1849_v61 = vsel %vm73_vm0, %v1835_v46, -inf  ;;  %v1746_v39 = vsel %vm73_vm0, %v1732_v44, -inf }
0x1031   :  { %1850 = vmax.xlane.f32.xlu1 %v1849_v61  ;;  %1853 = vmax.xlane.f32.xlu0 %v1852_v1 }
0x1035   :  { %1856 = vmax.xlane.f32.xlu0 %v1855_v2 }
0x10b6   :  { %v1848_v6 = vpop.xlane.xlu0 %1847 }
0x10b7   :  { %v1858_v9 = vsub.f32 %v1832_v63, %v1848_v6  ;;  %v1749_v63 = vsel %vm73_vm0, %v1737_v45, -inf }
0x10b9   :  { %v1862_v17 = vmul.f32 1.442695, %v1858_v9 }
0x10ba   :  { %v1851_v13 = vpop.xlane.xlu1 %1850  ;;  %v1854_v21 = vpop.xlane.xlu0 %1853 }
0x10bb   :  { %v1860_v5 = vsub.f32 %v1840_v4, %v1854_v21  ;;  %v1859_v7 = vsub.f32 %v1835_v46, %v1851_v13 }
0x10bd   :  { %v1866_v14 = vmul.f32 1.442695, %v1860_v5  ;;  %v1864_v11 = vmul.f32 1.442695, %v1859_v7 }
0x10be   :  { %v1857_v48 = vpop.xlane.xlu0 %1856 }
0x10bf   :  { %v1861_v52 = vsub.f32 %v1843_v60, %v1857_v48  ;;  %3381 = vpow2.f32 %v1866_v14 }
0x10c0   :  { %3383 = vpow2.f32 %v1862_v17 }
0x10c1   :  { %v1868_v18 = vmul.f32 1.442695, %v1861_v52 }
0x10c3   :  { %3385 = vpow2.f32 %v1868_v18 }
0x10c4   :  { %3387 = vpow2.f32 %v1864_v11 }
0x10cc   :  { %v3382_v19 = vpop.eup %3381 }
0x10cd   :  { %v1876_v55 = vsel %vm73_vm0, %v3382_v19, 0.0  ;;  %v3384_v22 = vpop.eup %3383 }
0x10ce   :  { %1877 = vadd.xlane.f32.xlu0 %v1876_v55  ;;  %v1870_v23 = vsel %vm73_vm0, %v3384_v22, 0.0 }
0x10d0   :  { %v3386_v26 = vpop.eup %3385 }
0x10d1   :  { %v1879_v36 = vsel %vm73_vm0, %v3386_v26, 0.0  ;;  %v3388_v29 = vpop.eup %3387 }
0x10d2   :  { %1880 = vadd.xlane.f32.xlu1 %v1879_v36  ;;  %1871 = vadd.xlane.f32.xlu0 %v1870_v23  ;;  %v1873_v8 = vsel %vm73_vm0, %v3388_v29, 0.0 }
0x10d6   :  { %1874 = vadd.xlane.f32.xlu1 %v1873_v8 }
0x10e7   :  { %1894 = vrot.lane.b32.xlu1 %v4140_v10, %s3568_s0 }
0x10e8   :  { %1896 = vrot.lane.b32.xlu0 %v4099_v15, %s3568_s0 }
0x1107   :  { %1747 = vmax.xlane.f32.xlu0 %v1746_v39 }
0x110b   :  { %1744 = vmax.xlane.f32.xlu1 %v1743_v32  ;;  %1750 = vmax.xlane.f32.xlu0 %v1749_v63 }
0x110f   :  { %1753 = vmax.xlane.f32.xlu1 %v1752_v42 }
0x1157   :  { %v1878_v4 = vpop.xlane.xlu0 %1877 }
0x115b   :  { %v1881_v24 = vpop.xlane.xlu1 %1880  ;;  %v1872_v47 = vpop.xlane.xlu0 %1871 }
0x115c   :  { %3389 = vrcp.f32 %v1881_v24 }
0x115d   :  { %3391 = vrcp.f32 %v1872_v47 }
0x115e   :  { %3393 = vrcp.f32 %v1878_v4 }
0x115f   :  { %v1875_v46 = vpop.xlane.xlu1 %1874  ;;  %v1897_v60 = vpop.permute.xlu0 %1896 }
0x1160   :  { %3395 = vrcp.f32 %v1875_v46  ;;  %3150 = vmatprep.subr.bf16.mxu0 %v1897_v60 }
0x1161   :  { %3151 = vmatpush3.bf16.msra.mxu0 %v1897_v60 }
0x1163   :  { %v1895_v61 = vpop.permute.xlu1 %1894 }
0x1164   :  { %3152 = vmatprep.subr.bf16.mxu0 %v1895_v61 }
0x1165   :  { %3153 = vmatpush3.bf16.msra.mxu0 %v1895_v61 }
0x1166   :  { %3166 = vmatprep.subr.bf16.mxu0 %v4087_v0 }
0x1169   :  { %v3390_v1 = vpop.eup %3389 }
0x116a   :  { %v3392_v2 = vpop.eup %3391  ;;  %v1889_v13 = vmul.f32 %v3390_v1, %v3386_v26 }
0x116b   :  { %v3394_v6 = vpop.eup %3393  ;;  %v1886_v21 = vmul.f32 %v3392_v2, %v3384_v22 }
0x116c   :  { %v1888_v7 = vmul.f32 %v3394_v6, %v3382_v19 }
0x116d   :  { %v3396_v9 = vpop.eup %3395 }
0x116e   :  { %v1887_v5 = vmul.f32 %v3396_v9, %v3388_v29  ;;  %v1891_v17 = vpack.c.bf16 %v1889_v13, %v1888_v7 }
0x1170   :  { %v1890_v14 = vpack.c.bf16 %v1887_v5, %v1886_v21 }
0x1172   :  { %3154 = vmatprep.mubr.msk.bf16.mxu0 %vm73_vm0, %v1890_v14 }
0x1173   :  { %3155 = vmatmul.mubr.msk.bf16.vlgmr.msra.gmra.mxu0 %vm73_vm0, %v1891_v17 }
0x1174   :  { %3167 = vmatpush3.bf16.xpose.msra.mxu0 %v4087_v0  ;;  %3170 = vmatprep.mubr.bf16.mxu0 %v2014_v33 }
0x1175   :  { %3168 = vmatprep.subr.bf16.mxu0 %v4067_v30 }
0x117c   :  { %3169 = vmatpush3.bf16.xpose.msra.mxu0 %v4067_v30 }
0x1183   :  { %3171 = vmatmul.mubr.bf16.vlgmr.msra.gmra.mxu0 %v2015_v28 }
0x1190   :  { %v1748_v48 = vpop.xlane.xlu0 %1747 }
0x1191   :  { %v1756_v22 = vsub.f32 %v1732_v44, %v1748_v48 }
0x1193   :  { %v1761_v36 = vmul.f32 1.442695, %v1756_v22 }
0x1194   :  { %v1745_v52 = vpop.xlane.xlu1 %1744  ;;  %v1751_v19 = vpop.xlane.xlu0 %1750 }
0x1195   :  { %v1755_v18 = vsub.f32 %v1729_v27, %v1745_v52  ;;  %v1757_v26 = vsub.f32 %v1737_v45, %v1751_v19 }
0x1197   :  { %v1759_v20 = vmul.f32 1.442695, %v1755_v18  ;;  %v1763_v29 = vmul.f32 1.442695, %v1757_v26 }
0x1198   :  { %v1754_v50 = vpop.xlane.xlu1 %1753 }
0x1199   :  { %3397 = vpow2.f32 %v1759_v20  ;;  %v1758_v23 = vsub.f32 %v1740_v34, %v1754_v50 }
0x119a   :  { %3399 = vpow2.f32 %v1761_v36 }
0x119b   :  { %3401 = vpow2.f32 %v1763_v29  ;;  %v1765_v28 = vmul.f32 1.442695, %v1758_v23 }
0x119d   :  { %3403 = vpow2.f32 %v1765_v28 }
0x11a6   :  { %v3398_v32 = vpop.eup %3397 }
0x11a7   :  { %v3400_v63 = vpop.eup %3399  ;;  %v1767_v4 = vsel %vm73_vm0, %v3398_v32, 0.0 }
0x11a8   :  { %v3402_v24 = vpop.eup %3401  ;;  %v1770_v47 = vsel %vm73_vm0, %v3400_v63, 0.0 }
0x11a9   :  { %v1773_v46 = vsel %vm73_vm0, %v3402_v24, 0.0 }
0x11aa   :  { %v3404_v60 = vpop.eup %3403 }
0x11ab   :  { %v1776_v61 = vsel %vm73_vm0, %v3404_v60, 0.0 }
0x1233   :  { %v4201_v11 = vpop.f32.mrf.mxu0 }
0x1235   :  { %v4203_v55 = vpop.f32.mrf.mxu0 }
0x1237   :  { %v4205_v33 = vpop.f32.mrf.mxu0 }
0x1239   :  { %v4207_v31 = vpop.f32.mrf.mxu0 }
0x1243   :  { %v3172_v54 = vpop.f32.mrf.mxu0 }
0x1244   :  { %v2059_v59 = vadd.f32 %v4154_v12, %v3172_v54 }
0x1245   :  { %v2050_v8 = vpop.f32.mrf.mxu0 }
0x1246   :  { %v2051_v49 = vadd.f32 %v4148_v41, %v2050_v8  ;;  %v2071_v39 = vsel %vm73_vm0, %v2059_v59, -inf }
0x1247   :  { %v3173_v58 = vpop.f32.mrf.mxu0 }
0x1248   :  { %v2065_v25 = vsel %vm73_vm0, %v2051_v49, -inf  ;;  %v2062_v45 = vadd.f32 %v4167_v56, %v3173_v58 }
0x1249   :  { %v2053_v44 = vpop.f32.mrf.mxu0  ;;  %2066 = vmax.xlane.f32.xlu0 %v2065_v25 }
0x124a   :  { %v2054_v27 = vadd.f32 %v4161_v51, %v2053_v44  ;;  %v2074_v42 = vsel %vm73_vm0, %v2062_v45, -inf }
0x124c   :  { %v2068_v34 = vsel %vm73_vm0, %v2054_v27, -inf }
0x124d   :  { %2072 = vmax.xlane.f32.xlu0 %v2071_v39  ;;  %2069 = vmax.xlane.f32.xlu1 %v2068_v34 }
0x1251   :  { %2075 = vmax.xlane.f32.xlu1 %v2074_v42  ;;  %1768 = vadd.xlane.f32.xlu0 %v1767_v4 }
0x1255   :  { %1771 = vadd.xlane.f32.xlu1 %v1770_v47  ;;  %1774 = vadd.xlane.f32.xlu0 %v1773_v46 }
0x1259   :  { %1777 = vadd.xlane.f32.xlu1 %v1776_v61 }
0x12d2   :  { %v2067_v1 = vpop.xlane.xlu0 %2066 }
0x12d3   :  { %v2077_v2 = vsub.f32 %v2051_v49, %v2067_v1 }
0x12d5   :  { %v2081_v5 = vmul.f32 1.442695, %v2077_v2 }
0x12d6   :  { %v2073_v6 = vpop.xlane.xlu0 %2072  ;;  %v2070_v9 = vpop.xlane.xlu1 %2069 }
0x12d7   :  { %v2079_v13 = vsub.f32 %v2059_v59, %v2073_v6  ;;  %v2078_v21 = vsub.f32 %v2054_v27, %v2070_v9 }
0x12d9   :  { %v2085_v7 = vmul.f32 1.442695, %v2079_v13  ;;  %v2083_v14 = vmul.f32 1.442695, %v2078_v21 }
0x12da   :  { %v1769_v17 = vpop.xlane.xlu0 %1768  ;;  %v2076_v48 = vpop.xlane.xlu1 %2075 }
0x12db   :  { %3405 = vpow2.f32 %v2085_v7  ;;  %v2080_v52 = vsub.f32 %v2062_v45, %v2076_v48 }
0x12dc   :  { %3407 = vpow2.f32 %v2081_v5 }
0x12dd   :  { %3409 = vpow2.f32 %v2083_v14  ;;  %v2087_v18 = vmul.f32 1.442695, %v2080_v52 }
0x12de   :  { %3411 = vrcp.f32 %v1769_v17  ;;  %v1775_v19 = vpop.xlane.xlu0 %1774  ;;  %v1772_v22 = vpop.xlane.xlu1 %1771 }
0x12df   :  { %3413 = vpow2.f32 %v2087_v18 }
0x12e0   :  { %3415 = vrcp.f32 %v1775_v19 }
0x12e1   :  { %3417 = vrcp.f32 %v1772_v22 }
0x12e2   :  { %v1778_v26 = vpop.xlane.xlu1 %1777 }
0x12e3   :  { %3419 = vrcp.f32 %v1778_v26 }
0x12e8   :  { %v3406_v20 = vpop.eup %3405 }
0x12e9   :  { %v3408_v50 = vpop.eup %3407  ;;  %v2095_v36 = vsel %vm73_vm0, %v3406_v20, 0.0 }
0x12ea   :  { %v3410_v29 = vpop.eup %3409  ;;  %2096 = vadd.xlane.f32.xlu0 %v2095_v36  ;;  %v2089_v8 = vsel %vm73_vm0, %v3408_v50, 0.0 }
0x12eb   :  { %v3412_v23 = vpop.eup %3411  ;;  %v2092_v45 = vsel %vm73_vm0, %v3410_v29, 0.0 }
0x12ec   :  { %v3414_v54 = vpop.eup %3413  ;;  %v1783_v59 = vmul.f32 %v3412_v23, %v3398_v32 }
0x12ed   :  { %v3416_v28 = vpop.eup %3415  ;;  %v2098_v49 = vsel %vm73_vm0, %v3414_v54, 0.0 }
0x12ee   :  { %v3418_v58 = vpop.eup %3417  ;;  %2090 = vadd.xlane.f32.xlu0 %v2089_v8  ;;  %2099 = vadd.xlane.f32.xlu1 %v2098_v49  ;;  %v1785_v39 = vmul.f32 %v3416_v28, %v3402_v24 }
0x12ef   :  { %v1784_v25 = vmul.f32 %v3418_v58, %v3400_v63 }
0x12f0   :  { %v3420_v44 = vpop.eup %3419 }
0x12f1   :  { %v1789_v27 = vpack.c.bf16 %v1784_v25, %v1783_v59  ;;  %v1786_v34 = vmul.f32 %v3420_v44, %v3404_v60 }
0x12f2   :  { %2093 = vadd.xlane.f32.xlu1 %v2092_v45 }
0x12f3   :  { %3162 = vmatprep.mubr.msk.bf16.mxu1 %vm73_vm0, %v1789_v27  ;;  %v1790_v42 = vpack.c.bf16 %v1786_v34, %v1785_v39 }
0x12f5   :  { %3163 = vmatmul.mubr.msk.bf16.vlgmr.msra.gmra.mxu1 %vm73_vm0, %v1790_v42 }
0x1303   :  { %2111 = vrot.lane.b32.xlu1 %v4140_v10, %s3569_s1 }
0x1304   :  { %2113 = vrot.lane.b32.xlu0 %v4099_v15, %s3569_s1 }
0x1373   :  { %v2097_v32 = vpop.xlane.xlu0 %2096 }
0x1377   :  { %v2091_v63 = vpop.xlane.xlu0 %2090  ;;  %v2100_v4 = vpop.xlane.xlu1 %2099 }
0x1378   :  { %3421 = vrcp.f32 %v2100_v4 }
0x1379   :  { %3423 = vrcp.f32 %v2091_v63 }
0x137a   :  { %3425 = vrcp.f32 %v2097_v32 }
0x137b   :  { %v2114_v24 = vpop.permute.xlu0 %2113  ;;  %v2094_v47 = vpop.xlane.xlu1 %2093 }
0x137c   :  { %3427 = vrcp.f32 %v2094_v47  ;;  %3174 = vmatprep.subr.bf16.mxu1 %v2114_v24 }
0x137d   :  { %3175 = vmatpush3.bf16.msra.mxu1 %v2114_v24 }
0x137f   :  { %v2112_v46 = vpop.permute.xlu1 %2111 }
0x1380   :  { %3176 = vmatprep.subr.bf16.mxu1 %v2112_v46 }
0x1381   :  { %3177 = vmatpush3.bf16.msra.mxu1 %v2112_v46 }
0x1382   :  { %3182 = vmatprep.subr.bf16.mxu1 %v4087_v0 }
0x1385   :  { %v3422_v60 = vpop.eup %3421 }
0x1386   :  { %v3424_v61 = vpop.eup %3423  ;;  %v2108_v6 = vmul.f32 %v3422_v60, %v3414_v54 }
0x1387   :  { %v3426_v1 = vpop.eup %3425  ;;  %v2105_v9 = vmul.f32 %v3424_v61, %v3408_v50 }
0x1388   :  { %v2107_v21 = vmul.f32 %v3426_v1, %v3406_v20 }
0x1389   :  { %v3428_v2 = vpop.eup %3427 }
0x138a   :  { %v2106_v13 = vmul.f32 %v3428_v2, %v3410_v29  ;;  %v2110_v7 = vpack.c.bf16 %v2108_v6, %v2107_v21 }
0x138c   :  { %v2109_v5 = vpack.c.bf16 %v2106_v13, %v2105_v9 }
0x138e   :  { %3178 = vmatprep.mubr.msk.bf16.mxu1 %vm73_vm0, %v2109_v5 }
0x138f   :  { %3179 = vmatmul.mubr.msk.bf16.vlgmr.msra.gmra.mxu1 %vm73_vm0, %v2110_v7 }
0x1390   :  { %3183 = vmatpush3.bf16.xpose.msra.mxu1 %v4087_v0  ;;  %3186 = vmatprep.mubr.bf16.mxu1 %v2180_v62 }
0x1391   :  { %3184 = vmatprep.subr.bf16.mxu1 %v4067_v30 }
0x1398   :  { %3185 = vmatpush3.bf16.xpose.msra.mxu1 %v4067_v30 }
0x139f   :  { %3187 = vmatmul.mubr.bf16.vlgmr.msra.gmra.mxu1 %v2181_v40 }
0x13b5   :  { %v3164_v14 = vpop.f32.mrf.mxu1 }
0x13b6   :  { %v2004_v18 = vadd.f32 %v3164_v14, %v4201_v11 }
0x13b7   :  { %v1995_v17 = vpop.f32.mrf.mxu1 }
0x13b8   :  { %v1996_v19 = vadd.f32 %v1995_v17, %v4203_v55 }
0x13b9   :  { %v3165_v48 = vpop.f32.mrf.mxu1 }
0x13ba   :  { %v2007_v62 = vadd.f32 %v3165_v48, %v4205_v33 }
0x13bb   :  { %v4243_v52 = vpop.f32.mrf.mxu1 }
0x144f   :  { %v3180_v0 = vpop.f32.mrf.mxu1 }
0x1450   :  { %v4247_v53 = vadd.f32 %v3180_v0, %v2004_v18 }
0x1451   :  { %v2157_v57 = vpop.f32.mrf.mxu1 }
0x1452   :  { %v4250_v30 = vadd.f32 %v2157_v57, %v1996_v19  ;;  %v1999_v19 = vadd.f32 %v4243_v52, %v4207_v31 }
0x1453   :  { %v3181_v22 = vpop.f32.mrf.mxu1 }
0x1454   :  { %v4252_v37 = vadd.f32 %v3181_v22, %v2007_v62 }
0x1455   :  { %v4254_v3 = vpop.f32.mrf.mxu1 }
0x1456   :  { %v2173_v22 = vadd.f32 %v4254_v3, %v1999_v19 }
0x145f   :  { %v3188_v40 = vpop.f32.mrf.mxu1 }
0x1460   :  { %v2225_v29 = vadd.f32 %v4154_v12, %v3188_v40 }
0x1461   :  { %v2216_v26 = vpop.f32.mrf.mxu1 }
0x1462   :  { %v2217_v20 = vadd.f32 %v4148_v41, %v2216_v26  ;;  %v2237_v28 = vsel %vm73_vm0, %v2225_v29, -inf }
0x1463   :  { %v3189_v11 = vpop.f32.mrf.mxu1 }
0x1464   :  { %v2228_v50 = vadd.f32 %v4167_v56, %v3189_v11  ;;  %v2231_v55 = vsel %vm73_vm0, %v2217_v20, -inf  ;;  %v2898_v11 = vld [vmem:[%s4381_s3 + $0x93] ss:$0 sm:$0xff] }
0x1465   :  { %v2219_v36 = vpop.f32.mrf.mxu1  ;;  %2232 = vmax.xlane.f32.xlu1 %v2231_v55 }
0x1466   :  { %v2220_v33 = vadd.f32 %v4161_v51, %v2219_v36  ;;  %v2240_v54 = vsel %vm73_vm0, %v2228_v50, -inf }
0x1468   :  { %v2234_v23 = vsel %vm73_vm0, %v2220_v33, -inf }
0x1469   :  { %2235 = vmax.xlane.f32.xlu0 %v2234_v23  ;;  %2241 = vmax.xlane.f32.xlu1 %v2240_v54 }
0x146d   :  { %2238 = vmax.xlane.f32.xlu0 %v2237_v28 }
0x14ee   :  { %v2233_v41 = vpop.xlane.xlu1 %2232 }
0x14ef   :  { %v2243_v59 = vsub.f32 %v2217_v20, %v2233_v41 }
0x14f1   :  { %v2247_v12 = vmul.f32 1.442695, %v2243_v59 }
0x14f2   :  { %v2236_v8 = vpop.xlane.xlu0 %2235  ;;  %v2242_v56 = vpop.xlane.xlu1 %2241 }
0x14f3   :  { %v2244_v49 = vsub.f32 %v2220_v33, %v2236_v8  ;;  %v2246_v58 = vsub.f32 %v2228_v50, %v2242_v56 }
0x14f5   :  { %v2253_v25 = vmul.f32 1.442695, %v2246_v58  ;;  %v2249_v44 = vmul.f32 1.442695, %v2244_v49 }
0x14f6   :  { %v2239_v51 = vpop.xlane.xlu0 %2238 }
0x14f7   :  { %v2245_v27 = vsub.f32 %v2225_v29, %v2239_v51  ;;  %3429 = vpow2.f32 %v2253_v25 }
0x14f8   :  { %3431 = vpow2.f32 %v2249_v44 }
0x14f9   :  { %v2251_v45 = vmul.f32 1.442695, %v2245_v27 }
0x14fb   :  { %3433 = vpow2.f32 %v2251_v45 }
0x14fc   :  { %3435 = vpow2.f32 %v2247_v12 }
0x1504   :  { %v3430_v39 = vpop.eup %3429 }
0x1505   :  { %v2264_v34 = vsel %vm73_vm0, %v3430_v39, 0.0  ;;  %v3432_v42 = vpop.eup %3431 }
0x1506   :  { %2265 = vadd.xlane.f32.xlu1 %v2264_v34  ;;  %v2258_v24 = vsel %vm73_vm0, %v3432_v42, 0.0 }
0x1508   :  { %v3434_v32 = vpop.eup %3433 }
0x1509   :  { %v2261_v63 = vsel %vm73_vm0, %v3434_v32, 0.0  ;;  %v3436_v4 = vpop.eup %3435 }
0x150a   :  { %2262 = vadd.xlane.f32.xlu0 %v2261_v63  ;;  %2259 = vadd.xlane.f32.xlu1 %v2258_v24  ;;  %v2255_v47 = vsel %vm73_vm0, %v3436_v4, 0.0  ;;  %v3274_v63 = vld [vmem:[#allocation5 + $0x1c] ss:$36 sps:$4 sm:$0xff]  }
0x150e   :  { %2256 = vadd.xlane.f32.xlu0 %v2255_v47 }
0x151b   :  { %2277 = vrot.lane.b32.xlu1 %v4140_v10, %s3570_s29 }
0x1524   :  { %2279 = vrot.lane.b32.xlu0 %v4099_v15, %s3570_s29 }
0x158f   :  { %v2266_v46 = vpop.xlane.xlu1 %2265 }
0x1593   :  { %v2263_v60 = vpop.xlane.xlu0 %2262  ;;  %v2260_v61 = vpop.xlane.xlu1 %2259 }
0x1594   :  { %3437 = vrcp.f32 %v2263_v60 }
0x1595   :  { %3439 = vrcp.f32 %v2260_v61 }
0x1596   :  { %3441 = vrcp.f32 %v2266_v46 }
0x1597   :  { %v2257_v1 = vpop.xlane.xlu0 %2256  ;;  %v2278_v6 = vpop.permute.xlu1 %2277 }
0x1598   :  { %3443 = vrcp.f32 %v2257_v1 }
0x159b   :  { %v2280_v2 = vpop.permute.xlu0 %2279 }
0x159c   :  { %3190 = vmatprep.subr.bf16.mxu0 %v2280_v2 }
0x159d   :  { %3191 = vmatpush3.bf16.msra.mxu0 %v2280_v2 }
0x159e   :  { %3192 = vmatprep.subr.bf16.mxu0 %v2278_v6 }
0x15a1   :  { %3193 = vmatpush3.bf16.msra.mxu0 %v2278_v6  ;;  %v3438_v9 = vpop.eup %3437 }
0x15a2   :  { %v3440_v13 = vpop.eup %3439  ;;  %v2273_v5 = vmul.f32 %v3438_v9, %v3434_v32  ;;  %v3273_v32 = vld [vmem:[#allocation5 + $0x64] ss:$36 sps:$4 sm:$0xff]  }
0x15a3   :  { %v3442_v10 = vpop.eup %3441  ;;  %v2272_v7 = vmul.f32 %v3440_v13, %v3432_v42  ;;  %3198 = vmatprep.subr.bf16.mxu0 %v3273_v32 }
0x15a4   :  { %v2274_v14 = vmul.f32 %v3442_v10, %v3430_v39 }
0x15a5   :  { %v3444_v21 = vpop.eup %3443 }
0x15a6   :  { %v2271_v15 = vmul.f32 %v3444_v21, %v3436_v4  ;;  %v2276_v48 = vpack.c.bf16 %v2274_v14, %v2273_v5 }
0x15a8   :  { %v2275_v17 = vpack.c.bf16 %v2272_v7, %v2271_v15  ;;  %v2899_v15 = vld [vmem:[%s4381_s3 + $0x91] ss:$0 sm:$0xff] }
0x15aa   :  { %3194 = vmatprep.mubr.msk.bf16.mxu0 %vm73_vm0, %v2275_v17 }
0x15ab   :  { %3195 = vmatmul.mubr.msk.bf16.vlgmr.msra.gmra.mxu0 %vm73_vm0, %v2276_v48  ;;  %v2900_v48 = vld [vmem:[%s4381_s3 + $0x92] ss:$0 sm:$0xff] }
0x15ac   :  { %3199 = vmatpush3.bf16.msra.mxu0 %v3273_v32 }
0x15ad   :  { %3200 = vmatprep.subr.bf16.mxu0 %v3274_v63 }
0x15b0   :  { %3201 = vmatpush3.bf16.msra.mxu0 %v3274_v63 }
0x166b   :  { %v3196_v18 = vpop.f32.mrf.mxu0 }
0x166c   :  { %v2340_v40 = vadd.f32 %v3196_v18, %v4247_v53 }
0x166d   :  { %v2323_v0 = vpop.f32.mrf.mxu0 }
0x166e   :  { %v2338_v57 = vadd.f32 %v2323_v0, %v4250_v30  ;;  %v2344_v30 = vadd.f32 %v2340_v40, %v3976_v35 }
0x166f   :  { %v3197_v62 = vpop.f32.mrf.mxu0 }
0x1670   :  { %v2342_v26 = vadd.f32 %v2338_v57, %v3973_v43  ;;  %v2341_v20 = vadd.f32 %v3197_v62, %v4252_v37  ;;  %v4295_v3 = vadd.f32 %v2898_v11, %v2344_v30  ;;  %v3275_v30 = vld [vmem:[%s4380_s2 + $0x78] sm:$0xff]  }
0x1671   :  { %v2326_v50 = vpop.f32.mrf.mxu0  ;;  %3206 = vmatprep.subr.bf16.mxu1 %v3275_v30 }
0x1672   :  { %v4284_v55 = vadd.f32 %v2898_v11, %v2342_v26  ;;  %v2345_v31 = vadd.f32 %v2341_v20, %v3984_v16  ;;  %v2339_v52 = vadd.f32 %v2326_v50, %v2173_v22  ;;  %v2363_v35 = vsel %vm73_vm0, %v4295_v3, 0.0  ;;  %3207 = vmatpush3.bf16.msra.mxu1 %v3275_v30 }
0x1674   :  { %v4288_v36 = vadd.f32 %v2898_v11, %v2345_v31  ;;  %v2343_v53 = vadd.f32 %v2339_v52, %v3981_v38  ;;  %v2357_v43 = vsel %vm73_vm0, %v4284_v55, 0.0 }
0x1675   :  { %2358 = vadd.xlane.f32.xlu1 %v2357_v43  ;;  %v3277_v43 = vld [vmem:[%s4380_s2 + $0x68] sm:$0xff]  }
0x1676   :  { %v4293_v37 = vadd.f32 %v2898_v11, %v2343_v53  ;;  %v2366_v33 = vsel %vm73_vm0, %v4288_v36, 0.0  ;;  %v3276_v53 = vld [vmem:[%s4380_s2 + $0x70] sm:$0xff]  }
0x1677   :  { %3208 = vmatprep.subr.bf16.mxu1 %v3276_v53 }
0x1678   :  { %v2360_v16 = vsel %vm73_vm0, %v4293_v37, 0.0  ;;  %3209 = vmatpush3.bf16.msra.mxu1 %v3276_v53 }
0x1679   :  { %2367 = vadd.xlane.f32.xlu1 %v2366_v33  ;;  %2361 = vadd.xlane.f32.xlu0 %v2360_v16  ;;  %v3278_v33 = vld [vmem:[%s4380_s2 + $0x60] sm:$0xff]   ;;  %v3279_v16 = vld [vmem:[%s4380_s2 + $0x58] sm:$0xff]  }
0x167a   :  { %3210 = vmatprep.subr.bf16.mxu1 %v3277_v43 }
0x167c   :  { %3211 = vmatpush3.bf16.msra.mxu1 %v3277_v43 }
0x167d   :  { %2364 = vadd.xlane.f32.xlu0 %v2363_v35  ;;  %3212 = vmatprep.subr.bf16.mxu1 %v3278_v33  ;;  %v3280_v35 = vld [vmem:[%s4380_s2 + $0x50] sm:$0xff]  }
0x1680   :  { %3213 = vmatpush3.bf16.msra.mxu1 %v3278_v33 }
0x1681   :  { %3214 = vmatprep.subr.bf16.mxu1 %v3279_v16 }
0x1684   :  { %3215 = vmatpush3.bf16.msra.mxu1 %v3279_v16 }
0x1685   :  { %3216 = vmatprep.subr.bf16.mxu1 %v3280_v35 }
0x1688   :  { %3217 = vmatpush3.bf16.msra.mxu1 %v3280_v35 }
0x16fe   :  { %v2359_v38 = vpop.xlane.xlu1 %2358 }
0x16ff   :  { %v2369_v29 = vmul.f32 0.03125, %v2359_v38  ;;  %v3281_v38 = vld [vmem:[%s4380_s2 + $0x48] sm:$0xff]  }
0x1700   :  { %3218 = vmatprep.subr.bf16.mxu1 %v3281_v38 }
0x1701   :  { %v2373_v23 = vsub.f32 %v4284_v55, %v2369_v29  ;;  %3219 = vmatpush3.bf16.msra.mxu1 %v3281_v38  ;;  %v3282_v29 = vld [vmem:[%s4380_s2 + $0x40] sm:$0xff]  }
0x1702   :  { %v2368_v54 = vpop.xlane.xlu1 %2367  ;;  %v2362_v28 = vpop.xlane.xlu0 %2361  ;;  %3220 = vmatprep.subr.bf16.mxu1 %v3282_v29 }
0x1703   :  { %v2372_v41 = vmul.f32 0.03125, %v2368_v54  ;;  %v2370_v8 = vmul.f32 0.03125, %v2362_v28  ;;  %v2377_v56 = vmul.f32 %v2373_v23, %v2373_v23 }
0x1705   :  { %v2376_v49 = vsub.f32 %v4288_v36, %v2372_v41  ;;  %v2374_v58 = vsub.f32 %v4293_v37, %v2370_v8  ;;  %v2381_v59 = vsel %vm73_vm0, %v2377_v56, 0.0  ;;  %3221 = vmatpush3.bf16.msra.mxu1 %v3282_v29 }
0x1706   :  { %2382 = vadd.xlane.f32.xlu0 %v2381_v59  ;;  %v2365_v25 = vpop.xlane.xlu0 %2364 }
0x1707   :  { %v2371_v44 = vmul.f32 0.03125, %v2365_v25  ;;  %v2378_v51 = vmul.f32 %v2374_v58, %v2374_v58  ;;  %v2380_v45 = vmul.f32 %v2376_v49, %v2376_v49 }
0x1709   :  { %v2375_v27 = vsub.f32 %v4295_v3, %v2371_v44  ;;  %v2384_v12 = vsel %vm73_vm0, %v2378_v51, 0.0  ;;  %v2390_v34 = vsel %vm73_vm0, %v2380_v45, 0.0 }
0x170a   :  { %2385 = vadd.xlane.f32.xlu1 %v2384_v12 }
0x170b   :  { %v2379_v39 = vmul.f32 %v2375_v27, %v2375_v27 }
0x170d   :  { %v2387_v42 = vsel %vm73_vm0, %v2379_v39, 0.0 }
0x170e   :  { %2391 = vadd.xlane.f32.xlu1 %v2390_v34  ;;  %2388 = vadd.xlane.f32.xlu0 %v2387_v42 }
0x178f   :  { %v2383_v4 = vpop.xlane.xlu0 %2382 }
0x1790   :  { %v2393_v24 = vmul.f32 0.03125, %v2383_v4 }
0x1792   :  { %v2397_v47 = vadd.f32 1e-05, %v2393_v24 }
0x1793   :  { %v2386_v46 = vpop.xlane.xlu1 %2385 }
0x1794   :  { %3445 = vrsqrt.f32 %v2397_v47  ;;  %v2394_v60 = vmul.f32 0.03125, %v2386_v46 }
0x1796   :  { %v2398_v61 = vadd.f32 1e-05, %v2394_v60 }
0x1797   :  { %v2392_v1 = vpop.xlane.xlu1 %2391  ;;  %v2389_v2 = vpop.xlane.xlu0 %2388 }
0x1798   :  { %3447 = vrsqrt.f32 %v2398_v61  ;;  %v2396_v6 = vmul.f32 0.03125, %v2392_v1  ;;  %v2395_v9 = vmul.f32 0.03125, %v2389_v2 }
0x179a   :  { %v2400_v13 = vadd.f32 1e-05, %v2396_v6  ;;  %v2399_v10 = vadd.f32 1e-05, %v2395_v9 }
0x179c   :  { %3449 = vrsqrt.f32 %v2400_v13 }
0x179d   :  { %3451 = vrsqrt.f32 %v2399_v10 }
0x17a1   :  { %v3446_v21 = vpop.eup %3445 }
0x17a2   :  { %v2405_v5 = vmul.f32 %v3446_v21, %v2373_v23  ;;  %v2901_v23 = vld [vmem:[%s4381_s3 + $0x94] ss:$0 sm:$0xff] }
0x17a4   :  { %v2413_v17 = vmul.f32 %v2899_v15, %v2405_v5 }
0x17a5   :  { %v3448_v7 = vpop.eup %3447 }
0x17a6   :  { %v2406_v14 = vmul.f32 %v3448_v7, %v2374_v58  ;;  %v2421_v62 = vadd.f32 %v2900_v48, %v2413_v17 }
0x17a8   :  { %v2414_v18 = vmul.f32 %v2899_v15, %v2406_v14 }
0x17a9   :  { %v3450_v0 = vpop.eup %3449 }
0x17aa   :  { %v3452_v19 = vpop.eup %3451  ;;  %v2408_v57 = vmul.f32 %v3450_v0, %v2376_v49  ;;  %v2422_v22 = vadd.f32 %v2900_v48, %v2414_v18 }
0x17ab   :  { %v2407_v40 = vmul.f32 %v3452_v19, %v2375_v27 }
0x17ac   :  { %v2425_v26 = vpack.c.bf16 %v2422_v22, %v2421_v62  ;;  %v2416_v20 = vmul.f32 %v2899_v15, %v2408_v57 }
0x17ad   :  { %v2415_v11 = vmul.f32 %v2899_v15, %v2407_v40 }
0x17ae   :  { %3202 = vmatprep.mubr.msk.bf16.mxu0 %vm73_vm0, %v2425_v26  ;;  %v2424_v50 = vadd.f32 %v2900_v48, %v2416_v20 }
0x17af   :  { %v2423_v31 = vadd.f32 %v2900_v48, %v2415_v11  ;;  %v2906_v11 = vld [vmem:[%s4381_s3 + $0x95] ss:$0 sm:$0xff] }
0x17b1   :  { %v2426_v52 = vpack.c.bf16 %v2424_v50, %v2423_v31 }
0x17b3   :  { %3203 = vmatmul.mubr.msk.bf16.vlgmr.msra.gmra.mxu0 %vm73_vm0, %v2426_v52 }
0x1873   :  { %v3204_v54 = vpop.f32.mrf.mxu0 }
0x1874   :  { %v2497_v28 = vadd.f32 %v3204_v54, %v2901_v23 }
0x1875   :  { %v2488_v41 = vpop.f32.mrf.mxu0 }
0x1876   :  { %v2505_v8 = vmul.f32 %v2497_v28, %v2497_v28  ;;  %v2489_v56 = vadd.f32 %v2901_v23, %v2488_v41 }
0x1877   :  { %v3205_v49 = vpop.f32.mrf.mxu0 }
0x1878   :  { %v2509_v58 = vmul.f32 %v2505_v8, %v2497_v28  ;;  %v2503_v59 = vmul.f32 %v2489_v56, %v2489_v56  ;;  %v2500_v25 = vadd.f32 %v3205_v49, %v2901_v23 }
0x1879   :  { %v2491_v44 = vpop.f32.mrf.mxu0 }
0x187a   :  { %v2513_v51 = vmul.f32 0.044715, %v2509_v58  ;;  %v2507_v27 = vmul.f32 %v2503_v59, %v2489_v56  ;;  %v2506_v12 = vmul.f32 %v2500_v25, %v2500_v25  ;;  %v2492_v45 = vadd.f32 %v2901_v23, %v2491_v44 }
0x187c   :  { %v2517_v39 = vadd.f32 %v2513_v51, %v2497_v28  ;;  %v2511_v34 = vmul.f32 0.044715, %v2507_v27  ;;  %v2510_v42 = vmul.f32 %v2506_v12, %v2500_v25  ;;  %v2504_v32 = vmul.f32 %v2492_v45, %v2492_v45 }
0x187e   :  { %v2521_v63 = vmul.f32 0.7978846, %v2517_v39  ;;  %v2515_v4 = vadd.f32 %v2511_v34, %v2489_v56  ;;  %v2514_v24 = vmul.f32 0.044715, %v2510_v42  ;;  %v2508_v47 = vmul.f32 %v2504_v32, %v2492_v45 }
0x1880   :  { %v2519_v46 = vmul.f32 0.7978846, %v2515_v4  ;;  %v2518_v60 = vadd.f32 %v2514_v24, %v2500_v25  ;;  %v2512_v61 = vmul.f32 0.044715, %v2508_v47  ;;  %3453 = vtanh.f32 %v2521_v63  ;;  %v3283_v4 = vld [vmem:[#allocation5 + $0x68] ss:$36 sps:$4 sm:$0xff]  }
0x1881   :  { %v3284_v24 = vld [vmem:[#allocation5 + $0x20] ss:$36 sps:$4 sm:$0xff]   ;;  %3226 = vmatprep.subr.bf16.mxu0 %v3283_v4 }
0x1882   :  { %3455 = vtanh.f32 %v2519_v46  ;;  %v2522_v1 = vmul.f32 0.7978846, %v2518_v60  ;;  %v2516_v2 = vadd.f32 %v2512_v61, %v2492_v45  ;;  %3227 = vmatpush3.bf16.msra.mxu0 %v3283_v4 }
0x1883   :  { %3228 = vmatprep.subr.bf16.mxu0 %v3284_v24 }
0x1884   :  { %3457 = vtanh.f32 %v2522_v1  ;;  %v2520_v6 = vmul.f32 0.7978846, %v2516_v2 }
0x1886   :  { %3459 = vtanh.f32 %v2520_v6  ;;  %3229 = vmatpush3.bf16.msra.mxu0 %v3284_v24 }
0x188d   :  { %v3454_v9 = vpop.eup %3453 }
0x188e   :  { %v2529_v5 = vadd.f32 1.0, %v3454_v9 }
0x188f   :  { %v3456_v13 = vpop.eup %3455 }
0x1890   :  { %v2527_v10 = vadd.f32 1.0, %v3456_v13  ;;  %v2533_v18 = vmul.f32 0.5, %v2529_v5 }
0x1891   :  { %v3458_v21 = vpop.eup %3457 }
0x1892   :  { %v2530_v15 = vadd.f32 1.0, %v3458_v21  ;;  %v2531_v48 = vmul.f32 0.5, %v2527_v10  ;;  %v2537_v22 = vmul.f32 %v2533_v18, %v2497_v28 }
0x1893   :  { %v3460_v7 = vpop.eup %3459 }
0x1894   :  { %v2534_v14 = vmul.f32 0.5, %v2530_v15  ;;  %v2528_v17 = vadd.f32 1.0, %v3460_v7  ;;  %v2535_v57 = vmul.f32 %v2531_v48, %v2489_v56 }
0x1896   :  { %v2532_v0 = vmul.f32 0.5, %v2528_v17  ;;  %v2538_v19 = vmul.f32 %v2534_v14, %v2500_v25  ;;  %v2915_v14 = vld [vmem:[%s4381_s3 + $0x96] ss:$0 sm:$0xff] }
0x1898   :  { %v2536_v62 = vmul.f32 %v2532_v0, %v2492_v45  ;;  %v2540_v26 = vpack.c.bf16 %v2538_v19, %v2537_v22 }
0x189a   :  { %v2539_v40 = vpack.c.bf16 %v2536_v62, %v2535_v57  ;;  %v2916_v57 = vld [vmem:[%s4381_s3 + $0x97] ss:$0 sm:$0xff] }
0x189c   :  { %3222 = vmatprep.mubr.bf16.mxu1 %v2539_v40 }
0x189d   :  { %3223 = vmatmul.mubr.bf16.vlgmr.msra.gmra.mxu1 %v2540_v26 }
0x195d   :  { %v3224_v20 = vpop.f32.mrf.mxu1 }
0x195e   :  { %v2653_v31 = vadd.f32 %v3224_v20, %v2906_v11 }
0x195f   :  { %v2644_v50 = vpop.f32.mrf.mxu1 }
0x1960   :  { %v2645_v52 = vadd.f32 %v2906_v11, %v2644_v50  ;;  %v2661_v33 = vadd.f32 %v2653_v31, %v4295_v3 }
0x1961   :  { %v3225_v30 = vpop.f32.mrf.mxu1 }
0x1962   :  { %v2659_v53 = vadd.f32 %v2645_v52, %v4284_v55  ;;  %v2656_v16 = vadd.f32 %v3225_v30, %v2906_v11  ;;  %v2671_v28 = vsel %vm73_vm0, %v2661_v33, 0.0 }
0x1963   :  { %v2647_v43 = vpop.f32.mrf.mxu1 }
0x1964   :  { %v2648_v35 = vadd.f32 %v2906_v11, %v2647_v43  ;;  %v2665_v38 = vsel %vm73_vm0, %v2659_v53, 0.0  ;;  %v2662_v23 = vadd.f32 %v2656_v16, %v4288_v36  ;;  %v2917_v43 = vld [vmem:[%s4381_s3 + $0x98] ss:$0 sm:$0xff] }
0x1965   :  { %2666 = vadd.xlane.f32.xlu0 %v2665_v38 }
0x1966   :  { %v2660_v29 = vadd.f32 %v2648_v35, %v4293_v37  ;;  %v2674_v55 = vsel %vm73_vm0, %v2662_v23, 0.0 }
0x1968   :  { %v2668_v54 = vsel %vm73_vm0, %v2660_v29, 0.0 }
0x1969   :  { %2669 = vadd.xlane.f32.xlu1 %v2668_v54  ;;  %2672 = vadd.xlane.f32.xlu0 %v2671_v28 }
0x196d   :  { %2675 = vadd.xlane.f32.xlu1 %v2674_v55 }
0x19ee   :  { %v2667_v41 = vpop.xlane.xlu0 %2666 }
0x19ef   :  { %v2677_v3 = vmul.f32 0.03125, %v2667_v41 }
0x19f1   :  { %v2681_v8 = vsub.f32 %v2659_v53, %v2677_v3 }
0x19f2   :  { %v2670_v56 = vpop.xlane.xlu1 %2669  ;;  %v2673_v49 = vpop.xlane.xlu0 %2672 }
0x19f3   :  { %v2678_v58 = vmul.f32 0.03125, %v2670_v56  ;;  %v2679_v59 = vmul.f32 0.03125, %v2673_v49  ;;  %v2685_v25 = vmul.f32 %v2681_v8, %v2681_v8 }
0x19f5   :  { %v2682_v37 = vsub.f32 %v2660_v29, %v2678_v58  ;;  %v2683_v44 = vsub.f32 %v2661_v33, %v2679_v59  ;;  %v2689_v36 = vsel %vm73_vm0, %v2685_v25, 0.0 }
0x19f6   :  { %v2676_v51 = vpop.xlane.xlu1 %2675  ;;  %2690 = vadd.xlane.f32.xlu0 %v2689_v36 }
0x19f7   :  { %v2680_v27 = vmul.f32 0.03125, %v2676_v51  ;;  %v2686_v12 = vmul.f32 %v2682_v37, %v2682_v37  ;;  %v2687_v45 = vmul.f32 %v2683_v44, %v2683_v44 }
0x19f9   :  { %v2684_v39 = vsub.f32 %v2662_v23, %v2680_v27  ;;  %v2692_v34 = vsel %vm73_vm0, %v2686_v12, 0.0  ;;  %v2695_v42 = vsel %vm73_vm0, %v2687_v45, 0.0 }
0x19fa   :  { %2693 = vadd.xlane.f32.xlu1 %v2692_v34  ;;  %2696 = vadd.xlane.f32.xlu0 %v2695_v42 }
0x19fb   :  { %v2688_v32 = vmul.f32 %v2684_v39, %v2684_v39 }
0x19fd   :  { %v2698_v63 = vsel %vm73_vm0, %v2688_v32, 0.0 }
0x19fe   :  { %2699 = vadd.xlane.f32.xlu1 %v2698_v63 }
0x1a7f   :  { %v2691_v47 = vpop.xlane.xlu0 %2690 }
0x1a80   :  { %v2701_v46 = vmul.f32 0.03125, %v2691_v47 }
0x1a82   :  { %v2705_v60 = vadd.f32 1e-05, %v2701_v46 }
0x1a83   :  { %v2694_v61 = vpop.xlane.xlu1 %2693  ;;  %v2697_v1 = vpop.xlane.xlu0 %2696 }
0x1a84   :  { %3461 = vrsqrt.f32 %v2705_v60  ;;  %v2702_v2 = vmul.f32 0.03125, %v2694_v61  ;;  %v2703_v6 = vmul.f32 0.03125, %v2697_v1 }
0x1a86   :  { %v2706_v9 = vadd.f32 1e-05, %v2702_v2  ;;  %v2707_v13 = vadd.f32 1e-05, %v2703_v6 }
0x1a87   :  { %v2700_v10 = vpop.xlane.xlu1 %2699 }
0x1a88   :  { %3463 = vrsqrt.f32 %v2706_v9  ;;  %v2704_v21 = vmul.f32 0.03125, %v2700_v10 }
0x1a89   :  { %3465 = vrsqrt.f32 %v2707_v13 }
0x1a8a   :  { %v2708_v5 = vadd.f32 1e-05, %v2704_v21 }
0x1a8c   :  { %3467 = vrsqrt.f32 %v2708_v5 }
0x1a91   :  { %v3462_v15 = vpop.eup %3461 }
0x1a92   :  { %v2713_v7 = vmul.f32 %v3462_v15, %v2681_v8 }
0x1a94   :  { %v2721_v0 = vmul.f32 %v2915_v14, %v2713_v7 }
0x1a95   :  { %v3464_v17 = vpop.eup %3463 }
0x1a96   :  { %v3466_v48 = vpop.eup %3465  ;;  %v2714_v18 = vmul.f32 %v3464_v17, %v2682_v37  ;;  %v2729_v26 = vadd.f32 %v2916_v57, %v2721_v0 }
0x1a97   :  { %v2715_v19 = vmul.f32 %v3466_v48, %v2683_v44 }
0x1a98   :  { %v2722_v62 = vmul.f32 %v2915_v14, %v2714_v18 }
0x1a99   :  { %v3468_v22 = vpop.eup %3467  ;;  %v2723_v11 = vmul.f32 %v2915_v14, %v2715_v19 }
0x1a9a   :  { %v2716_v40 = vmul.f32 %v3468_v22, %v2684_v39  ;;  %v2730_v20 = vadd.f32 %v2916_v57, %v2722_v62 }
0x1a9b   :  { %v2731_v52 = vadd.f32 %v2916_v57, %v2723_v11 }
0x1a9c   :  { %v2733_v50 = vpack.c.bf16 %v2730_v20, %v2729_v26  ;;  %v2724_v31 = vmul.f32 %v2915_v14, %v2716_v40 }
0x1a9e   :  { %3230 = vmatprep.mubr.msk.bf16.mxu0 %vm73_vm0, %v2733_v50  ;;  %v2732_v30 = vadd.f32 %v2916_v57, %v2724_v31 }
0x1aa0   :  { %v2734_v53 = vpack.c.bf16 %v2732_v30, %v2731_v52 }
0x1aa2   :  { %3231 = vmatmul.mubr.msk.bf16.vlgmr.msra.gmra.mxu0 %vm73_vm0, %v2734_v53 }
0x1b62   :  { %v3232_v33 = vpop.f32.mrf.mxu0 }
0x1b63   :  { %v2805_v16 = vadd.f32 %v3232_v33, %v2917_v43 }
0x1b64   :  { %v2796_v35 = vpop.f32.mrf.mxu0 }
0x1b65   :  { %2813 = vst [vmem:[#allocation7 + $0x10] sm:$0xff] %v2805_v16  ;;  %v2797_v38 = vadd.f32 %v2917_v43, %v2796_v35 }
0x1b66   :  { %v3233_v29 = vpop.f32.mrf.mxu0 }
0x1b67   :  { %2811 = vst [vmem:[#allocation7] sm:$0xff] %v2797_v38  ;;  %v2808_v23 = vadd.f32 %v3233_v29, %v2917_v43 }
0x1b68   :  { %v2799_v54 = vpop.f32.mrf.mxu0 }
0x1b69   :  { %2814 = vst [vmem:[#allocation7 + $0x18] sm:$0xff] %v2808_v23  ;;  %v2800_v28 = vadd.f32 %v2917_v43, %v2799_v54 }
0x1b6b   :  { %2812 = vst [vmem:[#allocation7 + $0x8] sm:$0xff] %v2800_v28 }
0x1b6c   :  { %3544 = shalt.err (!%p3541_p0)
}
0x1b6d   :  { %2826 = dma.vmem_to_hbm [thread:$0]  %s2821_s16, 512, %s4382_s4, [#allocation4], %s3560_s18, %s3560_s18, %s3561_s19  }
0x1b6e   :  { %3557 = dma.done.wait [#allocation4], 512  }
0x1b6f   :  { %3558 = vsyncadd [#allocation4], 4294966784 }
0x1b70   :  { %2830 = vsyncpa [#allocation3], 1 }
0x1b71   :  { %2831 = vsyncpa [#allocation6], 1 }
0x1b72   :  { %2832 = vsyncpa [#allocation4], 1 }

</bundles_post_ra>
